<compile_context>
chip_gen: v7x
topology: tpu7x:2x2x1
jax: 0.10.0
libtpu: 0.0.40
codegen_flags: <defaults>
</compile_context>

<pallas_src>
import functools

import jax
import jax.numpy as jnp
from jax import lax
from jax.experimental import pallas as pl
from jax.experimental.pallas import tpu as pltpu

KSIZE = 5
ATROUS_RATES = (1, 2, 4, 5, 7)
NUM_LAYERS = len(ATROUS_RATES)
PAD_MAX = max(ATROUS_RATES) * (KSIZE - 1) // 2   # 14 halo rows needed


def _halo_rows(width):
    """Smallest halo >= PAD_MAX with halo*width a multiple of 128, so the slab
    center starts at a 128-lane-aligned offset (unmasked center stores).
    A solution always exists within PAD_MAX + 128 rows (asserted)."""
    r = PAD_MAX
    while (r * width) % 128 != 0:
        r += 1
        assert r <= PAD_MAX + 128, "no lane-aligned halo found"
    return r


def _fused_atrous_kernel(x_ref, w_ref, b_ref, o_ref, slab_ref, *,
                         width, center, n_batch):
    """All 5 dilated (5, 1) conv layers in one invocation.

    x_ref    : (C*N, H*W)           input activation, sublane = c*N + n (VMEM)
    w_ref    : (C*N, L*K*C) f32     per-(layer, tap, shift) weight columns
    b_ref    : (C*N, L)     f32     per-layer bias columns
    o_ref    : (C*N, H*W)           output activation (VMEM)
    slab_ref : (C*N, HP*W)  f32     zero-halo padded activation scratch (VMEM)
    """
    S, HW = x_ref.shape                 # 8, 256
    C = S // n_batch                    # 4
    hpw = slab_ref.shape[1]

    # Prologue: zero ONLY the halo regions (the center is always overwritten)
    # and stage the input into the lane-aligned center in one 2-D store.
    # The halo is never written again, so every layer reuses the zero padding.
    slab_ref[:, 0:center] = jnp.zeros((S, center), jnp.float32)
    slab_ref[:, center + HW:hpw] = jnp.zeros((S, hpw - center - HW), jnp.float32)
    slab_ref[:, center:center + HW] = x_ref[...].astype(jnp.float32)

    for l, d in enumerate(ATROUS_RATES):
        # f32 accumulator for all (co, n) sublanes at once, seeded with bias.
        acc = jnp.broadcast_to(b_ref[:, l:l + 1], (S, HW))

        for k in range(KSIZE):
            # Output row h reads input row h + (k - 2)*d (cross-correlation).
            start = center + (k - (KSIZE - 1) // 2) * d * width   # static int
            tap = slab_ref[:, start:start + HW]                   # (S, HW)
            for j in range(C):
                # Circulant term j: output channel co takes input channel
                # (co + j) % C, realised as a sublane roll of the tap (XLU)
                # times a per-sublane weight column (VPU, full vregs).
                if j == 0:
                    t = tap
                else:
                    t = pltpu.roll(tap, shift=(S - n_batch * j) % S, axis=0)
                q = (l * KSIZE + k) * C + j
                acc = acc + w_ref[:, q:q + 1] * t

        if l == NUM_LAYERS - 1:
            o_ref[...] = acc.astype(o_ref.dtype)        # lane-dense final store
        else:
            slab_ref[:, center:center + HW] = acc       # aligned center store


def pack_atrous_params(params, n_batch):
    """One-time packing of PyTorch-layout params (hoisted out of forward).

    params : list of (weight (C_out, C_in, K, 1), bias (C_out,)) per layer.
    Returns
      w_tab : (C*n_batch, L*K*C) f32,
              w_tab[co*n_batch + n, (l*K + k)*C + j] = W_l[co, (co + j) % C, k]
      b_tab : (C*n_batch, L) f32,  b_tab[co*n_batch + n, l] = b_l[co]
    """
    C = params[0][0].shape[0]
    K = params[0][0].shape[2]
    w_cols = []
    for (w, _b) in params:
        w3 = jnp.asarray(w, jnp.float32)[:, :, :, 0]           # (C_out, C_in, K)
        for k in range(K):
            for j in range(C):
                col = jnp.stack([w3[co, (co + j) % C, k] for co in range(C)])
                w_cols.append(jnp.repeat(col, n_batch))        # (C*N,)
    w_tab = jnp.stack(w_cols, axis=1)                          # (C*N, L*K*C)
    b_tab = jnp.stack(
        [jnp.repeat(jnp.asarray(b, jnp.float32), n_batch) for _w, b in params],
        axis=1)                                                # (C*N, L)
    return w_tab, b_tab


def atrous_conv_forward(x_nchw, w_tab, b_tab):
    """Full Atrous_conv forward as ONE fused Pallas kernel call."""
    N, C, H, W = x_nchw.shape
    HW = H * W
    halo = _halo_rows(W)
    center = halo * W
    hpw = (H + 2 * halo) * W
    S = C * N

    # NCHW -> (C*N, H*W): sublane = c*N + n, lane = h*W + w.  Tiny one-shot
    # layout change (8 KB) done once per forward call.
    x_s = jnp.transpose(x_nchw, (1, 0, 2, 3)).reshape(S, HW)

    kern = functools.partial(_fused_atrous_kernel, width=W, center=center,
                             n_batch=N)
    y = pl.pallas_call(
        kern,
        out_shape=jax.ShapeDtypeStruct((S, HW), x_nchw.dtype),
        in_specs=[
            pl.BlockSpec(memory_space=pltpu.MemorySpace.VMEM),   # activation
            pl.BlockSpec(memory_space=pltpu.MemorySpace.VMEM),   # weight cols
            pl.BlockSpec(memory_space=pltpu.MemorySpace.VMEM),   # bias cols
        ],
        out_specs=pl.BlockSpec(memory_space=pltpu.MemorySpace.VMEM),
        scratch_shapes=[
            pltpu.VMEM((S, hpw), jnp.float32),   # zero-halo padded slab (~24 KB)
        ],
    )(x_s, w_tab, b_tab)

    return jnp.transpose(y.reshape(C, N, H, W), (1, 0, 2, 3))    # -> NCHW


def ref_forward(x_nchw, params):
    """Reference in plain JAX (mirrors the PyTorch module semantics)."""
    x = x_nchw
    for (w_oihw, b), d in zip(params, ATROUS_RATES):
        pad = d * (KSIZE - 1) // 2
        x = lax.conv_general_dilated(
            x, w_oihw,
            window_strides=(1, 1),
            padding=((pad, pad), (0, 0)),
            rhs_dilation=(d, d),
            dimension_numbers=("NCHW", "OIHW", "NCHW"))
        x = x + b.reshape(1, -1, 1, 1)
    return x


if __name__ == "__main__":
    # Small shapes consistent with the module; in_channels == out_channels is
    # required for the sequential stacking in forward().
    N, C, H, W = 2, 4, 16, 16

    key = jax.random.PRNGKey(0)
    keys = jax.random.split(key, 1 + 2 * NUM_LAYERS)
    kx, pkeys = keys[0], keys[1:]

    x = jax.random.normal(kx, (N, C, H, W), jnp.float32)

    params = []
    for i in range(NUM_LAYERS):
        kw, kb = pkeys[2 * i], pkeys[2 * i + 1]
        w = jax.random.normal(kw, (C, C, KSIZE, 1), jnp.float32) * 0.1
        b = jax.random.normal(kb, (C,), jnp.float32) * 0.1
        params.append((w, b))

    # Hoisted, one-time param packing (no per-forward weight transposes).
    w_tab, b_tab = pack_atrous_params(params, N)

    fwd = jax.jit(atrous_conv_forward)
    y = fwd(x, w_tab, b_tab)
    y = jax.block_until_ready(y)

    y_ref = ref_forward(x, params)
    max_err = float(jnp.max(jnp.abs(y - y_ref)))
    assert y.shape == (N, C, H, W), y.shape
    assert jnp.allclose(y, y_ref, atol=1e-4, rtol=1e-4), max_err

    print("KERNEL_OK")
</pallas_src>

<mosaic_0001>
module attributes {stable_mosaic.version = 11 : i64} {
  func.func @_fused_atrous_kernel(%arg0: memref<8x256xf32, #tpu.memory_space<vmem>>, %arg1: memref<8x100xf32, #tpu.memory_space<vmem>>, %arg2: memref<8x5xf32, #tpu.memory_space<vmem>>, %arg3: memref<8x256xf32, #tpu.memory_space<vmem>>, %arg4: memref<8x768xf32, #tpu.memory_space<vmem>>) attributes {dimension_semantics = [], scalar_prefetch = 0 : i64, scratch_operands = 1 : i64, tpu.core_type = #tpu.core_type<tc>} {
    %cst = arith.constant 0.000000e+00 : f32
    %0 = vector.broadcast %cst : f32 to vector<8x256xf32>
    %c0 = arith.constant 0 : index
    %c0_0 = arith.constant 0 : index
    %1 = vector.load %arg4[%c0, %c0_0] : memref<8x768xf32, #tpu.memory_space<vmem>>, vector<8x256xf32>
    tpu.vector_store %arg4[%c0, %c0_0], %0 {strides = array<i32>} : memref<8x768xf32, #tpu.memory_space<vmem>>, vector<8x256xf32>,
    %cst_1 = arith.constant 0.000000e+00 : f32
    %2 = vector.broadcast %cst_1 : f32 to vector<8x256xf32>
    %c0_2 = arith.constant 0 : index
    %c512 = arith.constant 512 : index
    %3 = vector.load %arg4[%c0_2, %c512] : memref<8x768xf32, #tpu.memory_space<vmem>>, vector<8x256xf32>
    tpu.vector_store %arg4[%c0_2, %c512], %2 {strides = array<i32>} : memref<8x768xf32, #tpu.memory_space<vmem>>, vector<8x256xf32>,
    %c0_3 = arith.constant 0 : index
    %c0_4 = arith.constant 0 : index
    %4 = vector.load %arg0[%c0_3, %c0_4] : memref<8x256xf32, #tpu.memory_space<vmem>>, vector<8x256xf32>
    %c0_5 = arith.constant 0 : index
    %c256 = arith.constant 256 : index
    %5 = vector.load %arg4[%c0_5, %c256] : memref<8x768xf32, #tpu.memory_space<vmem>>, vector<8x256xf32>
    tpu.vector_store %arg4[%c0_5, %c256], %4 {strides = array<i32>} : memref<8x768xf32, #tpu.memory_space<vmem>>, vector<8x256xf32>,
    %c0_6 = arith.constant 0 : index
    %c0_7 = arith.constant 0 : index
    %6 = vector.load %arg2[%c0_6, %c0_7] : memref<8x5xf32, #tpu.memory_space<vmem>>, vector<8x1xf32>
    %7 = vector.shape_cast %6 : vector<8x1xf32> to vector<8x1xf32>
    %8 = vector.broadcast %7 : vector<8x1xf32> to vector<8x256xf32>
    %c0_8 = arith.constant 0 : index
    %c224 = arith.constant 224 : index
    %9 = vector.load %arg4[%c0_8, %c224] : memref<8x768xf32, #tpu.memory_space<vmem>>, vector<8x256xf32>
    %c0_9 = arith.constant 0 : index
    %c0_10 = arith.constant 0 : index
    %10 = vector.load %arg1[%c0_9, %c0_10] : memref<8x100xf32, #tpu.memory_space<vmem>>, vector<8x1xf32>
    %11 = vector.broadcast %10 : vector<8x1xf32> to vector<8x256xf32>
    %12 = arith.mulf %11, %9 : vector<8x256xf32>
    %13 = arith.addf %8, %12 : vector<8x256xf32>
    %c6_i32 = arith.constant 6 : i32
    %14 = tpu.dynamic_rotate %9 by %c6_i32 dim 0 : vector<8x256xf32>, i32 -> vector<8x256xf32>
    %c0_11 = arith.constant 0 : index
    %c1 = arith.constant 1 : index
    %15 = vector.load %arg1[%c0_11, %c1] : memref<8x100xf32, #tpu.memory_space<vmem>>, vector<8x1xf32>
    %16 = vector.broadcast %15 : vector<8x1xf32> to vector<8x256xf32>
    %17 = arith.mulf %16, %14 : vector<8x256xf32>
    %18 = arith.addf %13, %17 : vector<8x256xf32>
    %c4_i32 = arith.constant 4 : i32
    %19 = tpu.dynamic_rotate %9 by %c4_i32 dim 0 : vector<8x256xf32>, i32 -> vector<8x256xf32>
    %c0_12 = arith.constant 0 : index
    %c2 = arith.constant 2 : index
    %20 = vector.load %arg1[%c0_12, %c2] : memref<8x100xf32, #tpu.memory_space<vmem>>, vector<8x1xf32>
    %21 = vector.broadcast %20 : vector<8x1xf32> to vector<8x256xf32>
    %22 = arith.mulf %21, %19 : vector<8x256xf32>
    %23 = arith.addf %18, %22 : vector<8x256xf32>
    %c2_i32 = arith.constant 2 : i32
    %24 = tpu.dynamic_rotate %9 by %c2_i32 dim 0 : vector<8x256xf32>, i32 -> vector<8x256xf32>
    %c0_13 = arith.constant 0 : index
    %c3 = arith.constant 3 : index
    %25 = vector.load %arg1[%c0_13, %c3] : memref<8x100xf32, #tpu.memory_space<vmem>>, vector<8x1xf32>
    %26 = vector.broadcast %25 : vector<8x1xf32> to vector<8x256xf32>
    %27 = arith.mulf %26, %24 : vector<8x256xf32>
    %28 = arith.addf %23, %27 : vector<8x256xf32>
    %c0_14 = arith.constant 0 : index
    %c240 = arith.constant 240 : index
    %29 = vector.load %arg4[%c0_14, %c240] : memref<8x768xf32, #tpu.memory_space<vmem>>, vector<8x256xf32>
    %c0_15 = arith.constant 0 : index
    %c4 = arith.constant 4 : index
    %30 = vector.load %arg1[%c0_15, %c4] : memref<8x100xf32, #tpu.memory_space<vmem>>, vector<8x1xf32>
    %31 = vector.broadcast %30 : vector<8x1xf32> to vector<8x256xf32>
    %32 = arith.mulf %31, %29 : vector<8x256xf32>
    %33 = arith.addf %28, %32 : vector<8x256xf32>
    %c6_i32_16 = arith.constant 6 : i32
    %34 = tpu.dynamic_rotate %29 by %c6_i32_16 dim 0 : vector<8x256xf32>, i32 -> vector<8x256xf32>
    %c0_17 = arith.constant 0 : index
    %c5 = arith.constant 5 : index
    %35 = vector.load %arg1[%c0_17, %c5] : memref<8x100xf32, #tpu.memory_space<vmem>>, vector<8x1xf32>
    %36 = vector.broadcast %35 : vector<8x1xf32> to vector<8x256xf32>
    %37 = arith.mulf %36, %34 : vector<8x256xf32>
    %38 = arith.addf %33, %37 : vector<8x256xf32>
    %c4_i32_18 = arith.constant 4 : i32
    %39 = tpu.dynamic_rotate %29 by %c4_i32_18 dim 0 : vector<8x256xf32>, i32 -> vector<8x256xf32>
    %c0_19 = arith.constant 0 : index
    %c6 = arith.constant 6 : index
    %40 = vector.load %arg1[%c0_19, %c6] : memref<8x100xf32, #tpu.memory_space<vmem>>, vector<8x1xf32>
    %41 = vector.broadcast %40 : vector<8x1xf32> to vector<8x256xf32>
    %42 = arith.mulf %41, %39 : vector<8x256xf32>
    %43 = arith.addf %38, %42 : vector<8x256xf32>
    %c2_i32_20 = arith.constant 2 : i32
    %44 = tpu.dynamic_rotate %29 by %c2_i32_20 dim 0 : vector<8x256xf32>, i32 -> vector<8x256xf32>
    %c0_21 = arith.constant 0 : index
    %c7 = arith.constant 7 : index
    %45 = vector.load %arg1[%c0_21, %c7] : memref<8x100xf32, #tpu.memory_space<vmem>>, vector<8x1xf32>
    %46 = vector.broadcast %45 : vector<8x1xf32> to vector<8x256xf32>
    %47 = arith.mulf %46, %44 : vector<8x256xf32>
    %48 = arith.addf %43, %47 : vector<8x256xf32>
    %c0_22 = arith.constant 0 : index
    %c256_23 = arith.constant 256 : index
    %49 = vector.load %arg4[%c0_22, %c256_23] : memref<8x768xf32, #tpu.memory_space<vmem>>, vector<8x256xf32>
    %c0_24 = arith.constant 0 : index
    %c8 = arith.constant 8 : index
    %50 = vector.load %arg1[%c0_24, %c8] : memref<8x100xf32, #tpu.memory_space<vmem>>, vector<8x1xf32>
    %51 = vector.broadcast %50 : vector<8x1xf32> to vector<8x256xf32>
    %52 = arith.mulf %51, %49 : vector<8x256xf32>
    %53 = arith.addf %48, %52 : vector<8x256xf32>
    %c6_i32_25 = arith.constant 6 : i32
    %54 = tpu.dynamic_rotate %49 by %c6_i32_25 dim 0 : vector<8x256xf32>, i32 -> vector<8x256xf32>
    %c0_26 = arith.constant 0 : index
    %c9 = arith.constant 9 : index
    %55 = vector.load %arg1[%c0_26, %c9] : memref<8x100xf32, #tpu.memory_space<vmem>>, vector<8x1xf32>
    %56 = vector.broadcast %55 : vector<8x1xf32> to vector<8x256xf32>
    %57 = arith.mulf %56, %54 : vector<8x256xf32>
    %58 = arith.addf %53, %57 : vector<8x256xf32>
    %c4_i32_27 = arith.constant 4 : i32
    %59 = tpu.dynamic_rotate %49 by %c4_i32_27 dim 0 : vector<8x256xf32>, i32 -> vector<8x256xf32>
    %c0_28 = arith.constant 0 : index
    %c10 = arith.constant 10 : index
    %60 = vector.load %arg1[%c0_28, %c10] : memref<8x100xf32, #tpu.memory_space<vmem>>, vector<8x1xf32>
    %61 = vector.broadcast %60 : vector<8x1xf32> to vector<8x256xf32>
    %62 = arith.mulf %61, %59 : vector<8x256xf32>
    %63 = arith.addf %58, %62 : vector<8x256xf32>
    %c2_i32_29 = arith.constant 2 : i32
    %64 = tpu.dynamic_rotate %49 by %c2_i32_29 dim 0 : vector<8x256xf32>, i32 -> vector<8x256xf32>
    %c0_30 = arith.constant 0 : index
    %c11 = arith.constant 11 : index
    %65 = vector.load %arg1[%c0_30, %c11] : memref<8x100xf32, #tpu.memory_space<vmem>>, vector<8x1xf32>
    %66 = vector.broadcast %65 : vector<8x1xf32> to vector<8x256xf32>
    %67 = arith.mulf %66, %64 : vector<8x256xf32>
    %68 = arith.addf %63, %67 : vector<8x256xf32>
    %c0_31 = arith.constant 0 : index
    %c272 = arith.constant 272 : index
    %69 = vector.load %arg4[%c0_31, %c272] : memref<8x768xf32, #tpu.memory_space<vmem>>, vector<8x256xf32>
    %c0_32 = arith.constant 0 : index
    %c12 = arith.constant 12 : index
    %70 = vector.load %arg1[%c0_32, %c12] : memref<8x100xf32, #tpu.memory_space<vmem>>, vector<8x1xf32>
    %71 = vector.broadcast %70 : vector<8x1xf32> to vector<8x256xf32>
    %72 = arith.mulf %71, %69 : vector<8x256xf32>
    %73 = arith.addf %68, %72 : vector<8x256xf32>
    %c6_i32_33 = arith.constant 6 : i32
    %74 = tpu.dynamic_rotate %69 by %c6_i32_33 dim 0 : vector<8x256xf32>, i32 -> vector<8x256xf32>
    %c0_34 = arith.constant 0 : index
    %c13 = arith.constant 13 : index
    %75 = vector.load %arg1[%c0_34, %c13] : memref<8x100xf32, #tpu.memory_space<vmem>>, vector<8x1xf32>
    %76 = vector.broadcast %75 : vector<8x1xf32> to vector<8x256xf32>
    %77 = arith.mulf %76, %74 : vector<8x256xf32>
    %78 = arith.addf %73, %77 : vector<8x256xf32>
    %c4_i32_35 = arith.constant 4 : i32
    %79 = tpu.dynamic_rotate %69 by %c4_i32_35 dim 0 : vector<8x256xf32>, i32 -> vector<8x256xf32>
    %c0_36 = arith.constant 0 : index
    %c14 = arith.constant 14 : index
    %80 = vector.load %arg1[%c0_36, %c14] : memref<8x100xf32, #tpu.memory_space<vmem>>, vector<8x1xf32>
    %81 = vector.broadcast %80 : vector<8x1xf32> to vector<8x256xf32>
    %82 = arith.mulf %81, %79 : vector<8x256xf32>
    %83 = arith.addf %78, %82 : vector<8x256xf32>
    %c2_i32_37 = arith.constant 2 : i32
    %84 = tpu.dynamic_rotate %69 by %c2_i32_37 dim 0 : vector<8x256xf32>, i32 -> vector<8x256xf32>
    %c0_38 = arith.constant 0 : index
    %c15 = arith.constant 15 : index
    %85 = vector.load %arg1[%c0_38, %c15] : memref<8x100xf32, #tpu.memory_space<vmem>>, vector<8x1xf32>
    %86 = vector.broadcast %85 : vector<8x1xf32> to vector<8x256xf32>
    %87 = arith.mulf %86, %84 : vector<8x256xf32>
    %88 = arith.addf %83, %87 : vector<8x256xf32>
    %c0_39 = arith.constant 0 : index
    %c288 = arith.constant 288 : index
    %89 = vector.load %arg4[%c0_39, %c288] : memref<8x768xf32, #tpu.memory_space<vmem>>, vector<8x256xf32>
    %c0_40 = arith.constant 0 : index
    %c16 = arith.constant 16 : index
    %90 = vector.load %arg1[%c0_40, %c16] : memref<8x100xf32, #tpu.memory_space<vmem>>, vector<8x1xf32>
    %91 = vector.broadcast %90 : vector<8x1xf32> to vector<8x256xf32>
    %92 = arith.mulf %91, %89 : vector<8x256xf32>
    %93 = arith.addf %88, %92 : vector<8x256xf32>
    %c6_i32_41 = arith.constant 6 : i32
    %94 = tpu.dynamic_rotate %89 by %c6_i32_41 dim 0 : vector<8x256xf32>, i32 -> vector<8x256xf32>
    %c0_42 = arith.constant 0 : index
    %c17 = arith.constant 17 : index
    %95 = vector.load %arg1[%c0_42, %c17] : memref<8x100xf32, #tpu.memory_space<vmem>>, vector<8x1xf32>
    %96 = vector.broadcast %95 : vector<8x1xf32> to vector<8x256xf32>
    %97 = arith.mulf %96, %94 : vector<8x256xf32>
    %98 = arith.addf %93, %97 : vector<8x256xf32>
    %c4_i32_43 = arith.constant 4 : i32
    %99 = tpu.dynamic_rotate %89 by %c4_i32_43 dim 0 : vector<8x256xf32>, i32 -> vector<8x256xf32>
    %c0_44 = arith.constant 0 : index
    %c18 = arith.constant 18 : index
    %100 = vector.load %arg1[%c0_44, %c18] : memref<8x100xf32, #tpu.memory_space<vmem>>, vector<8x1xf32>
    %101 = vector.broadcast %100 : vector<8x1xf32> to vector<8x256xf32>
    %102 = arith.mulf %101, %99 : vector<8x256xf32>
    %103 = arith.addf %98, %102 : vector<8x256xf32>
    %c2_i32_45 = arith.constant 2 : i32
    %104 = tpu.dynamic_rotate %89 by %c2_i32_45 dim 0 : vector<8x256xf32>, i32 -> vector<8x256xf32>
    %c0_46 = arith.constant 0 : index
    %c19 = arith.constant 19 : index
    %105 = vector.load %arg1[%c0_46, %c19] : memref<8x100xf32, #tpu.memory_space<vmem>>, vector<8x1xf32>
    %106 = vector.broadcast %105 : vector<8x1xf32> to vector<8x256xf32>
    %107 = arith.mulf %106, %104 : vector<8x256xf32>
    %108 = arith.addf %103, %107 : vector<8x256xf32>
    %c0_47 = arith.constant 0 : index
    %c256_48 = arith.constant 256 : index
    %109 = vector.load %arg4[%c0_47, %c256_48] : memref<8x768xf32, #tpu.memory_space<vmem>>, vector<8x256xf32>
    tpu.vector_store %arg4[%c0_47, %c256_48], %108 {strides = array<i32>} : memref<8x768xf32, #tpu.memory_space<vmem>>, vector<8x256xf32>,
    %c0_49 = arith.constant 0 : index
    %c1_50 = arith.constant 1 : index
    %110 = vector.load %arg2[%c0_49, %c1_50] : memref<8x5xf32, #tpu.memory_space<vmem>>, vector<8x1xf32>
    %111 = vector.shape_cast %110 : vector<8x1xf32> to vector<8x1xf32>
    %112 = vector.broadcast %111 : vector<8x1xf32> to vector<8x256xf32>
    %c0_51 = arith.constant 0 : index
    %c192 = arith.constant 192 : index
    %113 = vector.load %arg4[%c0_51, %c192] : memref<8x768xf32, #tpu.memory_space<vmem>>, vector<8x256xf32>
    %c0_52 = arith.constant 0 : index
    %c20 = arith.constant 20 : index
    %114 = vector.load %arg1[%c0_52, %c20] : memref<8x100xf32, #tpu.memory_space<vmem>>, vector<8x1xf32>
    %115 = vector.broadcast %114 : vector<8x1xf32> to vector<8x256xf32>
    %116 = arith.mulf %115, %113 : vector<8x256xf32>
    %117 = arith.addf %112, %116 : vector<8x256xf32>
    %c6_i32_53 = arith.constant 6 : i32
    %118 = tpu.dynamic_rotate %113 by %c6_i32_53 dim 0 : vector<8x256xf32>, i32 -> vector<8x256xf32>
    %c0_54 = arith.constant 0 : index
    %c21 = arith.constant 21 : index
    %119 = vector.load %arg1[%c0_54, %c21] : memref<8x100xf32, #tpu.memory_space<vmem>>, vector<8x1xf32>
    %120 = vector.broadcast %119 : vector<8x1xf32> to vector<8x256xf32>
    %121 = arith.mulf %120, %118 : vector<8x256xf32>
    %122 = arith.addf %117, %121 : vector<8x256xf32>
    %c4_i32_55 = arith.constant 4 : i32
    %123 = tpu.dynamic_rotate %113 by %c4_i32_55 dim 0 : vector<8x256xf32>, i32 -> vector<8x256xf32>
    %c0_56 = arith.constant 0 : index
    %c22 = arith.constant 22 : index
    %124 = vector.load %arg1[%c0_56, %c22] : memref<8x100xf32, #tpu.memory_space<vmem>>, vector<8x1xf32>
    %125 = vector.broadcast %124 : vector<8x1xf32> to vector<8x256xf32>
    %126 = arith.mulf %125, %123 : vector<8x256xf32>
    %127 = arith.addf %122, %126 : vector<8x256xf32>
    %c2_i32_57 = arith.constant 2 : i32
    %128 = tpu.dynamic_rotate %113 by %c2_i32_57 dim 0 : vector<8x256xf32>, i32 -> vector<8x256xf32>
    %c0_58 = arith.constant 0 : index
    %c23 = arith.constant 23 : index
    %129 = vector.load %arg1[%c0_58, %c23] : memref<8x100xf32, #tpu.memory_space<vmem>>, vector<8x1xf32>
    %130 = vector.broadcast %129 : vector<8x1xf32> to vector<8x256xf32>
    %131 = arith.mulf %130, %128 : vector<8x256xf32>
    %132 = arith.addf %127, %131 : vector<8x256xf32>
    %c0_59 = arith.constant 0 : index
    %c224_60 = arith.constant 224 : index
    %133 = vector.load %arg4[%c0_59, %c224_60] : memref<8x768xf32, #tpu.memory_space<vmem>>, vector<8x256xf32>
    %c0_61 = arith.constant 0 : index
    %c24 = arith.constant 24 : index
    %134 = vector.load %arg1[%c0_61, %c24] : memref<8x100xf32, #tpu.memory_space<vmem>>, vector<8x1xf32>
    %135 = vector.broadcast %134 : vector<8x1xf32> to vector<8x256xf32>
    %136 = arith.mulf %135, %133 : vector<8x256xf32>
    %137 = arith.addf %132, %136 : vector<8x256xf32>
    %c6_i32_62 = arith.constant 6 : i32
    %138 = tpu.dynamic_rotate %133 by %c6_i32_62 dim 0 : vector<8x256xf32>, i32 -> vector<8x256xf32>
    %c0_63 = arith.constant 0 : index
    %c25 = arith.constant 25 : index
    %139 = vector.load %arg1[%c0_63, %c25] : memref<8x100xf32, #tpu.memory_space<vmem>>, vector<8x1xf32>
    %140 = vector.broadcast %139 : vector<8x1xf32> to vector<8x256xf32>
    %141 = arith.mulf %140, %138 : vector<8x256xf32>
    %142 = arith.addf %137, %141 : vector<8x256xf32>
    %c4_i32_64 = arith.constant 4 : i32
    %143 = tpu.dynamic_rotate %133 by %c4_i32_64 dim 0 : vector<8x256xf32>, i32 -> vector<8x256xf32>
    %c0_65 = arith.constant 0 : index
    %c26 = arith.constant 26 : index
    %144 = vector.load %arg1[%c0_65, %c26] : memref<8x100xf32, #tpu.memory_space<vmem>>, vector<8x1xf32>
    %145 = vector.broadcast %144 : vector<8x1xf32> to vector<8x256xf32>
    %146 = arith.mulf %145, %143 : vector<8x256xf32>
    %147 = arith.addf %142, %146 : vector<8x256xf32>
    %c2_i32_66 = arith.constant 2 : i32
    %148 = tpu.dynamic_rotate %133 by %c2_i32_66 dim 0 : vector<8x256xf32>, i32 -> vector<8x256xf32>
    %c0_67 = arith.constant 0 : index
    %c27 = arith.constant 27 : index
    %149 = vector.load %arg1[%c0_67, %c27] : memref<8x100xf32, #tpu.memory_space<vmem>>, vector<8x1xf32>
    %150 = vector.broadcast %149 : vector<8x1xf32> to vector<8x256xf32>
    %151 = arith.mulf %150, %148 : vector<8x256xf32>
    %152 = arith.addf %147, %151 : vector<8x256xf32>
    %c0_68 = arith.constant 0 : index
    %c256_69 = arith.constant 256 : index
    %153 = vector.load %arg4[%c0_68, %c256_69] : memref<8x768xf32, #tpu.memory_space<vmem>>, vector<8x256xf32>
    %c0_70 = arith.constant 0 : index
    %c28 = arith.constant 28 : index
    %154 = vector.load %arg1[%c0_70, %c28] : memref<8x100xf32, #tpu.memory_space<vmem>>, vector<8x1xf32>
    %155 = vector.broadcast %154 : vector<8x1xf32> to vector<8x256xf32>
    %156 = arith.mulf %155, %153 : vector<8x256xf32>
    %157 = arith.addf %152, %156 : vector<8x256xf32>
    %c6_i32_71 = arith.constant 6 : i32
    %158 = tpu.dynamic_rotate %153 by %c6_i32_71 dim 0 : vector<8x256xf32>, i32 -> vector<8x256xf32>
    %c0_72 = arith.constant 0 : index
    %c29 = arith.constant 29 : index
    %159 = vector.load %arg1[%c0_72, %c29] : memref<8x100xf32, #tpu.memory_space<vmem>>, vector<8x1xf32>
    %160 = vector.broadcast %159 : vector<8x1xf32> to vector<8x256xf32>
    %161 = arith.mulf %160, %158 : vector<8x256xf32>
    %162 = arith.addf %157, %161 : vector<8x256xf32>
    %c4_i32_73 = arith.constant 4 : i32
    %163 = tpu.dynamic_rotate %153 by %c4_i32_73 dim 0 : vector<8x256xf32>, i32 -> vector<8x256xf32>
    %c0_74 = arith.constant 0 : index
    %c30 = arith.constant 30 : index
    %164 = vector.load %arg1[%c0_74, %c30] : memref<8x100xf32, #tpu.memory_space<vmem>>, vector<8x1xf32>
    %165 = vector.broadcast %164 : vector<8x1xf32> to vector<8x256xf32>
    %166 = arith.mulf %165, %163 : vector<8x256xf32>
    %167 = arith.addf %162, %166 : vector<8x256xf32>
    %c2_i32_75 = arith.constant 2 : i32
    %168 = tpu.dynamic_rotate %153 by %c2_i32_75 dim 0 : vector<8x256xf32>, i32 -> vector<8x256xf32>
    %c0_76 = arith.constant 0 : index
    %c31 = arith.constant 31 : index
    %169 = vector.load %arg1[%c0_76, %c31] : memref<8x100xf32, #tpu.memory_space<vmem>>, vector<8x1xf32>
    %170 = vector.broadcast %169 : vector<8x1xf32> to vector<8x256xf32>
    %171 = arith.mulf %170, %168 : vector<8x256xf32>
    %172 = arith.addf %167, %171 : vector<8x256xf32>
    %c0_77 = arith.constant 0 : index
    %c288_78 = arith.constant 288 : index
    %173 = vector.load %arg4[%c0_77, %c288_78] : memref<8x768xf32, #tpu.memory_space<vmem>>, vector<8x256xf32>
    %c0_79 = arith.constant 0 : index
    %c32 = arith.constant 32 : index
    %174 = vector.load %arg1[%c0_79, %c32] : memref<8x100xf32, #tpu.memory_space<vmem>>, vector<8x1xf32>
    %175 = vector.broadcast %174 : vector<8x1xf32> to vector<8x256xf32>
    %176 = arith.mulf %175, %173 : vector<8x256xf32>
    %177 = arith.addf %172, %176 : vector<8x256xf32>
    %c6_i32_80 = arith.constant 6 : i32
    %178 = tpu.dynamic_rotate %173 by %c6_i32_80 dim 0 : vector<8x256xf32>, i32 -> vector<8x256xf32>
    %c0_81 = arith.constant 0 : index
    %c33 = arith.constant 33 : index
    %179 = vector.load %arg1[%c0_81, %c33] : memref<8x100xf32, #tpu.memory_space<vmem>>, vector<8x1xf32>
    %180 = vector.broadcast %179 : vector<8x1xf32> to vector<8x256xf32>
    %181 = arith.mulf %180, %178 : vector<8x256xf32>
    %182 = arith.addf %177, %181 : vector<8x256xf32>
    %c4_i32_82 = arith.constant 4 : i32
    %183 = tpu.dynamic_rotate %173 by %c4_i32_82 dim 0 : vector<8x256xf32>, i32 -> vector<8x256xf32>
    %c0_83 = arith.constant 0 : index
    %c34 = arith.constant 34 : index
    %184 = vector.load %arg1[%c0_83, %c34] : memref<8x100xf32, #tpu.memory_space<vmem>>, vector<8x1xf32>
    %185 = vector.broadcast %184 : vector<8x1xf32> to vector<8x256xf32>
    %186 = arith.mulf %185, %183 : vector<8x256xf32>
    %187 = arith.addf %182, %186 : vector<8x256xf32>
    %c2_i32_84 = arith.constant 2 : i32
    %188 = tpu.dynamic_rotate %173 by %c2_i32_84 dim 0 : vector<8x256xf32>, i32 -> vector<8x256xf32>
    %c0_85 = arith.constant 0 : index
    %c35 = arith.constant 35 : index
    %189 = vector.load %arg1[%c0_85, %c35] : memref<8x100xf32, #tpu.memory_space<vmem>>, vector<8x1xf32>
    %190 = vector.broadcast %189 : vector<8x1xf32> to vector<8x256xf32>
    %191 = arith.mulf %190, %188 : vector<8x256xf32>
    %192 = arith.addf %187, %191 : vector<8x256xf32>
    %c0_86 = arith.constant 0 : index
    %c320 = arith.constant 320 : index
    %193 = vector.load %arg4[%c0_86, %c320] : memref<8x768xf32, #tpu.memory_space<vmem>>, vector<8x256xf32>
    %c0_87 = arith.constant 0 : index
    %c36 = arith.constant 36 : index
    %194 = vector.load %arg1[%c0_87, %c36] : memref<8x100xf32, #tpu.memory_space<vmem>>, vector<8x1xf32>
    %195 = vector.broadcast %194 : vector<8x1xf32> to vector<8x256xf32>
    %196 = arith.mulf %195, %193 : vector<8x256xf32>
    %197 = arith.addf %192, %196 : vector<8x256xf32>
    %c6_i32_88 = arith.constant 6 : i32
    %198 = tpu.dynamic_rotate %193 by %c6_i32_88 dim 0 : vector<8x256xf32>, i32 -> vector<8x256xf32>
    %c0_89 = arith.constant 0 : index
    %c37 = arith.constant 37 : index
    %199 = vector.load %arg1[%c0_89, %c37] : memref<8x100xf32, #tpu.memory_space<vmem>>, vector<8x1xf32>
    %200 = vector.broadcast %199 : vector<8x1xf32> to vector<8x256xf32>
    %201 = arith.mulf %200, %198 : vector<8x256xf32>
    %202 = arith.addf %197, %201 : vector<8x256xf32>
    %c4_i32_90 = arith.constant 4 : i32
    %203 = tpu.dynamic_rotate %193 by %c4_i32_90 dim 0 : vector<8x256xf32>, i32 -> vector<8x256xf32>
    %c0_91 = arith.constant 0 : index
    %c38 = arith.constant 38 : index
    %204 = vector.load %arg1[%c0_91, %c38] : memref<8x100xf32, #tpu.memory_space<vmem>>, vector<8x1xf32>
    %205 = vector.broadcast %204 : vector<8x1xf32> to vector<8x256xf32>
    %206 = arith.mulf %205, %203 : vector<8x256xf32>
    %207 = arith.addf %202, %206 : vector<8x256xf32>
    %c2_i32_92 = arith.constant 2 : i32
    %208 = tpu.dynamic_rotate %193 by %c2_i32_92 dim 0 : vector<8x256xf32>, i32 -> vector<8x256xf32>
    %c0_93 = arith.constant 0 : index
    %c39 = arith.constant 39 : index
    %209 = vector.load %arg1[%c0_93, %c39] : memref<8x100xf32, #tpu.memory_space<vmem>>, vector<8x1xf32>
    %210 = vector.broadcast %209 : vector<8x1xf32> to vector<8x256xf32>
    %211 = arith.mulf %210, %208 : vector<8x256xf32>
    %212 = arith.addf %207, %211 : vector<8x256xf32>
    %c0_94 = arith.constant 0 : index
    %c256_95 = arith.constant 256 : index
    %213 = vector.load %arg4[%c0_94, %c256_95] : memref<8x768xf32, #tpu.memory_space<vmem>>, vector<8x256xf32>
    tpu.vector_store %arg4[%c0_94, %c256_95], %212 {strides = array<i32>} : memref<8x768xf32, #tpu.memory_space<vmem>>, vector<8x256xf32>,
    %c0_96 = arith.constant 0 : index
    %c2_97 = arith.constant 2 : index
    %214 = vector.load %arg2[%c0_96, %c2_97] : memref<8x5xf32, #tpu.memory_space<vmem>>, vector<8x1xf32>
    %215 = vector.shape_cast %214 : vector<8x1xf32> to vector<8x1xf32>
    %216 = vector.broadcast %215 : vector<8x1xf32> to vector<8x256xf32>
    %c0_98 = arith.constant 0 : index
    %c128 = arith.constant 128 : index
    %217 = vector.load %arg4[%c0_98, %c128] : memref<8x768xf32, #tpu.memory_space<vmem>>, vector<8x256xf32>
    %c0_99 = arith.constant 0 : index
    %c40 = arith.constant 40 : index
    %218 = vector.load %arg1[%c0_99, %c40] : memref<8x100xf32, #tpu.memory_space<vmem>>, vector<8x1xf32>
    %219 = vector.broadcast %218 : vector<8x1xf32> to vector<8x256xf32>
    %220 = arith.mulf %219, %217 : vector<8x256xf32>
    %221 = arith.addf %216, %220 : vector<8x256xf32>
    %c6_i32_100 = arith.constant 6 : i32
    %222 = tpu.dynamic_rotate %217 by %c6_i32_100 dim 0 : vector<8x256xf32>, i32 -> vector<8x256xf32>
    %c0_101 = arith.constant 0 : index
    %c41 = arith.constant 41 : index
    %223 = vector.load %arg1[%c0_101, %c41] : memref<8x100xf32, #tpu.memory_space<vmem>>, vector<8x1xf32>
    %224 = vector.broadcast %223 : vector<8x1xf32> to vector<8x256xf32>
    %225 = arith.mulf %224, %222 : vector<8x256xf32>
    %226 = arith.addf %221, %225 : vector<8x256xf32>
    %c4_i32_102 = arith.constant 4 : i32
    %227 = tpu.dynamic_rotate %217 by %c4_i32_102 dim 0 : vector<8x256xf32>, i32 -> vector<8x256xf32>
    %c0_103 = arith.constant 0 : index
    %c42 = arith.constant 42 : index
    %228 = vector.load %arg1[%c0_103, %c42] : memref<8x100xf32, #tpu.memory_space<vmem>>, vector<8x1xf32>
    %229 = vector.broadcast %228 : vector<8x1xf32> to vector<8x256xf32>
    %230 = arith.mulf %229, %227 : vector<8x256xf32>
    %231 = arith.addf %226, %230 : vector<8x256xf32>
    %c2_i32_104 = arith.constant 2 : i32
    %232 = tpu.dynamic_rotate %217 by %c2_i32_104 dim 0 : vector<8x256xf32>, i32 -> vector<8x256xf32>
    %c0_105 = arith.constant 0 : index
    %c43 = arith.constant 43 : index
    %233 = vector.load %arg1[%c0_105, %c43] : memref<8x100xf32, #tpu.memory_space<vmem>>, vector<8x1xf32>
    %234 = vector.broadcast %233 : vector<8x1xf32> to vector<8x256xf32>
    %235 = arith.mulf %234, %232 : vector<8x256xf32>
    %236 = arith.addf %231, %235 : vector<8x256xf32>
    %c0_106 = arith.constant 0 : index
    %c192_107 = arith.constant 192 : index
    %237 = vector.load %arg4[%c0_106, %c192_107] : memref<8x768xf32, #tpu.memory_space<vmem>>, vector<8x256xf32>
    %c0_108 = arith.constant 0 : index
    %c44 = arith.constant 44 : index
    %238 = vector.load %arg1[%c0_108, %c44] : memref<8x100xf32, #tpu.memory_space<vmem>>, vector<8x1xf32>
    %239 = vector.broadcast %238 : vector<8x1xf32> to vector<8x256xf32>
    %240 = arith.mulf %239, %237 : vector<8x256xf32>
    %241 = arith.addf %236, %240 : vector<8x256xf32>
    %c6_i32_109 = arith.constant 6 : i32
    %242 = tpu.dynamic_rotate %237 by %c6_i32_109 dim 0 : vector<8x256xf32>, i32 -> vector<8x256xf32>
    %c0_110 = arith.constant 0 : index
    %c45 = arith.constant 45 : index
    %243 = vector.load %arg1[%c0_110, %c45] : memref<8x100xf32, #tpu.memory_space<vmem>>, vector<8x1xf32>
    %244 = vector.broadcast %243 : vector<8x1xf32> to vector<8x256xf32>
    %245 = arith.mulf %244, %242 : vector<8x256xf32>
    %246 = arith.addf %241, %245 : vector<8x256xf32>
    %c4_i32_111 = arith.constant 4 : i32
    %247 = tpu.dynamic_rotate %237 by %c4_i32_111 dim 0 : vector<8x256xf32>, i32 -> vector<8x256xf32>
    %c0_112 = arith.constant 0 : index
    %c46 = arith.constant 46 : index
    %248 = vector.load %arg1[%c0_112, %c46] : memref<8x100xf32, #tpu.memory_space<vmem>>, vector<8x1xf32>
    %249 = vector.broadcast %248 : vector<8x1xf32> to vector<8x256xf32>
    %250 = arith.mulf %249, %247 : vector<8x256xf32>
    %251 = arith.addf %246, %250 : vector<8x256xf32>
    %c2_i32_113 = arith.constant 2 : i32
    %252 = tpu.dynamic_rotate %237 by %c2_i32_113 dim 0 : vector<8x256xf32>, i32 -> vector<8x256xf32>
    %c0_114 = arith.constant 0 : index
    %c47 = arith.constant 47 : index
    %253 = vector.load %arg1[%c0_114, %c47] : memref<8x100xf32, #tpu.memory_space<vmem>>, vector<8x1xf32>
    %254 = vector.broadcast %253 : vector<8x1xf32> to vector<8x256xf32>
    %255 = arith.mulf %254, %252 : vector<8x256xf32>
    %256 = arith.addf %251, %255 : vector<8x256xf32>
    %c0_115 = arith.constant 0 : index
    %c256_116 = arith.constant 256 : index
    %257 = vector.load %arg4[%c0_115, %c256_116] : memref<8x768xf32, #tpu.memory_space<vmem>>, vector<8x256xf32>
    %c0_117 = arith.constant 0 : index
    %c48 = arith.constant 48 : index
    %258 = vector.load %arg1[%c0_117, %c48] : memref<8x100xf32, #tpu.memory_space<vmem>>, vector<8x1xf32>
    %259 = vector.broadcast %258 : vector<8x1xf32> to vector<8x256xf32>
    %260 = arith.mulf %259, %257 : vector<8x256xf32>
    %261 = arith.addf %256, %260 : vector<8x256xf32>
    %c6_i32_118 = arith.constant 6 : i32
    %262 = tpu.dynamic_rotate %257 by %c6_i32_118 dim 0 : vector<8x256xf32>, i32 -> vector<8x256xf32>
    %c0_119 = arith.constant 0 : index
    %c49 = arith.constant 49 : index
    %263 = vector.load %arg1[%c0_119, %c49] : memref<8x100xf32, #tpu.memory_space<vmem>>, vector<8x1xf32>
    %264 = vector.broadcast %263 : vector<8x1xf32> to vector<8x256xf32>
    %265 = arith.mulf %264, %262 : vector<8x256xf32>
    %266 = arith.addf %261, %265 : vector<8x256xf32>
    %c4_i32_120 = arith.constant 4 : i32
    %267 = tpu.dynamic_rotate %257 by %c4_i32_120 dim 0 : vector<8x256xf32>, i32 -> vector<8x256xf32>
    %c0_121 = arith.constant 0 : index
    %c50 = arith.constant 50 : index
    %268 = vector.load %arg1[%c0_121, %c50] : memref<8x100xf32, #tpu.memory_space<vmem>>, vector<8x1xf32>
    %269 = vector.broadcast %268 : vector<8x1xf32> to vector<8x256xf32>
    %270 = arith.mulf %269, %267 : vector<8x256xf32>
    %271 = arith.addf %266, %270 : vector<8x256xf32>
    %c2_i32_122 = arith.constant 2 : i32
    %272 = tpu.dynamic_rotate %257 by %c2_i32_122 dim 0 : vector<8x256xf32>, i32 -> vector<8x256xf32>
    %c0_123 = arith.constant 0 : index
    %c51 = arith.constant 51 : index
    %273 = vector.load %arg1[%c0_123, %c51] : memref<8x100xf32, #tpu.memory_space<vmem>>, vector<8x1xf32>
    %274 = vector.broadcast %273 : vector<8x1xf32> to vector<8x256xf32>
    %275 = arith.mulf %274, %272 : vector<8x256xf32>
    %276 = arith.addf %271, %275 : vector<8x256xf32>
    %c0_124 = arith.constant 0 : index
    %c320_125 = arith.constant 320 : index
    %277 = vector.load %arg4[%c0_124, %c320_125] : memref<8x768xf32, #tpu.memory_space<vmem>>, vector<8x256xf32>
    %c0_126 = arith.constant 0 : index
    %c52 = arith.constant 52 : index
    %278 = vector.load %arg1[%c0_126, %c52] : memref<8x100xf32, #tpu.memory_space<vmem>>, vector<8x1xf32>
    %279 = vector.broadcast %278 : vector<8x1xf32> to vector<8x256xf32>
    %280 = arith.mulf %279, %277 : vector<8x256xf32>
    %281 = arith.addf %276, %280 : vector<8x256xf32>
    %c6_i32_127 = arith.constant 6 : i32
    %282 = tpu.dynamic_rotate %277 by %c6_i32_127 dim 0 : vector<8x256xf32>, i32 -> vector<8x256xf32>
    %c0_128 = arith.constant 0 : index
    %c53 = arith.constant 53 : index
    %283 = vector.load %arg1[%c0_128, %c53] : memref<8x100xf32, #tpu.memory_space<vmem>>, vector<8x1xf32>
    %284 = vector.broadcast %283 : vector<8x1xf32> to vector<8x256xf32>
    %285 = arith.mulf %284, %282 : vector<8x256xf32>
    %286 = arith.addf %281, %285 : vector<8x256xf32>
    %c4_i32_129 = arith.constant 4 : i32
    %287 = tpu.dynamic_rotate %277 by %c4_i32_129 dim 0 : vector<8x256xf32>, i32 -> vector<8x256xf32>
    %c0_130 = arith.constant 0 : index
    %c54 = arith.constant 54 : index
    %288 = vector.load %arg1[%c0_130, %c54] : memref<8x100xf32, #tpu.memory_space<vmem>>, vector<8x1xf32>
    %289 = vector.broadcast %288 : vector<8x1xf32> to vector<8x256xf32>
    %290 = arith.mulf %289, %287 : vector<8x256xf32>
    %291 = arith.addf %286, %290 : vector<8x256xf32>
    %c2_i32_131 = arith.constant 2 : i32
    %292 = tpu.dynamic_rotate %277 by %c2_i32_131 dim 0 : vector<8x256xf32>, i32 -> vector<8x256xf32>
    %c0_132 = arith.constant 0 : index
    %c55 = arith.constant 55 : index
    %293 = vector.load %arg1[%c0_132, %c55] : memref<8x100xf32, #tpu.memory_space<vmem>>, vector<8x1xf32>
    %294 = vector.broadcast %293 : vector<8x1xf32> to vector<8x256xf32>
    %295 = arith.mulf %294, %292 : vector<8x256xf32>
    %296 = arith.addf %291, %295 : vector<8x256xf32>
    %c0_133 = arith.constant 0 : index
    %c384 = arith.constant 384 : index
    %297 = vector.load %arg4[%c0_133, %c384] : memref<8x768xf32, #tpu.memory_space<vmem>>, vector<8x256xf32>
    %c0_134 = arith.constant 0 : index
    %c56 = arith.constant 56 : index
    %298 = vector.load %arg1[%c0_134, %c56] : memref<8x100xf32, #tpu.memory_space<vmem>>, vector<8x1xf32>
    %299 = vector.broadcast %298 : vector<8x1xf32> to vector<8x256xf32>
    %300 = arith.mulf %299, %297 : vector<8x256xf32>
    %301 = arith.addf %296, %300 : vector<8x256xf32>
    %c6_i32_135 = arith.constant 6 : i32
    %302 = tpu.dynamic_rotate %297 by %c6_i32_135 dim 0 : vector<8x256xf32>, i32 -> vector<8x256xf32>
    %c0_136 = arith.constant 0 : index
    %c57 = arith.constant 57 : index
    %303 = vector.load %arg1[%c0_136, %c57] : memref<8x100xf32, #tpu.memory_space<vmem>>, vector<8x1xf32>
    %304 = vector.broadcast %303 : vector<8x1xf32> to vector<8x256xf32>
    %305 = arith.mulf %304, %302 : vector<8x256xf32>
    %306 = arith.addf %301, %305 : vector<8x256xf32>
    %c4_i32_137 = arith.constant 4 : i32
    %307 = tpu.dynamic_rotate %297 by %c4_i32_137 dim 0 : vector<8x256xf32>, i32 -> vector<8x256xf32>
    %c0_138 = arith.constant 0 : index
    %c58 = arith.constant 58 : index
    %308 = vector.load %arg1[%c0_138, %c58] : memref<8x100xf32, #tpu.memory_space<vmem>>, vector<8x1xf32>
    %309 = vector.broadcast %308 : vector<8x1xf32> to vector<8x256xf32>
    %310 = arith.mulf %309, %307 : vector<8x256xf32>
    %311 = arith.addf %306, %310 : vector<8x256xf32>
    %c2_i32_139 = arith.constant 2 : i32
    %312 = tpu.dynamic_rotate %297 by %c2_i32_139 dim 0 : vector<8x256xf32>, i32 -> vector<8x256xf32>
    %c0_140 = arith.constant 0 : index
    %c59 = arith.constant 59 : index
    %313 = vector.load %arg1[%c0_140, %c59] : memref<8x100xf32, #tpu.memory_space<vmem>>, vector<8x1xf32>
    %314 = vector.broadcast %313 : vector<8x1xf32> to vector<8x256xf32>
    %315 = arith.mulf %314, %312 : vector<8x256xf32>
    %316 = arith.addf %311, %315 : vector<8x256xf32>
    %c0_141 = arith.constant 0 : index
    %c256_142 = arith.constant 256 : index
    %317 = vector.load %arg4[%c0_141, %c256_142] : memref<8x768xf32, #tpu.memory_space<vmem>>, vector<8x256xf32>
    tpu.vector_store %arg4[%c0_141, %c256_142], %316 {strides = array<i32>} : memref<8x768xf32, #tpu.memory_space<vmem>>, vector<8x256xf32>,
    %c0_143 = arith.constant 0 : index
    %c3_144 = arith.constant 3 : index
    %318 = vector.load %arg2[%c0_143, %c3_144] : memref<8x5xf32, #tpu.memory_space<vmem>>, vector<8x1xf32>
    %319 = vector.shape_cast %318 : vector<8x1xf32> to vector<8x1xf32>
    %320 = vector.broadcast %319 : vector<8x1xf32> to vector<8x256xf32>
    %c0_145 = arith.constant 0 : index
    %c96 = arith.constant 96 : index
    %321 = vector.load %arg4[%c0_145, %c96] : memref<8x768xf32, #tpu.memory_space<vmem>>, vector<8x256xf32>
    %c0_146 = arith.constant 0 : index
    %c60 = arith.constant 60 : index
    %322 = vector.load %arg1[%c0_146, %c60] : memref<8x100xf32, #tpu.memory_space<vmem>>, vector<8x1xf32>
    %323 = vector.broadcast %322 : vector<8x1xf32> to vector<8x256xf32>
    %324 = arith.mulf %323, %321 : vector<8x256xf32>
    %325 = arith.addf %320, %324 : vector<8x256xf32>
    %c6_i32_147 = arith.constant 6 : i32
    %326 = tpu.dynamic_rotate %321 by %c6_i32_147 dim 0 : vector<8x256xf32>, i32 -> vector<8x256xf32>
    %c0_148 = arith.constant 0 : index
    %c61 = arith.constant 61 : index
    %327 = vector.load %arg1[%c0_148, %c61] : memref<8x100xf32, #tpu.memory_space<vmem>>, vector<8x1xf32>
    %328 = vector.broadcast %327 : vector<8x1xf32> to vector<8x256xf32>
    %329 = arith.mulf %328, %326 : vector<8x256xf32>
    %330 = arith.addf %325, %329 : vector<8x256xf32>
    %c4_i32_149 = arith.constant 4 : i32
    %331 = tpu.dynamic_rotate %321 by %c4_i32_149 dim 0 : vector<8x256xf32>, i32 -> vector<8x256xf32>
    %c0_150 = arith.constant 0 : index
    %c62 = arith.constant 62 : index
    %332 = vector.load %arg1[%c0_150, %c62] : memref<8x100xf32, #tpu.memory_space<vmem>>, vector<8x1xf32>
    %333 = vector.broadcast %332 : vector<8x1xf32> to vector<8x256xf32>
    %334 = arith.mulf %333, %331 : vector<8x256xf32>
    %335 = arith.addf %330, %334 : vector<8x256xf32>
    %c2_i32_151 = arith.constant 2 : i32
    %336 = tpu.dynamic_rotate %321 by %c2_i32_151 dim 0 : vector<8x256xf32>, i32 -> vector<8x256xf32>
    %c0_152 = arith.constant 0 : index
    %c63 = arith.constant 63 : index
    %337 = vector.load %arg1[%c0_152, %c63] : memref<8x100xf32, #tpu.memory_space<vmem>>, vector<8x1xf32>
    %338 = vector.broadcast %337 : vector<8x1xf32> to vector<8x256xf32>
    %339 = arith.mulf %338, %336 : vector<8x256xf32>
    %340 = arith.addf %335, %339 : vector<8x256xf32>
    %c0_153 = arith.constant 0 : index
    %c176 = arith.constant 176 : index
    %341 = vector.load %arg4[%c0_153, %c176] : memref<8x768xf32, #tpu.memory_space<vmem>>, vector<8x256xf32>
    %c0_154 = arith.constant 0 : index
    %c64 = arith.constant 64 : index
    %342 = vector.load %arg1[%c0_154, %c64] : memref<8x100xf32, #tpu.memory_space<vmem>>, vector<8x1xf32>
    %343 = vector.broadcast %342 : vector<8x1xf32> to vector<8x256xf32>
    %344 = arith.mulf %343, %341 : vector<8x256xf32>
    %345 = arith.addf %340, %344 : vector<8x256xf32>
    %c6_i32_155 = arith.constant 6 : i32
    %346 = tpu.dynamic_rotate %341 by %c6_i32_155 dim 0 : vector<8x256xf32>, i32 -> vector<8x256xf32>
    %c0_156 = arith.constant 0 : index
    %c65 = arith.constant 65 : index
    %347 = vector.load %arg1[%c0_156, %c65] : memref<8x100xf32, #tpu.memory_space<vmem>>, vector<8x1xf32>
    %348 = vector.broadcast %347 : vector<8x1xf32> to vector<8x256xf32>
    %349 = arith.mulf %348, %346 : vector<8x256xf32>
    %350 = arith.addf %345, %349 : vector<8x256xf32>
    %c4_i32_157 = arith.constant 4 : i32
    %351 = tpu.dynamic_rotate %341 by %c4_i32_157 dim 0 : vector<8x256xf32>, i32 -> vector<8x256xf32>
    %c0_158 = arith.constant 0 : index
    %c66 = arith.constant 66 : index
    %352 = vector.load %arg1[%c0_158, %c66] : memref<8x100xf32, #tpu.memory_space<vmem>>, vector<8x1xf32>
    %353 = vector.broadcast %352 : vector<8x1xf32> to vector<8x256xf32>
    %354 = arith.mulf %353, %351 : vector<8x256xf32>
    %355 = arith.addf %350, %354 : vector<8x256xf32>
    %c2_i32_159 = arith.constant 2 : i32
    %356 = tpu.dynamic_rotate %341 by %c2_i32_159 dim 0 : vector<8x256xf32>, i32 -> vector<8x256xf32>
    %c0_160 = arith.constant 0 : index
    %c67 = arith.constant 67 : index
    %357 = vector.load %arg1[%c0_160, %c67] : memref<8x100xf32, #tpu.memory_space<vmem>>, vector<8x1xf32>
    %358 = vector.broadcast %357 : vector<8x1xf32> to vector<8x256xf32>
    %359 = arith.mulf %358, %356 : vector<8x256xf32>
    %360 = arith.addf %355, %359 : vector<8x256xf32>
    %c0_161 = arith.constant 0 : index
    %c256_162 = arith.constant 256 : index
    %361 = vector.load %arg4[%c0_161, %c256_162] : memref<8x768xf32, #tpu.memory_space<vmem>>, vector<8x256xf32>
    %c0_163 = arith.constant 0 : index
    %c68 = arith.constant 68 : index
    %362 = vector.load %arg1[%c0_163, %c68] : memref<8x100xf32, #tpu.memory_space<vmem>>, vector<8x1xf32>
    %363 = vector.broadcast %362 : vector<8x1xf32> to vector<8x256xf32>
    %364 = arith.mulf %363, %361 : vector<8x256xf32>
    %365 = arith.addf %360, %364 : vector<8x256xf32>
    %c6_i32_164 = arith.constant 6 : i32
    %366 = tpu.dynamic_rotate %361 by %c6_i32_164 dim 0 : vector<8x256xf32>, i32 -> vector<8x256xf32>
    %c0_165 = arith.constant 0 : index
    %c69 = arith.constant 69 : index
    %367 = vector.load %arg1[%c0_165, %c69] : memref<8x100xf32, #tpu.memory_space<vmem>>, vector<8x1xf32>
    %368 = vector.broadcast %367 : vector<8x1xf32> to vector<8x256xf32>
    %369 = arith.mulf %368, %366 : vector<8x256xf32>
    %370 = arith.addf %365, %369 : vector<8x256xf32>
    %c4_i32_166 = arith.constant 4 : i32
    %371 = tpu.dynamic_rotate %361 by %c4_i32_166 dim 0 : vector<8x256xf32>, i32 -> vector<8x256xf32>
    %c0_167 = arith.constant 0 : index
    %c70 = arith.constant 70 : index
    %372 = vector.load %arg1[%c0_167, %c70] : memref<8x100xf32, #tpu.memory_space<vmem>>, vector<8x1xf32>
    %373 = vector.broadcast %372 : vector<8x1xf32> to vector<8x256xf32>
    %374 = arith.mulf %373, %371 : vector<8x256xf32>
    %375 = arith.addf %370, %374 : vector<8x256xf32>
    %c2_i32_168 = arith.constant 2 : i32
    %376 = tpu.dynamic_rotate %361 by %c2_i32_168 dim 0 : vector<8x256xf32>, i32 -> vector<8x256xf32>
    %c0_169 = arith.constant 0 : index
    %c71 = arith.constant 71 : index
    %377 = vector.load %arg1[%c0_169, %c71] : memref<8x100xf32, #tpu.memory_space<vmem>>, vector<8x1xf32>
    %378 = vector.broadcast %377 : vector<8x1xf32> to vector<8x256xf32>
    %379 = arith.mulf %378, %376 : vector<8x256xf32>
    %380 = arith.addf %375, %379 : vector<8x256xf32>
    %c0_170 = arith.constant 0 : index
    %c336 = arith.constant 336 : index
    %381 = vector.load %arg4[%c0_170, %c336] : memref<8x768xf32, #tpu.memory_space<vmem>>, vector<8x256xf32>
    %c0_171 = arith.constant 0 : index
    %c72 = arith.constant 72 : index
    %382 = vector.load %arg1[%c0_171, %c72] : memref<8x100xf32, #tpu.memory_space<vmem>>, vector<8x1xf32>
    %383 = vector.broadcast %382 : vector<8x1xf32> to vector<8x256xf32>
    %384 = arith.mulf %383, %381 : vector<8x256xf32>
    %385 = arith.addf %380, %384 : vector<8x256xf32>
    %c6_i32_172 = arith.constant 6 : i32
    %386 = tpu.dynamic_rotate %381 by %c6_i32_172 dim 0 : vector<8x256xf32>, i32 -> vector<8x256xf32>
    %c0_173 = arith.constant 0 : index
    %c73 = arith.constant 73 : index
    %387 = vector.load %arg1[%c0_173, %c73] : memref<8x100xf32, #tpu.memory_space<vmem>>, vector<8x1xf32>
    %388 = vector.broadcast %387 : vector<8x1xf32> to vector<8x256xf32>
    %389 = arith.mulf %388, %386 : vector<8x256xf32>
    %390 = arith.addf %385, %389 : vector<8x256xf32>
    %c4_i32_174 = arith.constant 4 : i32
    %391 = tpu.dynamic_rotate %381 by %c4_i32_174 dim 0 : vector<8x256xf32>, i32 -> vector<8x256xf32>
    %c0_175 = arith.constant 0 : index
    %c74 = arith.constant 74 : index
    %392 = vector.load %arg1[%c0_175, %c74] : memref<8x100xf32, #tpu.memory_space<vmem>>, vector<8x1xf32>
    %393 = vector.broadcast %392 : vector<8x1xf32> to vector<8x256xf32>
    %394 = arith.mulf %393, %391 : vector<8x256xf32>
    %395 = arith.addf %390, %394 : vector<8x256xf32>
    %c2_i32_176 = arith.constant 2 : i32
    %396 = tpu.dynamic_rotate %381 by %c2_i32_176 dim 0 : vector<8x256xf32>, i32 -> vector<8x256xf32>
    %c0_177 = arith.constant 0 : index
    %c75 = arith.constant 75 : index
    %397 = vector.load %arg1[%c0_177, %c75] : memref<8x100xf32, #tpu.memory_space<vmem>>, vector<8x1xf32>
    %398 = vector.broadcast %397 : vector<8x1xf32> to vector<8x256xf32>
    %399 = arith.mulf %398, %396 : vector<8x256xf32>
    %400 = arith.addf %395, %399 : vector<8x256xf32>
    %c0_178 = arith.constant 0 : index
    %c416 = arith.constant 416 : index
    %401 = vector.load %arg4[%c0_178, %c416] : memref<8x768xf32, #tpu.memory_space<vmem>>, vector<8x256xf32>
    %c0_179 = arith.constant 0 : index
    %c76 = arith.constant 76 : index
    %402 = vector.load %arg1[%c0_179, %c76] : memref<8x100xf32, #tpu.memory_space<vmem>>, vector<8x1xf32>
    %403 = vector.broadcast %402 : vector<8x1xf32> to vector<8x256xf32>
    %404 = arith.mulf %403, %401 : vector<8x256xf32>
    %405 = arith.addf %400, %404 : vector<8x256xf32>
    %c6_i32_180 = arith.constant 6 : i32
    %406 = tpu.dynamic_rotate %401 by %c6_i32_180 dim 0 : vector<8x256xf32>, i32 -> vector<8x256xf32>
    %c0_181 = arith.constant 0 : index
    %c77 = arith.constant 77 : index
    %407 = vector.load %arg1[%c0_181, %c77] : memref<8x100xf32, #tpu.memory_space<vmem>>, vector<8x1xf32>
    %408 = vector.broadcast %407 : vector<8x1xf32> to vector<8x256xf32>
    %409 = arith.mulf %408, %406 : vector<8x256xf32>
    %410 = arith.addf %405, %409 : vector<8x256xf32>
    %c4_i32_182 = arith.constant 4 : i32
    %411 = tpu.dynamic_rotate %401 by %c4_i32_182 dim 0 : vector<8x256xf32>, i32 -> vector<8x256xf32>
    %c0_183 = arith.constant 0 : index
    %c78 = arith.constant 78 : index
    %412 = vector.load %arg1[%c0_183, %c78] : memref<8x100xf32, #tpu.memory_space<vmem>>, vector<8x1xf32>
    %413 = vector.broadcast %412 : vector<8x1xf32> to vector<8x256xf32>
    %414 = arith.mulf %413, %411 : vector<8x256xf32>
    %415 = arith.addf %410, %414 : vector<8x256xf32>
    %c2_i32_184 = arith.constant 2 : i32
    %416 = tpu.dynamic_rotate %401 by %c2_i32_184 dim 0 : vector<8x256xf32>, i32 -> vector<8x256xf32>
    %c0_185 = arith.constant 0 : index
    %c79 = arith.constant 79 : index
    %417 = vector.load %arg1[%c0_185, %c79] : memref<8x100xf32, #tpu.memory_space<vmem>>, vector<8x1xf32>
    %418 = vector.broadcast %417 : vector<8x1xf32> to vector<8x256xf32>
    %419 = arith.mulf %418, %416 : vector<8x256xf32>
    %420 = arith.addf %415, %419 : vector<8x256xf32>
    %c0_186 = arith.constant 0 : index
    %c256_187 = arith.constant 256 : index
    %421 = vector.load %arg4[%c0_186, %c256_187] : memref<8x768xf32, #tpu.memory_space<vmem>>, vector<8x256xf32>
    tpu.vector_store %arg4[%c0_186, %c256_187], %420 {strides = array<i32>} : memref<8x768xf32, #tpu.memory_space<vmem>>, vector<8x256xf32>,
    %c0_188 = arith.constant 0 : index
    %c4_189 = arith.constant 4 : index
    %422 = vector.load %arg2[%c0_188, %c4_189] : memref<8x5xf32, #tpu.memory_space<vmem>>, vector<8x1xf32>
    %423 = vector.shape_cast %422 : vector<8x1xf32> to vector<8x1xf32>
    %424 = vector.broadcast %423 : vector<8x1xf32> to vector<8x256xf32>
    %c0_190 = arith.constant 0 : index
    %c32_191 = arith.constant 32 : index
    %425 = vector.load %arg4[%c0_190, %c32_191] : memref<8x768xf32, #tpu.memory_space<vmem>>, vector<8x256xf32>
    %c0_192 = arith.constant 0 : index
    %c80 = arith.constant 80 : index
    %426 = vector.load %arg1[%c0_192, %c80] : memref<8x100xf32, #tpu.memory_space<vmem>>, vector<8x1xf32>
    %427 = vector.broadcast %426 : vector<8x1xf32> to vector<8x256xf32>
    %428 = arith.mulf %427, %425 : vector<8x256xf32>
    %429 = arith.addf %424, %428 : vector<8x256xf32>
    %c6_i32_193 = arith.constant 6 : i32
    %430 = tpu.dynamic_rotate %425 by %c6_i32_193 dim 0 : vector<8x256xf32>, i32 -> vector<8x256xf32>
    %c0_194 = arith.constant 0 : index
    %c81 = arith.constant 81 : index
    %431 = vector.load %arg1[%c0_194, %c81] : memref<8x100xf32, #tpu.memory_space<vmem>>, vector<8x1xf32>
    %432 = vector.broadcast %431 : vector<8x1xf32> to vector<8x256xf32>
    %433 = arith.mulf %432, %430 : vector<8x256xf32>
    %434 = arith.addf %429, %433 : vector<8x256xf32>
    %c4_i32_195 = arith.constant 4 : i32
    %435 = tpu.dynamic_rotate %425 by %c4_i32_195 dim 0 : vector<8x256xf32>, i32 -> vector<8x256xf32>
    %c0_196 = arith.constant 0 : index
    %c82 = arith.constant 82 : index
    %436 = vector.load %arg1[%c0_196, %c82] : memref<8x100xf32, #tpu.memory_space<vmem>>, vector<8x1xf32>
    %437 = vector.broadcast %436 : vector<8x1xf32> to vector<8x256xf32>
    %438 = arith.mulf %437, %435 : vector<8x256xf32>
    %439 = arith.addf %434, %438 : vector<8x256xf32>
    %c2_i32_197 = arith.constant 2 : i32
    %440 = tpu.dynamic_rotate %425 by %c2_i32_197 dim 0 : vector<8x256xf32>, i32 -> vector<8x256xf32>
    %c0_198 = arith.constant 0 : index
    %c83 = arith.constant 83 : index
    %441 = vector.load %arg1[%c0_198, %c83] : memref<8x100xf32, #tpu.memory_space<vmem>>, vector<8x1xf32>
    %442 = vector.broadcast %441 : vector<8x1xf32> to vector<8x256xf32>
    %443 = arith.mulf %442, %440 : vector<8x256xf32>
    %444 = arith.addf %439, %443 : vector<8x256xf32>
    %c0_199 = arith.constant 0 : index
    %c144 = arith.constant 144 : index
    %445 = vector.load %arg4[%c0_199, %c144] : memref<8x768xf32, #tpu.memory_space<vmem>>, vector<8x256xf32>
    %c0_200 = arith.constant 0 : index
    %c84 = arith.constant 84 : index
    %446 = vector.load %arg1[%c0_200, %c84] : memref<8x100xf32, #tpu.memory_space<vmem>>, vector<8x1xf32>
    %447 = vector.broadcast %446 : vector<8x1xf32> to vector<8x256xf32>
    %448 = arith.mulf %447, %445 : vector<8x256xf32>
    %449 = arith.addf %444, %448 : vector<8x256xf32>
    %c6_i32_201 = arith.constant 6 : i32
    %450 = tpu.dynamic_rotate %445 by %c6_i32_201 dim 0 : vector<8x256xf32>, i32 -> vector<8x256xf32>
    %c0_202 = arith.constant 0 : index
    %c85 = arith.constant 85 : index
    %451 = vector.load %arg1[%c0_202, %c85] : memref<8x100xf32, #tpu.memory_space<vmem>>, vector<8x1xf32>
    %452 = vector.broadcast %451 : vector<8x1xf32> to vector<8x256xf32>
    %453 = arith.mulf %452, %450 : vector<8x256xf32>
    %454 = arith.addf %449, %453 : vector<8x256xf32>
    %c4_i32_203 = arith.constant 4 : i32
    %455 = tpu.dynamic_rotate %445 by %c4_i32_203 dim 0 : vector<8x256xf32>, i32 -> vector<8x256xf32>
    %c0_204 = arith.constant 0 : index
    %c86 = arith.constant 86 : index
    %456 = vector.load %arg1[%c0_204, %c86] : memref<8x100xf32, #tpu.memory_space<vmem>>, vector<8x1xf32>
    %457 = vector.broadcast %456 : vector<8x1xf32> to vector<8x256xf32>
    %458 = arith.mulf %457, %455 : vector<8x256xf32>
    %459 = arith.addf %454, %458 : vector<8x256xf32>
    %c2_i32_205 = arith.constant 2 : i32
    %460 = tpu.dynamic_rotate %445 by %c2_i32_205 dim 0 : vector<8x256xf32>, i32 -> vector<8x256xf32>
    %c0_206 = arith.constant 0 : index
    %c87 = arith.constant 87 : index
    %461 = vector.load %arg1[%c0_206, %c87] : memref<8x100xf32, #tpu.memory_space<vmem>>, vector<8x1xf32>
    %462 = vector.broadcast %461 : vector<8x1xf32> to vector<8x256xf32>
    %463 = arith.mulf %462, %460 : vector<8x256xf32>
    %464 = arith.addf %459, %463 : vector<8x256xf32>
    %c0_207 = arith.constant 0 : index
    %c256_208 = arith.constant 256 : index
    %465 = vector.load %arg4[%c0_207, %c256_208] : memref<8x768xf32, #tpu.memory_space<vmem>>, vector<8x256xf32>
    %c0_209 = arith.constant 0 : index
    %c88 = arith.constant 88 : index
    %466 = vector.load %arg1[%c0_209, %c88] : memref<8x100xf32, #tpu.memory_space<vmem>>, vector<8x1xf32>
    %467 = vector.broadcast %466 : vector<8x1xf32> to vector<8x256xf32>
    %468 = arith.mulf %467, %465 : vector<8x256xf32>
    %469 = arith.addf %464, %468 : vector<8x256xf32>
    %c6_i32_210 = arith.constant 6 : i32
    %470 = tpu.dynamic_rotate %465 by %c6_i32_210 dim 0 : vector<8x256xf32>, i32 -> vector<8x256xf32>
    %c0_211 = arith.constant 0 : index
    %c89 = arith.constant 89 : index
    %471 = vector.load %arg1[%c0_211, %c89] : memref<8x100xf32, #tpu.memory_space<vmem>>, vector<8x1xf32>
    %472 = vector.broadcast %471 : vector<8x1xf32> to vector<8x256xf32>
    %473 = arith.mulf %472, %470 : vector<8x256xf32>
    %474 = arith.addf %469, %473 : vector<8x256xf32>
    %c4_i32_212 = arith.constant 4 : i32
    %475 = tpu.dynamic_rotate %465 by %c4_i32_212 dim 0 : vector<8x256xf32>, i32 -> vector<8x256xf32>
    %c0_213 = arith.constant 0 : index
    %c90 = arith.constant 90 : index
    %476 = vector.load %arg1[%c0_213, %c90] : memref<8x100xf32, #tpu.memory_space<vmem>>, vector<8x1xf32>
    %477 = vector.broadcast %476 : vector<8x1xf32> to vector<8x256xf32>
    %478 = arith.mulf %477, %475 : vector<8x256xf32>
    %479 = arith.addf %474, %478 : vector<8x256xf32>
    %c2_i32_214 = arith.constant 2 : i32
    %480 = tpu.dynamic_rotate %465 by %c2_i32_214 dim 0 : vector<8x256xf32>, i32 -> vector<8x256xf32>
    %c0_215 = arith.constant 0 : index
    %c91 = arith.constant 91 : index
    %481 = vector.load %arg1[%c0_215, %c91] : memref<8x100xf32, #tpu.memory_space<vmem>>, vector<8x1xf32>
    %482 = vector.broadcast %481 : vector<8x1xf32> to vector<8x256xf32>
    %483 = arith.mulf %482, %480 : vector<8x256xf32>
    %484 = arith.addf %479, %483 : vector<8x256xf32>
    %c0_216 = arith.constant 0 : index
    %c368 = arith.constant 368 : index
    %485 = vector.load %arg4[%c0_216, %c368] : memref<8x768xf32, #tpu.memory_space<vmem>>, vector<8x256xf32>
    %c0_217 = arith.constant 0 : index
    %c92 = arith.constant 92 : index
    %486 = vector.load %arg1[%c0_217, %c92] : memref<8x100xf32, #tpu.memory_space<vmem>>, vector<8x1xf32>
    %487 = vector.broadcast %486 : vector<8x1xf32> to vector<8x256xf32>
    %488 = arith.mulf %487, %485 : vector<8x256xf32>
    %489 = arith.addf %484, %488 : vector<8x256xf32>
    %c6_i32_218 = arith.constant 6 : i32
    %490 = tpu.dynamic_rotate %485 by %c6_i32_218 dim 0 : vector<8x256xf32>, i32 -> vector<8x256xf32>
    %c0_219 = arith.constant 0 : index
    %c93 = arith.constant 93 : index
    %491 = vector.load %arg1[%c0_219, %c93] : memref<8x100xf32, #tpu.memory_space<vmem>>, vector<8x1xf32>
    %492 = vector.broadcast %491 : vector<8x1xf32> to vector<8x256xf32>
    %493 = arith.mulf %492, %490 : vector<8x256xf32>
    %494 = arith.addf %489, %493 : vector<8x256xf32>
    %c4_i32_220 = arith.constant 4 : i32
    %495 = tpu.dynamic_rotate %485 by %c4_i32_220 dim 0 : vector<8x256xf32>, i32 -> vector<8x256xf32>
    %c0_221 = arith.constant 0 : index
    %c94 = arith.constant 94 : index
    %496 = vector.load %arg1[%c0_221, %c94] : memref<8x100xf32, #tpu.memory_space<vmem>>, vector<8x1xf32>
    %497 = vector.broadcast %496 : vector<8x1xf32> to vector<8x256xf32>
    %498 = arith.mulf %497, %495 : vector<8x256xf32>
    %499 = arith.addf %494, %498 : vector<8x256xf32>
    %c2_i32_222 = arith.constant 2 : i32
    %500 = tpu.dynamic_rotate %485 by %c2_i32_222 dim 0 : vector<8x256xf32>, i32 -> vector<8x256xf32>
    %c0_223 = arith.constant 0 : index
    %c95 = arith.constant 95 : index
    %501 = vector.load %arg1[%c0_223, %c95] : memref<8x100xf32, #tpu.memory_space<vmem>>, vector<8x1xf32>
    %502 = vector.broadcast %501 : vector<8x1xf32> to vector<8x256xf32>
    %503 = arith.mulf %502, %500 : vector<8x256xf32>
    %504 = arith.addf %499, %503 : vector<8x256xf32>
    %c0_224 = arith.constant 0 : index
    %c480 = arith.constant 480 : index
    %505 = vector.load %arg4[%c0_224, %c480] : memref<8x768xf32, #tpu.memory_space<vmem>>, vector<8x256xf32>
    %c0_225 = arith.constant 0 : index
    %c96_226 = arith.constant 96 : index
    %506 = vector.load %arg1[%c0_225, %c96_226] : memref<8x100xf32, #tpu.memory_space<vmem>>, vector<8x1xf32>
    %507 = vector.broadcast %506 : vector<8x1xf32> to vector<8x256xf32>
    %508 = arith.mulf %507, %505 : vector<8x256xf32>
    %509 = arith.addf %504, %508 : vector<8x256xf32>
    %c6_i32_227 = arith.constant 6 : i32
    %510 = tpu.dynamic_rotate %505 by %c6_i32_227 dim 0 : vector<8x256xf32>, i32 -> vector<8x256xf32>
    %c0_228 = arith.constant 0 : index
    %c97 = arith.constant 97 : index
    %511 = vector.load %arg1[%c0_228, %c97] : memref<8x100xf32, #tpu.memory_space<vmem>>, vector<8x1xf32>
    %512 = vector.broadcast %511 : vector<8x1xf32> to vector<8x256xf32>
    %513 = arith.mulf %512, %510 : vector<8x256xf32>
    %514 = arith.addf %509, %513 : vector<8x256xf32>
    %c4_i32_229 = arith.constant 4 : i32
    %515 = tpu.dynamic_rotate %505 by %c4_i32_229 dim 0 : vector<8x256xf32>, i32 -> vector<8x256xf32>
    %c0_230 = arith.constant 0 : index
    %c98 = arith.constant 98 : index
    %516 = vector.load %arg1[%c0_230, %c98] : memref<8x100xf32, #tpu.memory_space<vmem>>, vector<8x1xf32>
    %517 = vector.broadcast %516 : vector<8x1xf32> to vector<8x256xf32>
    %518 = arith.mulf %517, %515 : vector<8x256xf32>
    %519 = arith.addf %514, %518 : vector<8x256xf32>
    %c2_i32_231 = arith.constant 2 : i32
    %520 = tpu.dynamic_rotate %505 by %c2_i32_231 dim 0 : vector<8x256xf32>, i32 -> vector<8x256xf32>
    %c0_232 = arith.constant 0 : index
    %c99 = arith.constant 99 : index
    %521 = vector.load %arg1[%c0_232, %c99] : memref<8x100xf32, #tpu.memory_space<vmem>>, vector<8x1xf32>
    %522 = vector.broadcast %521 : vector<8x1xf32> to vector<8x256xf32>
    %523 = arith.mulf %522, %520 : vector<8x256xf32>
    %524 = arith.addf %519, %523 : vector<8x256xf32>
    %c0_233 = arith.constant 0 : index
    %c0_234 = arith.constant 0 : index
    %525 = vector.load %arg3[%c0_233, %c0_234] : memref<8x256xf32, #tpu.memory_space<vmem>>, vector<8x256xf32>
    tpu.vector_store %arg3[%c0_233, %c0_234], %524 {strides = array<i32>} : memref<8x256xf32, #tpu.memory_space<vmem>>, vector<8x256xf32>,
    return
  }
}

</mosaic_0001>

<bundles_post_ra>
// kernel: atrous_conv_forward.1
= control target key start
LH: loop header
LB: loop body
LE: loop exit
PB: predicated region body
PF: predicated region fallthrough
CT: control target
= control target key end

     0   :  { %v2507_v0 = vmov 1   ;;  %v2508_v1 = vmov 0.0   ;;  %s2509_s12 = smov 32   ;;  %v2510_v4 = vmov 4   ;;  %v2511_v5 = vmov 2   ;;  %s2522_s19 = smov 112   ;;  %s3626_s1 = inlined_call_operand.vmem [shape: f32[8,100], index: 1, kind: input, shape index: {}]   ;;  %s3627_s0 = inlined_call_operand.vmem [shape: f32[8,256], index: 0, kind: input, shape index: {}]   ;;  %s3628_s2 = inlined_call_operand.vmem [shape: f32[8,5], index: 2, kind: input, shape index: {}]   ;;  %s3629_s3 = inlined_call_operand.vmem [shape: f32[8,256], index: 3, kind: output, shape index: {}]  }
   0x1   :  { %2377 = vset.pattern.permute.xlu0 %v2507_v0  ;;  %46 = vrot.lane.b32.xlu1 %v2508_v1, %s2509_s12  ;;  %v2641_v2 = vld [vmem:[%s3626_s1] sm:$0xff]  ;;  %v2656_v6 = vld [vmem:[%s3627_s0 + $0x8] sm:$0xff]  ;;  %v2512_v7 = vmov 3   ;;  %v2513_v8 = vmov 6   ;;  %v2514_v9 = vmov 5   ;;  %v2516_v10 = vmov 8  }
   0x2   :  { %60 = vperm.xlu0 %2377, %v2641_v2   ;;  %v2647_v3 = vld [vmem:[%s3627_s0] sm:$0xff]  ;;  %2380 = vset.pattern.permute.xlu1 %v2510_v4  ;;  %s2515_s0 = smov 16   ;;  %v2517_v11 = vmov 7   ;;  %v2518_v12 = vmov 11   ;;  %v2519_v13 = vmov 9   ;;  %v2520_v14 = vmov 14  }
   0x3   :  { %v2521_v15 = vmov 10   ;;  %v2523_v16 = vmov 16   ;;  %v2524_v17 = vmov 12   ;;  %s2525_s20 = smov 96   ;;  %v2526_v18 = vmov 0   ;;  %v2701_v24 = vld [vmem:[%s3628_s2] sm:$0xff] }
   0x4   :  { %v2527_v19 = vmov 13   ;;  %v2528_v20 = vmov 15   ;;  %v2529_v21 = vmov 17   ;;  %v2530_v22 = vmov 18   ;;  %s2532_s23 = smov 80   ;;  %s2533_s24 = smov 64  }
   0x5   :  { %48 = vrot.lane.b32.xlu1 %v2647_v3, %s2509_s12  ;;  %v2531_v23 = vmov 19   ;;  %vm52_vm0 = vcmask 261120   ;;  %vm152_vm1 = vcmask 130048   ;;  %vm137_vm2 = vcmask 916480   ;;  %s2584_s29 = smov 48  }
   0x6   :  { %2378 = vset.pattern.permute.xlu0 %v2511_v5  ;;  %vm71_vm3 = vcmask 785408   ;;  %vm321_vm4 = vcmask 654336   ;;  %vm422_vm5 = vcmask 523264   ;;  %vm1374_vm6 = vcmask 392192  }
   0x7   :  { %82 = vperm.xlu0 %2378, %v2641_v2  }
   0x9   :  { %50 = vrot.lane.b32.xlu1 %v2656_v6, %s2509_s12 }
   0xb   :  { %2379 = vset.pattern.permute.xlu0 %v2512_v7 }
   0xc   :  { %103 = vperm.xlu0 %2379, %v2641_v2  }
   0xd   :  { %122 = vperm.xlu1 %2380, %v2641_v2  }
  0x10   :  { %2382 = vset.pattern.permute.xlu0 %v2513_v8 }
  0x11   :  { %2381 = vset.pattern.permute.xlu1 %v2514_v9  ;;  %181 = vperm.xlu0 %2382, %v2641_v2  }
  0x12   :  { %160 = vperm.xlu1 %2381, %v2641_v2  }
  0x15   :  { %150 = vrot.lane.b32.xlu0 %v2656_v6, %s2515_s0 }
  0x16   :  { %146 = vrot.lane.b32.xlu1 %v2508_v1, %s2515_s0  ;;  %2384 = vset.pattern.permute.xlu0 %v2516_v10 }
  0x17   :  { %2383 = vset.pattern.permute.xlu1 %v2517_v11 }
  0x19   :  { %221 = vperm.xlu0 %2384, %v2641_v2  }
  0x1a   :  { %148 = vrot.lane.b32.xlu1 %v2647_v3, %s2515_s0 }
  0x1d   :  { %2387 = vset.pattern.permute.xlu0 %v2518_v12 }
  0x1e   :  { %202 = vperm.xlu1 %2383, %v2641_v2   ;;  %284 = vperm.xlu0 %2387, %v2641_v2  }
  0x22   :  { %2385 = vset.pattern.permute.xlu1 %v2519_v13  ;;  %2390 = vset.pattern.permute.xlu0 %v2520_v14 }
  0x23   :  { %242 = vperm.xlu1 %2385, %v2641_v2   ;;  %367 = vperm.xlu0 %2390, %v2641_v2  }
  0x27   :  { %2386 = vset.pattern.permute.xlu1 %v2521_v15  ;;  %337 = vrot.lane.b32.xlu0 %v2508_v1, %s2522_s19 }
  0x28   :  { %263 = vperm.xlu1 %2386, %v2641_v2   ;;  %2392 = vset.pattern.permute.xlu0 %v2523_v16 }
  0x2b   :  { %407 = vperm.xlu0 %2392, %v2641_v2  }
  0x2c   :  { %2388 = vset.pattern.permute.xlu1 %v2524_v17 }
  0x2d   :  { %306 = vperm.xlu1 %2388, %v2641_v2  }
  0x2f   :  { %431 = vrot.lane.b32.xlu0 %v2647_v3, %s2525_s20 }
  0x30   :  { %2396 = vset.pattern.permute.xlu0 %v2526_v18 }
  0x31   :  { %2389 = vset.pattern.permute.xlu1 %v2527_v19  ;;  %v239_v19 = vrot.slane %v2647_v3, 2 }
  0x32   :  { %346 = vperm.xlu1 %2389, %v2641_v2  }
  0x33   :  { %435 = vrot.lane.b32.xlu0 %v2508_v1, %s2525_s20 }
  0x36   :  { %333 = vrot.lane.b32.xlu1 %v2647_v3, %s2522_s19 }
  0x37   :  { %2391 = vset.pattern.permute.xlu1 %v2528_v20  ;;  %34 = vperm.xlu0 %2396, %v2641_v2  }
  0x3a   :  { %335 = vrot.lane.b32.xlu1 %v2656_v6, %s2522_s19 }
  0x3e   :  { %388 = vperm.xlu1 %2391, %v2641_v2  }
  0x42   :  { %2393 = vset.pattern.permute.xlu1 %v2529_v21 }
  0x43   :  { %444 = vperm.xlu1 %2393, %v2641_v2  }
  0x47   :  { %2394 = vset.pattern.permute.xlu1 %v2530_v22 }
  0x48   :  { %465 = vperm.xlu1 %2394, %v2641_v2  }
  0x4c   :  { %433 = vrot.lane.b32.xlu1 %v2656_v6, %s2525_s20 }
  0x4d   :  { %2395 = vset.pattern.permute.xlu1 %v2531_v23  ;;  %v261_v23 = vrot.slane %v2656_v6, 4 }
  0x50   :  { %486 = vperm.xlu1 %2395, %v2641_v2  }
  0x54   :  { %2397 = vset.pattern.permute.xlu1 %v2526_v18  ;;  %v240_v18 = vrot.slane %v2656_v6, 2 }
  0x55   :  { %25 = vperm.xlu1 %2397, %v2701_v24  }
  0x73   :  { %v47_v25 = vpop.permute.xlu1 %46 }
  0x77   :  { %v49_v26 = vpop.permute.xlu1 %48 }
  0x78   :  { %v53_v28 = vsel %vm52_vm0, %v47_v25, %v49_v26  ;;  %v260_v25 = vrot.slane %v2647_v3, 4 }
  0x79   :  { %v57_v31 = vrot.slane %v53_v28, 2  ;;  %v79_v36 = vrot.slane %v53_v28, 4  ;;  %v100_v41 = vrot.slane %v53_v28, 6  ;;  %v282_v28 = vrot.slane %v2656_v6, 6 }
  0x7b   :  { %v51_v27 = vpop.permute.xlu1 %50 }
  0x7c   :  { %v54_v29 = vsel %vm52_vm0, %v49_v26, %v51_v27  ;;  %v281_v27 = vrot.slane %v2647_v3, 6 }
  0x7d   :  { %v58_v30 = vrot.slane %v54_v29, 2  ;;  %v80_v35 = vrot.slane %v54_v29, 4  ;;  %v101_v40 = vrot.slane %v54_v29, 6 }
  0x81   :  { %v61_v32 = vpop.permute.xlu0 %60 }
  0x82   :  { %v63_v33 = vmul.f32 %v61_v32, %v57_v31  ;;  %v64_v34 = vmul.f32 %v61_v32, %v58_v30 }
  0x84   :  { %67 = vrot.lane.b32.xlu1 %v63_v33, %s2525_s20  ;;  %69 = vrot.lane.b32.xlu0 %v64_v34, %s2525_s20 }
  0x86   :  { %v83_v37 = vpop.permute.xlu0 %82 }
  0x87   :  { %v85_v38 = vmul.f32 %v83_v37, %v79_v36  ;;  %v86_v39 = vmul.f32 %v83_v37, %v80_v35 }
  0x89   :  { %89 = vrot.lane.b32.xlu1 %v85_v38, %s2525_s20  ;;  %91 = vrot.lane.b32.xlu0 %v86_v39, %s2525_s20 }
  0x8b   :  { %v104_v42 = vpop.permute.xlu0 %103 }
  0x8c   :  { %v106_v43 = vmul.f32 %v104_v42, %v100_v41  ;;  %v107_v44 = vmul.f32 %v104_v42, %v101_v40  ;;  %v123_v45 = vpop.permute.xlu1 %122 }
  0x8d   :  { %v125_v46 = vmul.f32 0.0, %v123_v45  ;;  %v126_v47 = vmul.f32 %v123_v45, %v2647_v3  ;;  %v127_v50 = vmul.f32 %v123_v45, %v2656_v6 }
  0x8e   :  { %110 = vrot.lane.b32.xlu1 %v106_v43, %s2525_s20  ;;  %112 = vrot.lane.b32.xlu0 %v107_v44, %s2525_s20 }
  0x90   :  { %v182_v49 = vpop.permute.xlu0 %181 }
  0x91   :  { %v161_v48 = vpop.permute.xlu1 %160 }
  0x92   :  { %131 = vrot.lane.b32.xlu1 %v125_v46, %s2522_s19  ;;  %133 = vrot.lane.b32.xlu0 %v126_v47, %s2522_s19 }
  0x94   :  { %v151_v52 = vpop.permute.xlu0 %150 }
  0x95   :  { %v147_v51 = vpop.permute.xlu1 %146 }
  0x96   :  { %135 = vrot.lane.b32.xlu1 %v127_v50, %s2522_s19 }
  0x98   :  { %v222_v12 = vpop.permute.xlu0 %221 }
  0x99   :  { %v149_v53 = vpop.permute.xlu1 %148  ;;  %v224_v16 = vmul.f32 %v222_v12, %v2647_v3  ;;  %v225_v17 = vmul.f32 %v222_v12, %v2656_v6 }
  0x9a   :  { %v153_v54 = vsel %vm152_vm1, %v147_v51, %v149_v53  ;;  %v154_v55 = vsel %vm152_vm1, %v149_v53, %v151_v52 }
  0x9b   :  { %v157_v56 = vrot.slane %v153_v54, 2  ;;  %v158_v57 = vrot.slane %v154_v55, 2  ;;  %v178_v58 = vrot.slane %v153_v54, 4  ;;  %v179_v59 = vrot.slane %v154_v55, 4 }
  0x9c   :  { %v199_v63 = vrot.slane %v153_v54, 6  ;;  %v200_v8 = vrot.slane %v154_v55, 6 }
  0x9d   :  { %v203_v60 = vpop.permute.xlu1 %202  ;;  %v164_v61 = vmul.f32 %v161_v48, %v158_v57  ;;  %v163_v62 = vmul.f32 %v161_v48, %v157_v56  ;;  %v185_v9 = vmul.f32 %v182_v49, %v179_v59  ;;  %v184_v10 = vmul.f32 %v182_v49, %v178_v58  ;;  %v285_v26 = vpop.permute.xlu0 %284 }
  0x9e   :  { %v205_v13 = vmul.f32 %v203_v60, %v199_v63  ;;  %v206_v14 = vmul.f32 %v203_v60, %v200_v8  ;;  %v287_v32 = vmul.f32 %v285_v26, %v281_v27  ;;  %v288_v33 = vmul.f32 %v285_v26, %v282_v28 }
  0x9f   :  { %169 = vrot.lane.b32.xlu1 %v164_v61, %s2525_s20  ;;  %167 = vrot.lane.b32.xlu0 %v163_v62, %s2525_s20 }
  0xa2   :  { %v243_v11 = vpop.permute.xlu1 %242  ;;  %v368_v34 = vpop.permute.xlu0 %367 }
  0xa3   :  { %190 = vrot.lane.b32.xlu1 %v185_v9, %s2525_s20  ;;  %188 = vrot.lane.b32.xlu0 %v184_v10, %s2525_s20  ;;  %v245_v21 = vmul.f32 %v243_v11, %v239_v19  ;;  %v246_v22 = vmul.f32 %v243_v11, %v240_v18 }
  0xa6   :  { %v338_v36 = vpop.permute.xlu0 %337 }
  0xa7   :  { %211 = vrot.lane.b32.xlu1 %v206_v14, %s2525_s20  ;;  %209 = vrot.lane.b32.xlu0 %v205_v13, %s2525_s20  ;;  %v264_v15 = vpop.permute.xlu1 %263 }
  0xa8   :  { %v266_v29 = vmul.f32 %v264_v15, %v260_v25  ;;  %v267_v30 = vmul.f32 %v264_v15, %v261_v23  ;;  %v2535_v23 = vmov 22  }
  0xa9   :  { %2399 = vset.pattern.permute.xlu0 %v2535_v23 }
  0xaa   :  { %v408_v47 = vpop.permute.xlu0 %407 }
  0xab   :  { %230 = vrot.lane.b32.xlu1 %v225_v17, %s2525_s20  ;;  %228 = vrot.lane.b32.xlu0 %v224_v16, %s2525_s20  ;;  %v410_v61 = vmul.f32 %v408_v47, %v2647_v3  ;;  %v412_v11 = vmul.f32 0.0, %v408_v47  ;;  %v411_v12 = vmul.f32 %v408_v47, %v2656_v6  ;;  %v2534_v17 = vmov 21  }
  0xac   :  { %v307_v20 = vpop.permute.xlu1 %306  ;;  %2398 = vset.pattern.permute.xlu1 %v2534_v17 }
  0xad   :  { %v310_v38 = vmul.f32 %v307_v20, %v2656_v6  ;;  %v309_v39 = vmul.f32 %v307_v20, %v2647_v3  ;;  %v311_v46 = vmul.f32 0.0, %v307_v20 }
  0xae   :  { %v432_v54 = vpop.permute.xlu0 %431 }
  0xaf   :  { %251 = vrot.lane.b32.xlu1 %v246_v22, %s2525_s20  ;;  %249 = vrot.lane.b32.xlu0 %v245_v21, %s2525_s20 }
  0xb1   :  { %v347_v31 = vpop.permute.xlu1 %346 }
  0xb2   :  { %v436_v60 = vpop.permute.xlu0 %435 }
  0xb3   :  { %272 = vrot.lane.b32.xlu1 %v267_v30, %s2525_s20  ;;  %270 = vrot.lane.b32.xlu0 %v266_v29, %s2525_s20 }
  0xb5   :  { %v334_v35 = vpop.permute.xlu1 %333 }
  0xb6   :  { %v35_v28 = vpop.permute.xlu0 %34 }
  0xb7   :  { %293 = vrot.lane.b32.xlu1 %v288_v33, %s2525_s20  ;;  %291 = vrot.lane.b32.xlu0 %v287_v32, %s2525_s20 }
  0xb9   :  { %v336_v37 = vpop.permute.xlu1 %335 }
  0xba   :  { %v339_v40 = vsel %vm137_vm2, %v334_v35, %v336_v37  ;;  %v340_v41 = vsel %vm137_vm2, %v336_v37, %v338_v36 }
  0xbb   :  { %v343_v42 = vrot.slane %v339_v40, 2  ;;  %317 = vrot.lane.b32.xlu1 %v310_v38, %s2532_s23  ;;  %315 = vrot.lane.b32.xlu0 %v309_v39, %s2532_s23  ;;  %v344_v43 = vrot.slane %v340_v41, 2  ;;  %v364_v44 = vrot.slane %v339_v40, 4  ;;  %v365_v49 = vrot.slane %v340_v41, 4 }
  0xbc   :  { %v385_v50 = vrot.slane %v339_v40, 6  ;;  %v386_v55 = vrot.slane %v340_v41, 6 }
  0xbd   :  { %v349_v45 = vmul.f32 %v347_v31, %v343_v42  ;;  %v389_v48 = vpop.permute.xlu1 %388  ;;  %v370_v51 = vmul.f32 %v368_v34, %v364_v44  ;;  %v350_v52 = vmul.f32 %v347_v31, %v344_v43  ;;  %v371_v57 = vmul.f32 %v368_v34, %v365_v49 }
  0xbe   :  { %v391_v56 = vmul.f32 %v389_v48, %v385_v50  ;;  %v392_v59 = vmul.f32 %v389_v48, %v386_v55  ;;  %v37_v48 = vmul.f32 0.0, %v35_v28  ;;  %v39_v49 = vmul.f32 %v35_v28, %v2656_v6 }
  0xbf   :  { %353 = vrot.lane.b32.xlu1 %v349_v45, %s2525_s20  ;;  %319 = vrot.lane.b32.xlu0 %v311_v46, %s2532_s23  ;;  %v38_v50 = vmul.f32 %v35_v28, %v2647_v3 }
  0xc2   :  { %v445_v53 = vpop.permute.xlu1 %444 }
  0xc3   :  { %374 = vrot.lane.b32.xlu1 %v370_v51, %s2525_s20  ;;  %355 = vrot.lane.b32.xlu0 %v350_v52, %s2525_s20 }
  0xc7   :  { %395 = vrot.lane.b32.xlu1 %v391_v56, %s2525_s20  ;;  %v466_v58 = vpop.permute.xlu1 %465  ;;  %376 = vrot.lane.b32.xlu0 %v371_v57, %s2525_s20 }
  0xcb   :  { %v434_v62 = vpop.permute.xlu1 %433  ;;  %416 = vrot.lane.b32.xlu1 %v410_v61, %s2533_s24  ;;  %397 = vrot.lane.b32.xlu0 %v392_v59, %s2525_s20 }
  0xcc   :  { %v437_v63 = vsel %vm71_vm3, %v432_v54, %v434_v62  ;;  %v438_v8 = vsel %vm71_vm3, %v434_v62, %v436_v60 }
  0xcd   :  { %v441_v9 = vrot.slane %v437_v63, 2  ;;  %v442_v10 = vrot.slane %v438_v8, 2  ;;  %v462_v13 = vrot.slane %v437_v63, 4  ;;  %v463_v14 = vrot.slane %v438_v8, 4 }
  0xce   :  { %v483_v18 = vrot.slane %v437_v63, 6  ;;  %v484_v19 = vrot.slane %v438_v8, 6 }
  0xcf   :  { %420 = vrot.lane.b32.xlu1 %v412_v11, %s2533_s24  ;;  %418 = vrot.lane.b32.xlu0 %v411_v12, %s2533_s24  ;;  %v448_v15 = vmul.f32 %v445_v53, %v442_v10  ;;  %v447_v16 = vmul.f32 %v445_v53, %v441_v9  ;;  %v469_v20 = vmul.f32 %v466_v58, %v463_v14  ;;  %v487_v22 = vpop.permute.xlu1 %486 }
  0xd0   :  { %v468_v21 = vmul.f32 %v466_v58, %v462_v13  ;;  %v489_v25 = vmul.f32 %v487_v22, %v483_v18  ;;  %v490_v26 = vmul.f32 %v487_v22, %v484_v19 }
  0xd3   :  { %453 = vrot.lane.b32.xlu1 %v448_v15, %s2525_s20  ;;  %451 = vrot.lane.b32.xlu0 %v447_v16, %s2525_s20 }
  0xd4   :  { %v26_v27 = vpop.permute.xlu1 %25 }
  0xd5   :  { %v42_v53 = vadd.f32 %v39_v49, %v26_v27  ;;  %v40_v54 = vadd.f32 %v37_v48, %v26_v27  ;;  %v41_v55 = vadd.f32 %v38_v50, %v26_v27 }
  0xd7   :  { %474 = vrot.lane.b32.xlu1 %v469_v20, %s2525_s20  ;;  %472 = vrot.lane.b32.xlu0 %v468_v21, %s2525_s20 }
  0xdb   :  { %495 = vrot.lane.b32.xlu1 %v490_v26, %s2525_s20  ;;  %493 = vrot.lane.b32.xlu0 %v489_v25, %s2525_s20 }
  0xf6   :  { %v68_v29 = vpop.permute.xlu1 %67  ;;  %v70_v30 = vpop.permute.xlu0 %69 }
  0xf7   :  { %v72_v56 = vsel %vm71_vm3, %v68_v29, %v70_v30  ;;  %v78_v59 = vadd.f32 %v70_v30, %v42_v53  ;;  %v76_v60 = vadd.f32 %v68_v29, %v40_v54 }
  0xf8   :  { %v77_v62 = vadd.f32 %v72_v56, %v41_v55 }
  0xfb   :  { %v90_v31 = vpop.permute.xlu1 %89  ;;  %v92_v32 = vpop.permute.xlu0 %91 }
  0xfc   :  { %v93_v61 = vsel %vm71_vm3, %v90_v31, %v92_v32  ;;  %v99_v63 = vadd.f32 %v92_v32, %v78_v59  ;;  %v97_v8 = vadd.f32 %v90_v31, %v76_v60 }
  0xfd   :  { %v98_v9 = vadd.f32 %v93_v61, %v77_v62 }
 0x100   :  { %v111_v33 = vpop.permute.xlu1 %110  ;;  %v113_v34 = vpop.permute.xlu0 %112 }
 0x101   :  { %v114_v6 = vsel %vm71_vm3, %v111_v33, %v113_v34  ;;  %v120_v12 = vadd.f32 %v113_v34, %v99_v63  ;;  %v118_v13 = vadd.f32 %v111_v33, %v97_v8 }
 0x102   :  { %v119_v15 = vadd.f32 %v114_v6, %v98_v9 }
 0x104   :  { %v132_v35 = vpop.permute.xlu1 %131  ;;  %v134_v36 = vpop.permute.xlu0 %133 }
 0x105   :  { %v138_v3 = vsel %vm137_vm2, %v132_v35, %v134_v36 }
 0x106   :  { %v143_v16 = vadd.f32 %v138_v3, %v118_v13 }
 0x108   :  { %v136_v37 = vpop.permute.xlu1 %135 }
 0x109   :  { %v139_v14 = vsel %vm137_vm2, %v134_v36, %v136_v37  ;;  %v145_v17 = vadd.f32 %v136_v37, %v120_v12 }
 0x10a   :  { %v144_v19 = vadd.f32 %v139_v14, %v119_v15 }
 0x111   :  { %v168_v38 = vpop.permute.xlu0 %167  ;;  %v170_v39 = vpop.permute.xlu1 %169 }
 0x112   :  { %v171_v18 = vsel %vm71_vm3, %v168_v38, %v170_v39  ;;  %v175_v22 = vadd.f32 %v168_v38, %v143_v16  ;;  %v177_v23 = vadd.f32 %v170_v39, %v145_v17 }
 0x113   :  { %v176_v26 = vadd.f32 %v171_v18, %v144_v19 }
 0x115   :  { %v189_v40 = vpop.permute.xlu0 %188  ;;  %v191_v41 = vpop.permute.xlu1 %190 }
 0x116   :  { %v192_v25 = vsel %vm71_vm3, %v189_v40, %v191_v41  ;;  %v196_v27 = vadd.f32 %v189_v40, %v175_v22  ;;  %v198_v28 = vadd.f32 %v191_v41, %v177_v23 }
 0x117   :  { %v197_v30 = vadd.f32 %v192_v25, %v176_v26 }
 0x119   :  { %v210_v42 = vpop.permute.xlu0 %209  ;;  %v212_v43 = vpop.permute.xlu1 %211 }
 0x11a   :  { %v213_v29 = vsel %vm71_vm3, %v210_v42, %v212_v43  ;;  %v217_v33 = vadd.f32 %v210_v42, %v196_v27  ;;  %v219_v34 = vadd.f32 %v212_v43, %v198_v28 }
 0x11b   :  { %v218_v36 = vadd.f32 %v213_v29, %v197_v30 }
 0x11d   :  { %v231_v44 = vpop.permute.xlu1 %230  ;;  %v229_v45 = vpop.permute.xlu0 %228 }
 0x11e   :  { %v232_v35 = vsel %vm71_vm3, %v229_v45, %v231_v44  ;;  %v238_v37 = vadd.f32 %v231_v44, %v219_v34  ;;  %v236_v48 = vadd.f32 %v229_v45, %v217_v33 }
 0x11f   :  { %v237_v39 = vadd.f32 %v232_v35, %v218_v36 }
 0x121   :  { %v252_v46 = vpop.permute.xlu1 %251  ;;  %v250_v47 = vpop.permute.xlu0 %249 }
 0x122   :  { %v253_v38 = vsel %vm71_vm3, %v250_v47, %v252_v46  ;;  %v259_v53 = vadd.f32 %v252_v46, %v238_v37  ;;  %v257_v40 = vadd.f32 %v250_v47, %v236_v48 }
 0x123   :  { %v258_v54 = vadd.f32 %v253_v38, %v237_v39 }
 0x125   :  { %v273_v51 = vpop.permute.xlu1 %272  ;;  %v271_v52 = vpop.permute.xlu0 %270 }
 0x126   :  { %v274_v41 = vsel %vm71_vm3, %v271_v52, %v273_v51  ;;  %v280_v55 = vadd.f32 %v273_v51, %v259_v53  ;;  %v278_v56 = vadd.f32 %v271_v52, %v257_v40  ;;  %v2538_v53 = vmov 25  }
 0x127   :  { %v279_v43 = vadd.f32 %v274_v41, %v258_v54  ;;  %v2539_v40 = vmov 28   ;;  %v2540_v41 = vmov 26   ;;  %v2541_v54 = vmov 31  }
 0x129   :  { %v294_v57 = vpop.permute.xlu1 %293  ;;  %v292_v58 = vpop.permute.xlu0 %291 }
 0x12a   :  { %v295_v42 = vsel %vm71_vm3, %v292_v58, %v294_v57  ;;  %v301_v60 = vadd.f32 %v294_v57, %v280_v55  ;;  %v299_v61 = vadd.f32 %v292_v58, %v278_v56  ;;  %v2542_v55 = vmov 27  }
 0x12b   :  { %v300_v63 = vadd.f32 %v295_v42, %v279_v43  ;;  %v2543_v56 = vmov 34   ;;  %v2544_v42 = vmov 29   ;;  %v2545_v43 = vmov 37  }
 0x12d   :  { %v318_v10 = vpop.permute.xlu1 %317  ;;  %v316_v11 = vpop.permute.xlu0 %315 }
 0x12e   :  { %v322_v62 = vsel %vm321_vm4, %v316_v11, %v318_v10  ;;  %v327_v46 = vadd.f32 %v316_v11, %v299_v61  ;;  %v2550_v61 = vmov 38  }
 0x12f   :  { %v328_v6 = vadd.f32 %v322_v62, %v300_v63 }
 0x131   :  { %v354_v20 = vpop.permute.xlu1 %353  ;;  %v320_v21 = vpop.permute.xlu0 %319 }
 0x132   :  { %v323_v59 = vsel %vm321_vm4, %v318_v10, %v320_v21  ;;  %v361_v52 = vadd.f32 %v354_v20, %v327_v46 }
 0x133   :  { %v329_v47 = vadd.f32 %v323_v59, %v301_v60  ;;  %v2546_v59 = vmov 30   ;;  %v2549_v60 = vmov 35  }
 0x135   :  { %v375_v31 = vpop.permute.xlu1 %374  ;;  %v356_v32 = vpop.permute.xlu0 %355 }
 0x136   :  { %v357_v8 = vsel %vm71_vm3, %v354_v20, %v356_v32  ;;  %v382_v13 = vadd.f32 %v375_v31, %v361_v52  ;;  %v363_v14 = vadd.f32 %v356_v32, %v329_v47 }
 0x137   :  { %v362_v12 = vadd.f32 %v357_v8, %v328_v6  ;;  %v2551_v6 = vmov 20  }
 0x139   :  { %v396_v49 = vpop.permute.xlu1 %395  ;;  %v377_v50 = vpop.permute.xlu0 %376 }
 0x13a   :  { %v378_v3 = vsel %vm71_vm3, %v375_v31, %v377_v50  ;;  %v403_v16 = vadd.f32 %v396_v49, %v382_v13  ;;  %v384_v11 = vadd.f32 %v377_v50, %v363_v14  ;;  %v2537_v50 = vmov 24  }
 0x13b   :  { %v383_v58 = vadd.f32 %v378_v3, %v362_v12 }
 0x13d   :  { %v417_v44 = vpop.permute.xlu1 %416  ;;  %v398_v45 = vpop.permute.xlu0 %397 }
 0x13e   :  { %v399_v57 = vsel %vm71_vm3, %v396_v49, %v398_v45  ;;  %v428_v21 = vadd.f32 %v417_v44, %v403_v16  ;;  %v405_v20 = vadd.f32 %v398_v45, %v384_v11  ;;  %v2536_v49 = vmov 23  }
 0x13f   :  { %v404_v18 = vadd.f32 %v399_v57, %v383_v58  ;;  %v2548_v45 = vmov 33   ;;  %v2553_v57 = vmov 36  }
 0x141   :  { %v421_v9 = vpop.permute.xlu1 %420  ;;  %v419_v51 = vpop.permute.xlu0 %418 }
 0x142   :  { %v423_v17 = vsel %vm422_vm5, %v417_v44, %v419_v51  ;;  %v424_v19 = vsel %vm422_vm5, %v419_v51, %v421_v9  ;;  %v2547_v44 = vmov 32   ;;  %v2552_v9 = vmov 39  }
 0x143   :  { %v429_v23 = vadd.f32 %v423_v17, %v404_v18  ;;  %v430_v27 = vadd.f32 %v424_v19, %v405_v20 }
 0x145   :  { %v454_v15 = vpop.permute.xlu1 %453  ;;  %v452_v10 = vpop.permute.xlu0 %451 }
 0x146   :  { %v455_v22 = vsel %vm71_vm3, %v452_v10, %v454_v15  ;;  %v459_v28 = vadd.f32 %v452_v10, %v428_v21  ;;  %v461_v35 = vadd.f32 %v454_v15, %v430_v27 }
 0x147   :  { %v460_v30 = vadd.f32 %v455_v22, %v429_v23 }
 0x149   :  { %v475_v25 = vpop.permute.xlu1 %474  ;;  %v473_v26 = vpop.permute.xlu0 %472 }
 0x14a   :  { %v476_v29 = vsel %vm71_vm3, %v473_v26, %v475_v25  ;;  %v480_v31 = vadd.f32 %v473_v26, %v459_v28  ;;  %v482_v38 = vadd.f32 %v475_v25, %v461_v35 }
 0x14b   :  { %v481_v32 = vadd.f32 %v476_v29, %v460_v30 }
 0x14d   :  { %v496_v33 = vpop.permute.xlu1 %495  ;;  %v494_v34 = vpop.permute.xlu0 %493 }
 0x14e   :  { %v497_v36 = vsel %vm71_vm3, %v494_v34, %v496_v33  ;;  %v501_v37 = vadd.f32 %v494_v34, %v480_v31  ;;  %v503_v39 = vadd.f32 %v496_v33, %v482_v38  ;;  %v2554_v33 = vmov 44  }
 0x14f   :  { %v502_v48 = vadd.f32 %v497_v36, %v481_v32 }
 0x150   :  { %507 = vrot.lane.b32.xlu0 %v501_v37, %s2509_s12 }
 0x151   :  { %509 = vrot.lane.b32.xlu1 %v502_v48, %s2509_s12 }
 0x154   :  { %511 = vrot.lane.b32.xlu0 %v503_v39, %s2509_s12 }
 0x155   :  { %556 = vperm.xlu1 %2398, %v2641_v2  }
 0x158   :  { %577 = vperm.xlu0 %2399, %v2641_v2  }
 0x159   :  { %543 = vrot.lane.b32.xlu1 %v2508_v1, %s2533_s24 }
 0x15a   :  { %2400 = vset.pattern.permute.xlu1 %v2536_v49 }
 0x15c   :  { %2401 = vset.pattern.permute.xlu0 %v2537_v50 }
 0x15d   :  { %617 = vperm.xlu0 %2401, %v2641_v2   ;;  %598 = vperm.xlu1 %2400, %v2641_v2  }
 0x161   :  { %640 = vrot.lane.b32.xlu0 %v2508_v1, %s2509_s12  ;;  %2402 = vset.pattern.permute.xlu1 %v2538_v53 }
 0x162   :  { %653 = vperm.xlu1 %2402, %v2641_v2   ;;  %2405 = vset.pattern.permute.xlu0 %v2539_v40 }
 0x165   :  { %714 = vperm.xlu0 %2405, %v2641_v2  }
 0x166   :  { %2403 = vset.pattern.permute.xlu1 %v2540_v41 }
 0x167   :  { %674 = vperm.xlu1 %2403, %v2641_v2  }
 0x169   :  { %2408 = vset.pattern.permute.xlu0 %v2541_v54 }
 0x16a   :  { %777 = vperm.xlu0 %2408, %v2641_v2  }
 0x16b   :  { %2404 = vset.pattern.permute.xlu1 %v2542_v55 }
 0x16c   :  { %695 = vperm.xlu1 %2404, %v2641_v2  }
 0x16e   :  { %2411 = vset.pattern.permute.xlu0 %v2543_v56 }
 0x16f   :  { %859 = vperm.xlu0 %2411, %v2641_v2  }
 0x170   :  { %2406 = vset.pattern.permute.xlu1 %v2544_v42 }
 0x171   :  { %735 = vperm.xlu1 %2406, %v2641_v2  }
 0x173   :  { %829 = vrot.lane.b32.xlu0 %v2508_v1, %s2525_s20 }
 0x174   :  { %2413 = vset.pattern.permute.xlu0 %v2545_v43 }
 0x175   :  { %2407 = vset.pattern.permute.xlu1 %v2546_v59 }
 0x176   :  { %756 = vperm.xlu1 %2407, %v2641_v2  }
 0x17a   :  { %2409 = vset.pattern.permute.xlu1 %v2547_v44 }
 0x17b   :  { %799 = vperm.xlu1 %2409, %v2641_v2  }
 0x17f   :  { %2410 = vset.pattern.permute.xlu1 %v2548_v45 }
 0x180   :  { %838 = vperm.xlu1 %2410, %v2641_v2  }
 0x184   :  { %2412 = vset.pattern.permute.xlu1 %v2549_v60 }
 0x185   :  { %880 = vperm.xlu1 %2412, %v2641_v2  }
 0x189   :  { %2414 = vset.pattern.permute.xlu1 %v2550_v61 }
 0x1c2   :  { %v508_v62 = vpop.permute.xlu0 %507 }
 0x1c3   :  { %v510_v63 = vpop.permute.xlu1 %509 }
 0x1c4   :  { %v2816_v46 = vsel %vm52_vm0, %v508_v62, %v510_v63 }
 0x1c5   :  { %545 = vrot.lane.b32.xlu1 %v2816_v46, %s2533_s24  ;;  %v732_v20 = vrot.slane %v2816_v46, 2  ;;  %v753_v23 = vrot.slane %v2816_v46, 4  ;;  %v774_v28 = vrot.slane %v2816_v46, 6 }
 0x1c6   :  { %v512_v47 = vpop.permute.xlu0 %511 }
 0x1c7   :  { %v2821_v8 = vsel %vm52_vm0, %v510_v63, %v512_v47 }
 0x1c8   :  { %547 = vrot.lane.b32.xlu0 %v2821_v8, %s2533_s24  ;;  %v733_v32 = vrot.slane %v2821_v8, 2  ;;  %v754_v35 = vrot.slane %v2821_v8, 4  ;;  %v775_v37 = vrot.slane %v2821_v8, 6 }
 0x1c9   :  { %942 = vperm.xlu1 %2414, %v2641_v2  }
 0x1cc   :  { %921 = vperm.xlu0 %2413, %v2641_v2  }
 0x1cd   :  { %912 = vrot.lane.b32.xlu1 %v2508_v1, %s2533_s24 }
 0x1ce   :  { %2416 = vset.pattern.permute.xlu1 %v2551_v6 }
 0x1d0   :  { %644 = vrot.lane.b32.xlu0 %v2821_v8, %s2509_s12 }
 0x1d1   :  { %642 = vrot.lane.b32.xlu1 %v2816_v46, %s2509_s12  ;;  %2415 = vset.pattern.permute.xlu0 %v2552_v9 }
 0x1d4   :  { %v2833_v51 = vpop.permute.xlu1 %556  ;;  %963 = vperm.xlu0 %2415, %v2641_v2  }
 0x1d5   :  { %531 = vperm.xlu1 %2416, %v2641_v2  }
 0x1d7   :  { %v2837_v52 = vpop.permute.xlu0 %577 }
 0x1d8   :  { %v2839_v3 = vpop.permute.xlu1 %543 }
 0x1d9   :  { %2417 = vset.pattern.permute.xlu1 %v2507_v0 }
 0x1da   :  { %522 = vperm.xlu1 %2417, %v2701_v24  }
 0x1dc   :  { %v618_v12 = vpop.permute.xlu0 %617  ;;  %v2843_v13 = vpop.permute.xlu1 %598 }
 0x1dd   :  { %v620_v14 = vmul.f32 0.0, %v618_v12  ;;  %v622_v25 = vmul.f32 %v618_v12, %v2821_v8 }
 0x1de   :  { %2418 = vset.pattern.permute.xlu1 %v2553_v57 }
 0x1df   :  { %899 = vperm.xlu1 %2418, %v2641_v2   ;;  %626 = vrot.lane.b32.xlu0 %v620_v14, %s2525_s20  ;;  %v621_v2 = vmul.f32 %v618_v12, %v2816_v46 }
 0x1e0   :  { %v2855_v0 = vpop.permute.xlu0 %640 }
 0x1e1   :  { %v2847_v58 = vpop.permute.xlu1 %653 }
 0x1e3   :  { %825 = vrot.lane.b32.xlu1 %v2816_v46, %s2525_s20 }
 0x1e4   :  { %v715_v10 = vpop.permute.xlu0 %714  ;;  %2419 = vset.pattern.permute.xlu1 %v2554_v33 }
 0x1e5   :  { %v717_v11 = vmul.f32 %v715_v10, %v2816_v46  ;;  %v718_v29 = vmul.f32 %v715_v10, %v2821_v8 }
 0x1e6   :  { %v2851_v15 = vpop.permute.xlu1 %674 }
 0x1e7   :  { %827 = vrot.lane.b32.xlu1 %v2821_v8, %s2525_s20 }
 0x1e9   :  { %v778_v27 = vpop.permute.xlu0 %777 }
 0x1ea   :  { %v780_v30 = vmul.f32 %v778_v27, %v774_v28  ;;  %v781_v48 = vmul.f32 %v778_v27, %v775_v37 }
 0x1eb   :  { %908 = vrot.lane.b32.xlu1 %v2816_v46, %s2533_s24  ;;  %v2859_v24 = vpop.permute.xlu1 %695 }
 0x1ee   :  { %v2890_v39 = vpop.permute.xlu0 %859 }
 0x1ef   :  { %628 = vrot.lane.b32.xlu1 %v621_v2, %s2525_s20 }
 0x1f0   :  { %v736_v16 = vpop.permute.xlu1 %735 }
 0x1f1   :  { %v738_v22 = vmul.f32 %v736_v16, %v732_v20  ;;  %v739_v34 = vmul.f32 %v736_v16, %v733_v32 }
 0x1f2   :  { %v830_v50 = vpop.permute.xlu0 %829 }
 0x1f3   :  { %721 = vrot.lane.b32.xlu1 %v717_v11, %s2533_s24 }
 0x1f5   :  { %v757_v17 = vpop.permute.xlu1 %756 }
 0x1f6   :  { %v759_v26 = vmul.f32 %v757_v17, %v753_v23  ;;  %v760_v36 = vmul.f32 %v757_v17, %v754_v35 }
 0x1fa   :  { %v800_v18 = vpop.permute.xlu1 %799 }
 0x1fb   :  { %v802_v19 = vmul.f32 %v800_v18, %v2816_v46  ;;  %v804_v21 = vmul.f32 0.0, %v800_v18  ;;  %v803_v31 = vmul.f32 %v800_v18, %v2821_v8 }
 0x1fd   :  { %812 = vrot.lane.b32.xlu0 %v804_v21, %s2509_s12  ;;  %808 = vrot.lane.b32.xlu1 %v802_v19, %s2509_s12 }
 0x1ff   :  { %v2888_v38 = vpop.permute.xlu1 %838 }
 0x201   :  { %910 = vrot.lane.b32.xlu0 %v2821_v8, %s2533_s24  ;;  %742 = vrot.lane.b32.xlu1 %v738_v22, %s2533_s24 }
 0x204   :  { %v2892_v49 = vpop.permute.xlu1 %880 }
 0x205   :  { %630 = vrot.lane.b32.xlu0 %v622_v25, %s2525_s20  ;;  %763 = vrot.lane.b32.xlu1 %v759_v26, %s2533_s24 }
 0x209   :  { %723 = vrot.lane.b32.xlu0 %v718_v29, %s2533_s24  ;;  %784 = vrot.lane.b32.xlu1 %v780_v30, %s2533_s24 }
 0x20d   :  { %810 = vrot.lane.b32.xlu0 %v803_v31, %s2509_s12 }
 0x211   :  { %744 = vrot.lane.b32.xlu0 %v739_v34, %s2533_s24 }
 0x215   :  { %765 = vrot.lane.b32.xlu0 %v760_v36, %s2533_s24 }
 0x219   :  { %786 = vrot.lane.b32.xlu0 %v781_v48, %s2533_s24 }
 0x237   :  { %v546_v53 = vpop.permute.xlu1 %545 }
 0x238   :  { %v549_v40 = vsel %vm422_vm5, %v2839_v3, %v546_v53 }
 0x239   :  { %v553_v41 = vrot.slane %v549_v40, 2  ;;  %v574_v55 = vrot.slane %v549_v40, 4  ;;  %v595_v45 = vrot.slane %v549_v40, 6 }
 0x23a   :  { %v548_v54 = vpop.permute.xlu0 %547 }
 0x23b   :  { %v550_v56 = vsel %vm422_vm5, %v546_v53, %v548_v54  ;;  %v559_v42 = vmul.f32 %v2833_v51, %v553_v41  ;;  %v580_v60 = vmul.f32 %v2837_v52, %v574_v55  ;;  %v601_v63 = vmul.f32 %v2843_v13, %v595_v45 }
 0x23c   :  { %v554_v43 = vrot.slane %v550_v56, 2  ;;  %v575_v44 = vrot.slane %v550_v56, 4  ;;  %v596_v62 = vrot.slane %v550_v56, 6 }
 0x23d   :  { %563 = vrot.lane.b32.xlu0 %v559_v42, %s2533_s24 }
 0x23e   :  { %v560_v59 = vmul.f32 %v2833_v51, %v554_v43  ;;  %v581_v61 = vmul.f32 %v2837_v52, %v575_v44  ;;  %v602_v47 = vmul.f32 %v2843_v13, %v596_v62  ;;  %v2555_v62 = vmov 40  }
 0x23f   :  { %2421 = vset.pattern.permute.xlu0 %v2555_v62 }
 0x240   :  { %565 = vrot.lane.b32.xlu1 %v560_v59, %s2533_s24 }
 0x241   :  { %584 = vrot.lane.b32.xlu0 %v580_v60, %s2533_s24 }
 0x244   :  { %586 = vrot.lane.b32.xlu1 %v581_v61, %s2533_s24 }
 0x245   :  { %605 = vrot.lane.b32.xlu0 %v601_v63, %s2533_s24 }
 0x248   :  { %607 = vrot.lane.b32.xlu1 %v602_v47, %s2533_s24  ;;  %v2909_v6 = vpop.permute.xlu1 %942 }
 0x24b   :  { %v922_v9 = vpop.permute.xlu0 %921 }
 0x24c   :  { %v913_v51 = vpop.permute.xlu1 %912 }
 0x24f   :  { %v645_v3 = vpop.permute.xlu0 %644 }
 0x250   :  { %v643_v12 = vpop.permute.xlu1 %642 }
 0x251   :  { %v646_v52 = vsel %vm52_vm0, %v2855_v0, %v643_v12  ;;  %v647_v14 = vsel %vm52_vm0, %v643_v12, %v645_v3 }
 0x252   :  { %v650_v57 = vrot.slane %v646_v52, 2  ;;  %v651_v2 = vrot.slane %v647_v14, 2  ;;  %v671_v10 = vrot.slane %v646_v52, 4  ;;  %v672_v16 = vrot.slane %v647_v14, 4 }
 0x253   :  { %v692_v18 = vrot.slane %v646_v52, 6  ;;  %v693_v19 = vrot.slane %v647_v14, 6  ;;  %v964_v26 = vpop.permute.xlu0 %963 }
 0x254   :  { %v2914_v11 = vpop.permute.xlu1 %531  ;;  %v657_v13 = vmul.f32 %v2847_v58, %v651_v2  ;;  %v656_v17 = vmul.f32 %v2847_v58, %v650_v57  ;;  %v678_v0 = vmul.f32 %v2851_v15, %v672_v16  ;;  %v677_v21 = vmul.f32 %v2851_v15, %v671_v10 }
 0x255   :  { %v699_v22 = vmul.f32 %v2859_v24, %v693_v19  ;;  %v698_v58 = vmul.f32 %v2859_v24, %v692_v18 }
 0x256   :  { %662 = vrot.lane.b32.xlu0 %v657_v13, %s2533_s24  ;;  %660 = vrot.lane.b32.xlu1 %v656_v17, %s2533_s24 }
 0x257   :  { %v2934_v31 = vpop.permute.xlu0 %626 }
 0x259   :  { %v2922_v20 = vpop.permute.xlu1 %522 }
 0x25a   :  { %683 = vrot.lane.b32.xlu0 %v678_v0, %s2533_s24  ;;  %681 = vrot.lane.b32.xlu1 %v677_v21, %s2533_s24 }
 0x25e   :  { %704 = vrot.lane.b32.xlu0 %v699_v22, %s2533_s24  ;;  %702 = vrot.lane.b32.xlu1 %v698_v58, %s2533_s24  ;;  %v2930_v23 = vpop.permute.xlu1 %899  ;;  %v534_v58 = vmul.f32 0.0, %v2914_v11 }
 0x262   :  { %v826_v25 = vpop.permute.xlu1 %825 }
 0x266   :  { %v828_v27 = vpop.permute.xlu1 %827 }
 0x267   :  { %v831_v15 = vsel %vm71_vm3, %v826_v25, %v828_v27  ;;  %v832_v28 = vsel %vm71_vm3, %v828_v27, %v830_v50  ;;  %v535_v25 = vmul.f32 %v2914_v11, %v2816_v46  ;;  %v537_v27 = vadd.f32 %v534_v58, %v2922_v20 }
 0x268   :  { %v835_v29 = vrot.slane %v831_v15, 2  ;;  %v836_v30 = vrot.slane %v832_v28, 2  ;;  %v856_v32 = vrot.slane %v831_v15, 4  ;;  %v857_v33 = vrot.slane %v832_v28, 4 }
 0x269   :  { %v877_v35 = vrot.slane %v831_v15, 6  ;;  %v878_v36 = vrot.slane %v832_v28, 6  ;;  %v538_v28 = vadd.f32 %v535_v25, %v2922_v20 }
 0x26a   :  { %v842_v24 = vmul.f32 %v2888_v38, %v836_v30  ;;  %v841_v34 = vmul.f32 %v2888_v38, %v835_v29  ;;  %v863_v37 = vmul.f32 %v2890_v39, %v857_v33  ;;  %v862_v48 = vmul.f32 %v2890_v39, %v856_v32  ;;  %v909_v40 = vpop.permute.xlu1 %908 }
 0x26b   :  { %v884_v53 = vmul.f32 %v2892_v49, %v878_v36  ;;  %v883_v38 = vmul.f32 %v2892_v49, %v877_v35 }
 0x26c   :  { %847 = vrot.lane.b32.xlu1 %v842_v24, %s2533_s24  ;;  %845 = vrot.lane.b32.xlu0 %v841_v34, %s2533_s24 }
 0x26f   :  { %v2942_v50 = vpop.permute.xlu0 %812 }
 0x270   :  { %868 = vrot.lane.b32.xlu1 %v863_v37, %s2533_s24  ;;  %866 = vrot.lane.b32.xlu0 %v862_v48, %s2533_s24 }
 0x273   :  { %v911_v41 = vpop.permute.xlu0 %910 }
 0x274   :  { %v914_v54 = vsel %vm422_vm5, %v909_v40, %v911_v41  ;;  %v915_v55 = vsel %vm422_vm5, %v911_v41, %v913_v51  ;;  %889 = vrot.lane.b32.xlu1 %v884_v53, %s2533_s24  ;;  %887 = vrot.lane.b32.xlu0 %v883_v38, %s2533_s24  ;;  %v629_v51 = vpop.permute.xlu1 %628 }
 0x275   :  { %v918_v39 = vrot.slane %v914_v54, 2  ;;  %v919_v56 = vrot.slane %v915_v55, 2  ;;  %v939_v42 = vrot.slane %v914_v54, 4  ;;  %v940_v43 = vrot.slane %v915_v55, 4 }
 0x276   :  { %v960_v49 = vrot.slane %v914_v54, 6  ;;  %v961_v45 = vrot.slane %v915_v55, 6 }
 0x277   :  { %v925_v59 = vmul.f32 %v922_v9, %v919_v56  ;;  %v924_v44 = vmul.f32 %v922_v9, %v918_v39  ;;  %v946_v60 = vmul.f32 %v2909_v6, %v940_v43  ;;  %v945_v61 = vmul.f32 %v2909_v6, %v939_v42  ;;  %v2963_v9 = vld [vmem:[%s3626_s1] sm:$0xff]  ;;  %v631_v3 = vpop.permute.xlu0 %630 }
 0x278   :  { %v967_v63 = vmul.f32 %v964_v26, %v961_v45  ;;  %v966_v47 = vmul.f32 %v964_v26, %v960_v49  ;;  %v2556_v6 = vmov 52   ;;  %v722_v12 = vpop.permute.xlu1 %721  ;;  %v536_v26 = vmul.f32 %v2914_v11, %v2821_v8 }
 0x279   :  { %930 = vrot.lane.b32.xlu0 %v925_v59, %s2533_s24  ;;  %928 = vrot.lane.b32.xlu1 %v924_v44, %s2533_s24  ;;  %v633_v55 = vsel %vm71_vm3, %v629_v51, %v631_v3 }
 0x27a   :  { %v539_v29 = vadd.f32 %v536_v26, %v2922_v20  ;;  %v632_v20 = vsel %vm71_vm3, %v2934_v31, %v629_v51 }
 0x27b   :  { %v724_v52 = vpop.permute.xlu0 %723 }
 0x27c   :  { %v2966_v14 = vpop.permute.xlu1 %808 }
 0x27d   :  { %951 = vrot.lane.b32.xlu0 %v946_v60, %s2533_s24  ;;  %949 = vrot.lane.b32.xlu1 %v945_v61, %s2533_s24 }
 0x27f   :  { %v2968_v57 = vpop.permute.xlu0 %810 }
 0x280   :  { %v743_v2 = vpop.permute.xlu1 %742 }
 0x281   :  { %972 = vrot.lane.b32.xlu0 %v967_v63, %s2533_s24  ;;  %970 = vrot.lane.b32.xlu1 %v966_v47, %s2533_s24 }
 0x283   :  { %v745_v10 = vpop.permute.xlu0 %744 }
 0x284   :  { %v764_v16 = vpop.permute.xlu1 %763  ;;  %v746_v25 = vsel %vm422_vm5, %v743_v2, %v745_v10 }
 0x285   :  { %1048 = vperm.xlu1 %2419, %v2963_v9  }
 0x287   :  { %v2970_v13 = vpop.permute.xlu0 %765 }
 0x288   :  { %v785_v17 = vpop.permute.xlu1 %784 }
 0x289   :  { %2420 = vset.pattern.permute.xlu1 %v2556_v6 }
 0x28b   :  { %v2972_v18 = vpop.permute.xlu0 %786 }
 0x2af   :  { %v564_v0 = vpop.permute.xlu0 %563 }
 0x2b0   :  { %v571_v32 = vadd.f32 %v564_v0, %v537_v27 }
 0x2b2   :  { %v566_v19 = vpop.permute.xlu1 %565 }
 0x2b3   :  { %v585_v22 = vpop.permute.xlu0 %584  ;;  %v567_v15 = vsel %vm422_vm5, %v564_v0, %v566_v19  ;;  %v573_v34 = vadd.f32 %v566_v19, %v539_v29 }
 0x2b4   :  { %v572_v24 = vadd.f32 %v567_v15, %v538_v28  ;;  %v592_v36 = vadd.f32 %v585_v22, %v571_v32  ;;  %v767_v28 = vsel %vm422_vm5, %v764_v16, %v2970_v13 }
 0x2b6   :  { %v587_v21 = vpop.permute.xlu1 %586 }
 0x2b7   :  { %v588_v33 = vsel %vm422_vm5, %v585_v22, %v587_v21  ;;  %v606_v35 = vpop.permute.xlu0 %605  ;;  %v594_v11 = vadd.f32 %v587_v21, %v573_v34 }
 0x2b8   :  { %v593_v48 = vadd.f32 %v588_v33, %v572_v24  ;;  %v613_v53 = vadd.f32 %v606_v35, %v592_v36  ;;  %v788_v33 = vsel %vm422_vm5, %v785_v17, %v2972_v18 }
 0x2ba   :  { %v608_v30 = vpop.permute.xlu1 %607  ;;  %v637_v39 = vadd.f32 %v632_v20, %v613_v53 }
 0x2bb   :  { %v609_v37 = vsel %vm422_vm5, %v606_v35, %v608_v30  ;;  %v615_v40 = vadd.f32 %v608_v30, %v594_v11 }
 0x2bc   :  { %v614_v38 = vadd.f32 %v609_v37, %v593_v48 }
 0x2bd   :  { %v639_v42 = vadd.f32 %v631_v3, %v615_v40  ;;  %v725_v3 = vsel %vm422_vm5, %v722_v12, %v724_v52 }
 0x2be   :  { %v638_v43 = vadd.f32 %v633_v55, %v614_v38 }
 0x2c8   :  { %v663_v41 = vpop.permute.xlu0 %662  ;;  %v661_v54 = vpop.permute.xlu1 %660 }
 0x2c9   :  { %v664_v56 = vsel %vm422_vm5, %v661_v54, %v663_v41  ;;  %v668_v49 = vadd.f32 %v661_v54, %v637_v39  ;;  %v670_v60 = vadd.f32 %v663_v41, %v639_v42  ;;  %v902_v42 = vmul.f32 %v2930_v23, %v2816_v46 }
 0x2ca   :  { %v669_v61 = vadd.f32 %v664_v56, %v638_v43 }
 0x2cc   :  { %v684_v59 = vpop.permute.xlu0 %683  ;;  %v682_v44 = vpop.permute.xlu1 %681 }
 0x2cd   :  { %v685_v45 = vsel %vm422_vm5, %v682_v44, %v684_v59  ;;  %v689_v62 = vadd.f32 %v682_v44, %v668_v49  ;;  %v691_v63 = vadd.f32 %v684_v59, %v670_v60  ;;  %v903_v59 = vmul.f32 %v2930_v23, %v2821_v8 }
 0x2ce   :  { %v690_v47 = vadd.f32 %v685_v45, %v669_v61  ;;  %v904_v60 = vmul.f32 0.0, %v2930_v23 }
 0x2d0   :  { %v705_v6 = vpop.permute.xlu0 %704  ;;  %v703_v19 = vpop.permute.xlu1 %702 }
 0x2d1   :  { %v706_v31 = vsel %vm422_vm5, %v703_v19, %v705_v6  ;;  %v710_v51 = vadd.f32 %v703_v19, %v689_v62  ;;  %v712_v0 = vadd.f32 %v705_v6, %v691_v63 }
 0x2d2   :  { %v711_v21 = vadd.f32 %v706_v31, %v690_v47 }
 0x2d3   :  { %v729_v22 = vadd.f32 %v722_v12, %v710_v51  ;;  %v731_v26 = vadd.f32 %v724_v52, %v712_v0  ;;  %v814_v52 = vsel %vm52_vm0, %v2966_v14, %v2968_v57 }
 0x2d4   :  { %v730_v58 = vadd.f32 %v725_v3, %v711_v21 }
 0x2d5   :  { %v750_v27 = vadd.f32 %v743_v2, %v729_v22  ;;  %v752_v29 = vadd.f32 %v745_v10, %v731_v26  ;;  %v3024_v26 = vld [vmem:[%s3628_s2] sm:$0xff] }
 0x2d6   :  { %v751_v15 = vadd.f32 %v746_v25, %v730_v58 }
 0x2d7   :  { %v771_v30 = vadd.f32 %v764_v16, %v750_v27  ;;  %v773_v35 = vadd.f32 %v2970_v13, %v752_v29  ;;  %v815_v13 = vsel %vm52_vm0, %v2968_v57, %v2942_v50  ;;  %v2557_v27 = vmov 42  }
 0x2d8   :  { %v772_v32 = vadd.f32 %v767_v28, %v751_v15  ;;  %v2558_v15 = vmov 41   ;;  %v2559_v28 = vmov 46   ;;  %v2560_v29 = vmov 43  }
 0x2d9   :  { %v792_v34 = vadd.f32 %v785_v17, %v771_v30  ;;  %v794_v37 = vadd.f32 %v2972_v18, %v773_v35  ;;  %v2561_v30 = vmov 47   ;;  %v2565_v35 = vmov 54  }
 0x2da   :  { %v793_v36 = vadd.f32 %v788_v33, %v772_v32  ;;  %v2563_v33 = vmov 48  }
 0x2db   :  { %v819_v2 = vadd.f32 %v2966_v14, %v792_v34  ;;  %v821_v40 = vadd.f32 %v815_v13, %v794_v37  ;;  %v2564_v34 = vmov 49   ;;  %v2570_v37 = vmov 57  }
 0x2dc   :  { %v820_v11 = vadd.f32 %v814_v52, %v793_v36  ;;  %v2567_v36 = vmov 50   ;;  %v2568_v52 = vmov 51  }
 0x2de   :  { %v846_v24 = vpop.permute.xlu0 %845  ;;  %v848_v12 = vpop.permute.xlu1 %847 }
 0x2df   :  { %v849_v10 = vsel %vm422_vm5, %v846_v24, %v848_v12  ;;  %v853_v53 = vadd.f32 %v846_v24, %v819_v2  ;;  %v855_v55 = vadd.f32 %v848_v12, %v821_v40  ;;  %v2566_v12 = vmov 55  }
 0x2e0   :  { %v854_v38 = vadd.f32 %v849_v10, %v820_v11  ;;  %v2569_v2 = vmov 53  }
 0x2e2   :  { %v867_v16 = vpop.permute.xlu0 %866  ;;  %v869_v48 = vpop.permute.xlu1 %868 }
 0x2e3   :  { %v870_v17 = vsel %vm422_vm5, %v867_v16, %v869_v48  ;;  %v874_v41 = vadd.f32 %v867_v16, %v853_v53  ;;  %v876_v43 = vadd.f32 %v869_v48, %v855_v55 }
 0x2e4   :  { %v875_v14 = vadd.f32 %v870_v17, %v854_v38  ;;  %v2571_v38 = vmov 56  }
 0x2e6   :  { %v888_v54 = vpop.permute.xlu0 %887  ;;  %v890_v20 = vpop.permute.xlu1 %889 }
 0x2e7   :  { %v891_v18 = vsel %vm422_vm5, %v888_v54, %v890_v20  ;;  %v895_v39 = vadd.f32 %v888_v54, %v874_v41  ;;  %v897_v57 = vadd.f32 %v890_v20, %v876_v43  ;;  %v2572_v54 = vmov 59  }
 0x2e8   :  { %v896_v56 = vadd.f32 %v891_v18, %v875_v14  ;;  %v2573_v20 = vmov 58   ;;  %v2574_v18 = vmov 62   ;;  %v2578_v43 = vmov 68  }
 0x2e9   :  { %v905_v49 = vadd.f32 %v902_v42, %v895_v39  ;;  %v907_v47 = vadd.f32 %v904_v60, %v897_v57  ;;  %v2575_v39 = vmov 63   ;;  %v2577_v42 = vmov 66  }
 0x2ea   :  { %v906_v45 = vadd.f32 %v903_v59, %v896_v56  ;;  %v2576_v56 = vmov 61   ;;  %v2579_v59 = vmov 64   ;;  %v2582_v57 = vmov 74  }
 0x2eb   :  { %v931_v44 = vpop.permute.xlu0 %930  ;;  %v929_v50 = vpop.permute.xlu1 %928  ;;  %v2585_v60 = vmov 76  }
 0x2ec   :  { %v932_v61 = vsel %vm422_vm5, %v929_v50, %v931_v44  ;;  %v936_v6 = vadd.f32 %v929_v50, %v905_v49  ;;  %v938_v21 = vadd.f32 %v931_v44, %v907_v47  ;;  %v2580_v44 = vmov 71  }
 0x2ed   :  { %v937_v46 = vadd.f32 %v932_v61, %v906_v45  ;;  %v2581_v50 = vmov 65   ;;  %v2583_v49 = vmov 67   ;;  %v2586_v61 = vmov 69  }
 0x2ee   :  { %v2588_v47 = vmov 70  }
 0x2ef   :  { %v952_v62 = vpop.permute.xlu0 %951  ;;  %v950_v63 = vpop.permute.xlu1 %949 }
 0x2f0   :  { %v953_v19 = vsel %vm422_vm5, %v950_v63, %v952_v62  ;;  %v957_v31 = vadd.f32 %v950_v63, %v936_v6  ;;  %v959_v25 = vadd.f32 %v952_v62, %v938_v21  ;;  %v2587_v63 = vmov 79  }
 0x2f1   :  { %v958_v51 = vadd.f32 %v953_v19, %v937_v46  ;;  %v2589_v19 = vmov 72   ;;  %v2592_v21 = vmov 77  }
 0x2f3   :  { %v973_v0 = vpop.permute.xlu0 %972  ;;  %v971_v8 = vpop.permute.xlu1 %970 }
 0x2f4   :  { %v974_v3 = vsel %vm422_vm5, %v971_v8, %v973_v0  ;;  %v978_v22 = vadd.f32 %v971_v8, %v957_v31  ;;  %v980_v23 = vadd.f32 %v973_v0, %v959_v25  ;;  %v2590_v31 = vmov 73  }
 0x2f5   :  { %v979_v58 = vadd.f32 %v974_v3, %v958_v51  ;;  %v2591_v0 = vmov 75  }
 0x2f6   :  { %984 = vrot.lane.b32.xlu0 %v978_v22, %s2533_s24  ;;  %v2593_v22 = vmov 78  }
 0x2f7   :  { %986 = vrot.lane.b32.xlu1 %v979_v58, %s2533_s24 }
 0x2fa   :  { %988 = vrot.lane.b32.xlu0 %v980_v23, %s2533_s24 }
 0x2fb   :  { %1154 = vperm.xlu1 %2420, %v2963_v9  }
 0x2fe   :  { %1007 = vperm.xlu0 %2421, %v2963_v9  }
 0x2ff   :  { %2422 = vset.pattern.permute.xlu1 %v2511_v5  ;;  %v2562_v5 = vmov 45  }
 0x300   :  { %999 = vperm.xlu1 %2422, %v3024_v26  }
 0x302   :  { %2424 = vset.pattern.permute.xlu0 %v2557_v27  ;;  %v2594_v27 = vmov 60  }
 0x303   :  { %1027 = vperm.xlu0 %2424, %v2963_v9  }
 0x304   :  { %2423 = vset.pattern.permute.xlu1 %v2558_v15  ;;  %v1049_v32 = vpop.permute.xlu1 %1048 }
 0x305   :  { %1017 = vperm.xlu1 %2423, %v2963_v9   ;;  %v1051_v24 = vmul.f32 0.0, %v1049_v32 }
 0x307   :  { %2427 = vset.pattern.permute.xlu0 %v2559_v28 }
 0x308   :  { %1095 = vperm.xlu0 %2427, %v2963_v9  }
 0x309   :  { %2425 = vset.pattern.permute.xlu1 %v2560_v29 }
 0x30a   :  { %1037 = vperm.xlu1 %2425, %v2963_v9  }
 0x30c   :  { %2433 = vset.pattern.permute.xlu0 %v2561_v30 }
 0x30d   :  { %1105 = vperm.xlu0 %2433, %v2963_v9  }
 0x30e   :  { %2426 = vset.pattern.permute.xlu1 %v2562_v5  ;;  %v3111_v5 = vrot.slane %v2508_v1, 2 }
 0x30f   :  { %1085 = vperm.xlu1 %2426, %v2963_v9  }
 0x311   :  { %2434 = vset.pattern.permute.xlu0 %v2563_v33 }
 0x312   :  { %1113 = vperm.xlu0 %2434, %v2963_v9  }
 0x313   :  { %2429 = vrot.lane.b32.xlu1 %v2508_v1, %s2533_s24 }
 0x314   :  { %2435 = vset.pattern.permute.xlu1 %v2564_v34  ;;  %v3117_v34 = vrot.slane %v2508_v1, 4 }
 0x316   :  { %2439 = vset.pattern.permute.xlu0 %v2565_v35 }
 0x317   :  { %1057 = vrot.lane.b32.xlu1 %v1051_v24, %s2533_s24  ;;  %1201 = vperm.xlu0 %2439, %v2963_v9  }
 0x31b   :  { %1123 = vperm.xlu1 %2435, %v2963_v9   ;;  %2440 = vset.pattern.permute.xlu0 %v2566_v12 }
 0x31f   :  { %2436 = vset.pattern.permute.xlu1 %v2567_v36 }
 0x320   :  { %1133 = vperm.xlu1 %2436, %v2963_v9  }
 0x324   :  { %2437 = vset.pattern.permute.xlu1 %v2568_v52 }
 0x325   :  { %1143 = vperm.xlu1 %2437, %v2963_v9  }
 0x329   :  { %2438 = vset.pattern.permute.xlu1 %v2569_v2  ;;  %v3124_v2 = vrot.slane %v2508_v1, 6 }
 0x32a   :  { %1191 = vperm.xlu1 %2438, %v2963_v9  }
 0x32e   :  { %2442 = vset.pattern.permute.xlu1 %v2570_v37 }
 0x368   :  { %v985_v10 = vpop.permute.xlu0 %984 }
 0x369   :  { %v987_v16 = vpop.permute.xlu1 %986 }
 0x36a   :  { %v3045_v48 = vsel %vm422_vm5, %v985_v10, %v987_v16 }
 0x36b   :  { %1074 = vrot.lane.b32.xlu1 %v3045_v48, %s2533_s24  ;;  %v1052_v13 = vmul.f32 %v1049_v32, %v3045_v48 }
 0x36c   :  { %v989_v11 = vpop.permute.xlu0 %988 }
 0x36d   :  { %v3050_v53 = vsel %vm422_vm5, %v987_v16, %v989_v11  ;;  %v1015_v16 = vrot.slane %v3045_v48, 2 }
 0x36e   :  { %1076 = vrot.lane.b32.xlu0 %v3050_v53, %s2533_s24  ;;  %v1053_v17 = vmul.f32 %v1049_v32, %v3050_v53 }
 0x36f   :  { %1178 = vrot.lane.b32.xlu1 %v3045_v48, %s2533_s24 }
 0x372   :  { %1061 = vrot.lane.b32.xlu0 %v1053_v17, %s2533_s24 }
 0x373   :  { %1059 = vrot.lane.b32.xlu1 %v1052_v13, %s2533_s24 }
 0x376   :  { %1211 = vperm.xlu0 %2440, %v2963_v9  }
 0x377   :  { %1180 = vrot.lane.b32.xlu1 %v3050_v53, %s2533_s24 }
 0x37a   :  { %2441 = vset.pattern.permute.xlu0 %v2571_v38  ;;  %v1155_v40 = vpop.permute.xlu1 %1154 }
 0x37b   :  { %1219 = vperm.xlu0 %2441, %v2963_v9   ;;  %1229 = vperm.xlu1 %2442, %v2963_v9   ;;  %v1157_v41 = vmul.f32 %v1155_v40, %v3045_v48  ;;  %v1158_v14 = vmul.f32 %v1155_v40, %v3050_v53  ;;  %v1159_v55 = vmul.f32 0.0, %v1155_v40 }
 0x37d   :  { %v1008_v3 = vpop.permute.xlu0 %1007 }
 0x37e   :  { %v1010_v30 = vmul.f32 0.0, %v1008_v3  ;;  %v1011_v10 = vmul.f32 %v1008_v3, %v3045_v48 }
 0x37f   :  { %2444 = vset.pattern.permute.xlu0 %v2572_v54  ;;  %1163 = vrot.lane.b32.xlu1 %v1157_v41, %s2533_s24  ;;  %v3087_v45 = vpop.permute.xlu1 %999 }
 0x380   :  { %1249 = vperm.xlu0 %2444, %v2963_v9   ;;  %2443 = vset.pattern.permute.xlu1 %v2573_v20  ;;  %v1012_v24 = vadd.f32 %v1010_v30, %v3087_v45  ;;  %v1013_v54 = vadd.f32 %v1011_v10, %v3087_v45 }
 0x382   :  { %v1028_v25 = vpop.permute.xlu0 %1027 }
 0x383   :  { %1165 = vrot.lane.b32.xlu1 %v1158_v14, %s2533_s24  ;;  %v1030_v36 = vmul.f32 %v1028_v25, %v3117_v34  ;;  %v1025_v14 = vrot.slane %v3045_v48, 4 }
 0x384   :  { %2446 = vset.pattern.permute.xlu0 %v2574_v18  ;;  %v1018_v62 = vpop.permute.xlu1 %1017 }
 0x385   :  { %1316 = vperm.xlu0 %2446, %v2963_v9   ;;  %v1020_v35 = vmul.f32 %v1018_v62, %v3111_v5  ;;  %v1021_v17 = vmul.f32 %v1018_v62, %v1015_v16 }
 0x387   :  { %1239 = vperm.xlu1 %2443, %v2963_v9   ;;  %v1096_v23 = vpop.permute.xlu0 %1095  ;;  %v1022_v52 = vadd.f32 %v1020_v35, %v1012_v24  ;;  %v1023_v18 = vadd.f32 %v1021_v17, %v1013_v54 }
 0x389   :  { %2452 = vset.pattern.permute.xlu0 %v2575_v39  ;;  %v1038_v6 = vpop.permute.xlu1 %1037  ;;  %v1032_v13 = vadd.f32 %v1030_v36, %v1022_v52 }
 0x38a   :  { %1337 = vperm.xlu0 %2452, %v2963_v9   ;;  %v1040_v38 = vmul.f32 %v1038_v6, %v3124_v2 }
 0x38b   :  { %1167 = vrot.lane.b32.xlu1 %v1159_v55, %s2533_s24 }
 0x38c   :  { %2445 = vset.pattern.permute.xlu1 %v2576_v56  ;;  %v1106_v28 = vpop.permute.xlu0 %1105  ;;  %v1042_v39 = vadd.f32 %v1040_v38, %v1032_v13 }
 0x38e   :  { %2455 = vset.pattern.permute.xlu0 %v2577_v42  ;;  %v3094_v46 = vpop.permute.xlu1 %1085  ;;  %v1031_v42 = vmul.f32 %v1028_v25, %v1025_v14 }
 0x38f   :  { %1420 = vperm.xlu0 %2455, %v2963_v9   ;;  %1295 = vperm.xlu1 %2445, %v2963_v9  }
 0x391   :  { %v1114_v33 = vpop.permute.xlu0 %1113 }
 0x392   :  { %v3097_v51 = vpop.permute.xlu1 %2429  ;;  %v1116_v30 = vmul.f32 %v1114_v33, %v3045_v48  ;;  %v1117_v54 = vmul.f32 %v1114_v33, %v3050_v53 }
 0x393   :  { %2457 = vset.pattern.permute.xlu0 %v2578_v43  ;;  %2448 = vrot.lane.b32.xlu1 %v2508_v1, %s2509_s12  ;;  %v2431_v11 = vunpack.i.l.bf16 %v3097_v51  ;;  %v1035_v43 = vrot.slane %v3045_v48, 6  ;;  %v1121_v48 = vrot.slane %v3050_v53, 2 }
 0x394   :  { %1460 = vperm.xlu0 %2457, %v2963_v9   ;;  %2453 = vset.pattern.permute.xlu1 %v2579_v59 }
 0x396   :  { %v1058_v8 = vpop.permute.xlu1 %1057  ;;  %v3120_v12 = vpop.permute.xlu0 %1201 }
 0x397   :  { %1359 = vperm.xlu1 %2453, %v2963_v9  }
 0x398   :  { %2460 = vset.pattern.permute.xlu0 %v2580_v44 }
 0x399   :  { %1523 = vperm.xlu0 %2460, %v2963_v9  }
 0x39a   :  { %v3101_v58 = vpop.permute.xlu1 %1123 }
 0x39b   :  { %2454 = vset.pattern.permute.xlu1 %v2581_v50  ;;  %v1033_v50 = vadd.f32 %v1031_v42, %v1023_v18  ;;  %v1126_v10 = vmul.f32 %v3101_v58, %v1015_v16  ;;  %v1131_v42 = vrot.slane %v3050_v53, 4 }
 0x39c   :  { %1399 = vperm.xlu1 %2454, %v2963_v9  }
 0x39d   :  { %2463 = vset.pattern.permute.xlu0 %v2582_v57  ;;  %v1041_v57 = vmul.f32 %v1038_v6, %v1035_v43 }
 0x39e   :  { %1605 = vperm.xlu0 %2463, %v2963_v9  }
 0x39f   :  { %v3106_v15 = vpop.permute.xlu1 %1133 }
 0x3a0   :  { %1386 = vrot.lane.b32.xlu1 %v2508_v1, %s2532_s23 }
 0x3a1   :  { %2456 = vset.pattern.permute.xlu1 %v2583_v49 }
 0x3a2   :  { %1575 = vrot.lane.b32.xlu0 %v2508_v1, %s2584_s29 }
 0x3a3   :  { %2465 = vset.pattern.permute.xlu0 %v2585_v60 }
 0x3a4   :  { %1441 = vperm.xlu1 %2456, %v2963_v9   ;;  %v3108_v29 = vpop.permute.xlu1 %1143 }
 0x3a5   :  { %v1146_v16 = vmul.f32 %v3108_v29, %v1035_v43 }
 0x3a6   :  { %1648 = vperm.xlu0 %2465, %v2963_v9  }
 0x3a8   :  { %2458 = vset.pattern.permute.xlu1 %v2586_v61 }
 0x3a9   :  { %1481 = vperm.xlu1 %2458, %v2963_v9   ;;  %v3113_v32 = vpop.permute.xlu1 %1191 }
 0x3aa   :  { %2473 = vset.pattern.permute.xlu0 %v2587_v63 }
 0x3ad   :  { %2459 = vset.pattern.permute.xlu1 %v2588_v47  ;;  %v1043_v47 = vadd.f32 %v1041_v57, %v1033_v50  ;;  %v1137_v57 = vmul.f32 %v3106_v15, %v1131_v42 }
 0x3ae   :  { %1502 = vperm.xlu1 %2459, %v2963_v9  }
 0x3b2   :  { %2461 = vset.pattern.permute.xlu1 %v2589_v19 }
 0x3b3   :  { %1545 = vperm.xlu1 %2461, %v2963_v9  }
 0x3b7   :  { %2462 = vset.pattern.permute.xlu1 %v2590_v31 }
 0x3b8   :  { %1584 = vperm.xlu1 %2462, %v2963_v9  }
 0x3bc   :  { %2464 = vset.pattern.permute.xlu1 %v2591_v0 }
 0x3bd   :  { %1626 = vperm.xlu1 %2464, %v2963_v9  }
 0x3c1   :  { %2466 = vset.pattern.permute.xlu1 %v2592_v21 }
 0x3c2   :  { %1687 = vperm.xlu1 %2466, %v2963_v9  }
 0x3c6   :  { %2467 = vset.pattern.permute.xlu1 %v2593_v22 }
 0x3c7   :  { %1708 = vperm.xlu1 %2467, %v2963_v9  }
 0x3cb   :  { %2469 = vrot.lane.b32.xlu1 %v2508_v1, %s2525_s20 }
 0x3cc   :  { %2474 = vset.pattern.permute.xlu1 %v2594_v27 }
 0x3dd   :  { %v1075_v37 = vpop.permute.xlu1 %1074 }
 0x3de   :  { %v1078_v40 = vsel %vm422_vm5, %v2431_v11, %v1075_v37 }
 0x3df   :  { %v1082_v55 = vrot.slane %v1078_v40, 2  ;;  %v1092_v60 = vrot.slane %v1078_v40, 4  ;;  %v1102_v31 = vrot.slane %v1078_v40, 6 }
 0x3e0   :  { %v1077_v20 = vpop.permute.xlu0 %1076 }
 0x3e1   :  { %v1179_v41 = vpop.permute.xlu1 %1178  ;;  %v1088_v49 = vmul.f32 %v3094_v46, %v1082_v55  ;;  %v1079_v45 = vsel %vm422_vm5, %v1075_v37, %v1077_v20  ;;  %v1098_v19 = vmul.f32 %v1096_v23, %v1092_v60  ;;  %v1108_v22 = vmul.f32 %v1106_v28, %v1102_v31 }
 0x3e2   :  { %v1083_v0 = vrot.slane %v1079_v45, 2  ;;  %v1093_v25 = vrot.slane %v1079_v45, 4  ;;  %v1103_v35 = vrot.slane %v1079_v45, 6 }
 0x3e4   :  { %v1062_v61 = vpop.permute.xlu0 %1061  ;;  %v1099_v24 = vmul.f32 %v1096_v23, %v1093_v25  ;;  %v1109_v11 = vmul.f32 %v1106_v28, %v1103_v35 }
 0x3e5   :  { %v1060_v56 = vpop.permute.xlu1 %1059 }
 0x3e6   :  { %v1063_v59 = vsel %vm422_vm5, %v1058_v8, %v1060_v56  ;;  %v1064_v63 = vsel %vm422_vm5, %v1060_v56, %v1062_v61  ;;  %v1089_v8 = vmul.f32 %v3094_v46, %v1083_v0  ;;  %v1136_v46 = vmul.f32 %v3106_v15, %v1025_v14 }
 0x3e7   :  { %v1067_v44 = vadd.f32 %v1063_v59, %v1042_v39  ;;  %v1068_v21 = vadd.f32 %v1064_v63, %v1043_v47  ;;  %v1127_v39 = vmul.f32 %v3101_v58, %v1121_v48  ;;  %v2432_v14 = vunpack.i.h.bf16 %v3097_v51 }
 0x3e8   :  { %v1141_v58 = vrot.slane %v3050_v53, 6 }
 0x3e9   :  { %v1090_v62 = vadd.f32 %v1088_v49, %v1067_v44  ;;  %v1091_v6 = vadd.f32 %v1089_v8, %v1068_v21  ;;  %v1181_v52 = vpop.permute.xlu1 %1180 }
 0x3ea   :  { %v1184_v20 = vsel %vm422_vm5, %v1179_v41, %v1181_v52  ;;  %v1185_v43 = vsel %vm422_vm5, %v1181_v52, %v2432_v14  ;;  %v1147_v51 = vmul.f32 %v3108_v29, %v1141_v58 }
 0x3eb   :  { %v1100_v3 = vadd.f32 %v1098_v19, %v1090_v62  ;;  %v1101_v36 = vadd.f32 %v1099_v24, %v1091_v6  ;;  %v1188_v28 = vrot.slane %v1184_v20, 2  ;;  %v1198_v59 = vrot.slane %v1184_v20, 4 }
 0x3ec   :  { %v1208_v45 = vrot.slane %v1184_v20, 6  ;;  %v1189_v31 = vrot.slane %v1185_v43, 2  ;;  %v1199_v15 = vrot.slane %v1185_v43, 4  ;;  %v1209_v52 = vrot.slane %v1185_v43, 6 }
 0x3ed   :  { %v1110_v27 = vadd.f32 %v1108_v22, %v1100_v3  ;;  %v1111_v17 = vadd.f32 %v1109_v11, %v1101_v36  ;;  %v1194_v49 = vmul.f32 %v3113_v32, %v1188_v28  ;;  %v1204_v61 = vmul.f32 %v3120_v12, %v1198_v59 }
 0x3ee   :  { %v1195_v36 = vmul.f32 %v3113_v32, %v1189_v31  ;;  %v1205_v29 = vmul.f32 %v3120_v12, %v1199_v15 }
 0x3ef   :  { %v1118_v37 = vadd.f32 %v1116_v30, %v1110_v27  ;;  %v1119_v55 = vadd.f32 %v1117_v54, %v1111_v17 }
 0x3f1   :  { %v1128_v40 = vadd.f32 %v1126_v10, %v1118_v37  ;;  %v1129_v50 = vadd.f32 %v1127_v39, %v1119_v55 }
 0x3f3   :  { %v1138_v18 = vadd.f32 %v1136_v46, %v1128_v40  ;;  %v1139_v19 = vadd.f32 %v1137_v57, %v1129_v50 }
 0x3f5   :  { %v1212_v13 = vpop.permute.xlu0 %1211  ;;  %v1148_v33 = vadd.f32 %v1146_v16, %v1138_v18  ;;  %v1149_v25 = vadd.f32 %v1147_v51, %v1139_v19 }
 0x3f6   :  { %v1214_v0 = vmul.f32 %v1212_v13, %v1208_v45 }
 0x3fa   :  { %v1230_v38 = vpop.permute.xlu1 %1229  ;;  %v1220_v56 = vpop.permute.xlu0 %1219 }
 0x3fb   :  { %v1222_v3 = vmul.f32 %v1220_v56, %v3050_v53  ;;  %v1232_v30 = vmul.f32 %v1230_v38, %v1121_v48  ;;  %v1215_v53 = vmul.f32 %v1212_v13, %v1209_v52  ;;  %v1233_v32 = vmul.f32 %v1230_v38, %v3111_v5 }
 0x3fe   :  { %v1164_v23 = vpop.permute.xlu1 %1163 }
 0x3ff   :  { %v1250_v62 = vpop.permute.xlu0 %1249 }
 0x400   :  { %v1252_v40 = vmul.f32 %v1250_v62, %v1141_v58  ;;  %v1253_v59 = vmul.f32 %v1250_v62, %v3124_v2 }
 0x402   :  { %v1166_v44 = vpop.permute.xlu1 %1165 }
 0x403   :  { %v1169_v41 = vsel %vm422_vm5, %v1164_v23, %v1166_v44  ;;  %v1223_v23 = vmul.f32 0.0, %v1220_v56 }
 0x404   :  { %v1173_v60 = vadd.f32 %v1169_v41, %v1148_v33  ;;  %v3157_v8 = vpop.permute.xlu0 %1316 }
 0x406   :  { %v1196_v63 = vadd.f32 %v1194_v49, %v1173_v60  ;;  %v1240_v47 = vpop.permute.xlu1 %1239 }
 0x407   :  { %v1242_v10 = vmul.f32 %v1240_v47, %v1131_v42  ;;  %v1243_v16 = vmul.f32 %v1240_v47, %v3117_v34 }
 0x408   :  { %v1206_v21 = vadd.f32 %v1204_v61, %v1196_v63 }
 0x409   :  { %v3164_v20 = vpop.permute.xlu0 %1337 }
 0x40a   :  { %v1216_v22 = vadd.f32 %v1214_v0, %v1206_v21  ;;  %v1168_v6 = vpop.permute.xlu1 %1167 }
 0x40b   :  { %v1170_v27 = vsel %vm422_vm5, %v1166_v44, %v1168_v6 }
 0x40c   :  { %v1224_v24 = vadd.f32 %v1222_v3, %v1216_v22  ;;  %v1174_v35 = vadd.f32 %v1170_v27, %v1149_v25 }
 0x40e   :  { %v1234_v37 = vadd.f32 %v1232_v30, %v1224_v24  ;;  %v1197_v11 = vadd.f32 %v1195_v36, %v1174_v35  ;;  %v3162_v17 = vpop.permute.xlu1 %1295  ;;  %v3176_v42 = vpop.permute.xlu0 %1420 }
 0x410   :  { %v1244_v54 = vadd.f32 %v1242_v10, %v1234_v37  ;;  %v1207_v46 = vadd.f32 %v1205_v29, %v1197_v11 }
 0x412   :  { %v3166_v48 = vadd.f32 %v1252_v40, %v1244_v54  ;;  %v1217_v18 = vadd.f32 %v1215_v53, %v1207_v46  ;;  %v3168_v55 = vpop.permute.xlu1 %2448 }
 0x413   :  { %v2451_v39 = vunpack.i.h.bf16 %v3168_v55  ;;  %v2450_v13 = vunpack.i.l.bf16 %v3168_v55  ;;  %v1461_v50 = vpop.permute.xlu0 %1460 }
 0x414   :  { %v1225_v12 = vadd.f32 %v1223_v23, %v1217_v18  ;;  %1286 = vrot.lane.b32.xlu1 %v3166_v48, %s2509_s12  ;;  %v1463_v15 = vmul.f32 %v1461_v50, %v3166_v48  ;;  %v1478_v6 = vrot.slane %v3166_v48, 2  ;;  %v1499_v35 = vrot.slane %v3166_v48, 4 }
 0x415   :  { %v1288_v5 = vsel %vm52_vm0, %v2450_v13, %v2451_v39  ;;  %v1520_v37 = vrot.slane %v3166_v48, 6 }
 0x416   :  { %v1235_v28 = vadd.f32 %v1233_v32, %v1225_v12  ;;  %v1360_v56 = vpop.permute.xlu1 %1359  ;;  %v1292_v34 = vrot.slane %v1288_v5, 2  ;;  %v1313_v41 = vrot.slane %v1288_v5, 4  ;;  %v1334_v58 = vrot.slane %v1288_v5, 6 }
 0x417   :  { %v1362_v45 = vmul.f32 0.0, %v1360_v56  ;;  %v1363_v0 = vmul.f32 %v1360_v56, %v3166_v48 }
 0x418   :  { %v1245_v44 = vadd.f32 %v1243_v16, %v1235_v28  ;;  %1388 = vrot.lane.b32.xlu1 %v3166_v48, %s2532_s23  ;;  %v1298_v14 = vmul.f32 %v3162_v17, %v1292_v34  ;;  %v1524_v57 = vpop.permute.xlu0 %1523  ;;  %v1319_v60 = vmul.f32 %v3157_v8, %v1313_v41 }
 0x419   :  { %v1526_v11 = vmul.f32 %v1524_v57, %v1520_v37 }
 0x41a   :  { %v3184_v38 = vadd.f32 %v1253_v59, %v1245_v44 }
 0x41b   :  { %v3186_v33 = vpop.permute.xlu1 %1399 }
 0x41c   :  { %1390 = vrot.lane.b32.xlu0 %v3184_v38, %s2532_s23  ;;  %1270 = vperm.xlu1 %2474, %v2963_v9   ;;  %v1364_v51 = vmul.f32 %v1360_v56, %v3184_v38  ;;  %v1464_v31 = vmul.f32 %v1461_v50, %v3184_v38  ;;  %v1479_v25 = vrot.slane %v3184_v38, 2  ;;  %v1500_v24 = vrot.slane %v3184_v38, 4 }
 0x41d   :  { %v3203_v43 = vpop.permute.xlu0 %1605  ;;  %v1521_v36 = vrot.slane %v3184_v38, 6 }
 0x41f   :  { %v3191_v2 = vpop.permute.xlu1 %1386  ;;  %v1527_v10 = vmul.f32 %v1524_v57, %v1521_v36 }
 0x420   :  { %1729 = vperm.xlu0 %2473, %v2963_v9   ;;  %2475 = vset.pattern.permute.xlu1 %v2512_v7  ;;  %v1340_v7 = vmul.f32 %v3164_v20, %v1334_v58 }
 0x421   :  { %1261 = vperm.xlu1 %2475, %v3024_v26   ;;  %v3210_v61 = vpop.permute.xlu0 %1575 }
 0x423   :  { %v3197_v49 = vpop.permute.xlu1 %1441 }
 0x424   :  { %1302 = vrot.lane.b32.xlu0 %v1298_v14, %s2525_s20 }
 0x425   :  { %1571 = vrot.lane.b32.xlu1 %v3166_v48, %s2584_s29  ;;  %v1649_v47 = vpop.permute.xlu0 %1648 }
 0x426   :  { %v3215_v19 = vmul.f32 0.0, %v1649_v47  ;;  %v1651_v3 = vmul.f32 %v1649_v47, %v3184_v38 }
 0x428   :  { %v1482_v9 = vpop.permute.xlu1 %1481  ;;  %1323 = vrot.lane.b32.xlu0 %v1319_v60, %s2525_s20 }
 0x429   :  { %1573 = vrot.lane.b32.xlu1 %v3184_v38, %s2584_s29  ;;  %v1485_v27 = vmul.f32 %v1482_v9, %v1479_v25  ;;  %v1484_v30 = vmul.f32 %v1482_v9, %v1478_v6 }
 0x42c   :  { %1344 = vrot.lane.b32.xlu0 %v1340_v7, %s2525_s20 }
 0x42d   :  { %v1503_v26 = vpop.permute.xlu1 %1502 }
 0x42e   :  { %v1506_v52 = vmul.f32 %v1503_v26, %v1500_v24  ;;  %v1505_v29 = vmul.f32 %v1503_v26, %v1499_v35 }
 0x430   :  { %1674 = vrot.lane.b32.xlu0 %v3184_v38, %s2525_s20 }
 0x432   :  { %v1546_v62 = vpop.permute.xlu1 %1545 }
 0x433   :  { %v1550_v63 = vmul.f32 0.0, %v1546_v62  ;;  %v1549_v21 = vmul.f32 %v1546_v62, %v3184_v38  ;;  %v1548_v22 = vmul.f32 %v1546_v62, %v3166_v48 }
 0x434   :  { %1368 = vrot.lane.b32.xlu0 %v1362_v45, %s2584_s29 }
 0x435   :  { %1558 = vrot.lane.b32.xlu1 %v1550_v63, %s2515_s0 }
 0x437   :  { %v1585_v53 = vpop.permute.xlu1 %1584 }
 0x438   :  { %1372 = vrot.lane.b32.xlu0 %v1364_v51, %s2584_s29 }
 0x439   :  { %1659 = vrot.lane.b32.xlu1 %v3215_v19, %s2533_s24 }
 0x43c   :  { %1469 = vrot.lane.b32.xlu0 %v1464_v31, %s2525_s20  ;;  %v3246_v40 = vpop.permute.xlu1 %1626 }
 0x43d   :  { %1370 = vrot.lane.b32.xlu1 %v1363_v0, %s2584_s29 }
 0x440   :  { %1556 = vrot.lane.b32.xlu0 %v1549_v21, %s2515_s0 }
 0x441   :  { %1467 = vrot.lane.b32.xlu1 %v1463_v15, %s2525_s20  ;;  %v3248_v54 = vpop.permute.xlu1 %1687 }
 0x444   :  { %1657 = vrot.lane.b32.xlu0 %v1651_v3, %s2533_s24 }
 0x445   :  { %1554 = vrot.lane.b32.xlu1 %v1548_v22, %s2515_s0 }
 0x446   :  { %v3250_v46 = vpop.permute.xlu1 %1708 }
 0x448   :  { %1490 = vrot.lane.b32.xlu0 %v1485_v27, %s2525_s20 }
 0x449   :  { %1488 = vrot.lane.b32.xlu1 %v1484_v30, %s2525_s20 }
 0x44a   :  { %v3252_v23 = vpop.permute.xlu1 %2469 }
 0x44b   :  { %v2472_v60 = vunpack.i.h.bf16 %v3252_v23  ;;  %v2471_v58 = vunpack.i.l.bf16 %v3252_v23 }
 0x44c   :  { %1511 = vrot.lane.b32.xlu0 %v1506_v52, %s2525_s20 }
 0x44d   :  { %1509 = vrot.lane.b32.xlu1 %v1505_v29, %s2525_s20  ;;  %v1681_v26 = vsel %vm71_vm3, %v2471_v58, %v2472_v60 }
 0x44e   :  { %v1685_v45 = vrot.slane %v1681_v26, 2 }
 0x450   :  { %1532 = vrot.lane.b32.xlu0 %v1527_v10, %s2525_s20  ;;  %v1691_v47 = vmul.f32 %v3248_v54, %v1685_v45 }
 0x451   :  { %1530 = vrot.lane.b32.xlu1 %v1526_v11, %s2525_s20 }
 0x486   :  { %v1287_v18 = vpop.permute.xlu1 %1286 }
 0x487   :  { %v1289_v32 = vsel %vm52_vm0, %v2451_v39, %v1287_v18 }
 0x488   :  { %v1293_v12 = vrot.slane %v1289_v32, 2  ;;  %v1314_v16 = vrot.slane %v1289_v32, 4  ;;  %v1335_v5 = vrot.slane %v1289_v32, 6  ;;  %v1727_v32 = vrot.slane %v1681_v26, 6 }
 0x48a   :  { %v1299_v13 = vmul.f32 %v3162_v17, %v1293_v12  ;;  %v1389_v28 = vpop.permute.xlu1 %1388  ;;  %v1320_v44 = vmul.f32 %v3157_v8, %v1314_v16  ;;  %v1341_v17 = vmul.f32 %v3164_v20, %v1335_v5 }
 0x48b   :  { %v1392_v56 = vsel %vm321_vm4, %v3191_v2, %v1389_v28 }
 0x48c   :  { %v1396_v59 = vrot.slane %v1392_v56, 2  ;;  %1304 = vrot.lane.b32.xlu1 %v1299_v13, %s2525_s20  ;;  %v1417_v38 = vrot.slane %v1392_v56, 4  ;;  %v1438_v34 = vrot.slane %v1392_v56, 6 }
 0x48e   :  { %v1391_v50 = vpop.permute.xlu0 %1390  ;;  %v1402_v55 = vmul.f32 %v3186_v33, %v1396_v59  ;;  %v1423_v14 = vmul.f32 %v3176_v42, %v1417_v38  ;;  %v1444_v57 = vmul.f32 %v3197_v49, %v1438_v34 }
 0x48f   :  { %v1393_v39 = vsel %vm321_vm4, %v1389_v28, %v1391_v50 }
 0x490   :  { %1406 = vrot.lane.b32.xlu0 %v1402_v55, %s2525_s20  ;;  %1325 = vrot.lane.b32.xlu1 %v1320_v44, %s2525_s20  ;;  %v1397_v2 = vrot.slane %v1393_v39, 2  ;;  %v1418_v41 = vrot.slane %v1393_v39, 4  ;;  %v1439_v9 = vrot.slane %v1393_v39, 6 }
 0x492   :  { %v1403_v8 = vmul.f32 %v3186_v33, %v1397_v2  ;;  %v1424_v20 = vmul.f32 %v3176_v42, %v1418_v41  ;;  %v1445_v33 = vmul.f32 %v3197_v49, %v1439_v9 }
 0x494   :  { %1427 = vrot.lane.b32.xlu0 %v1423_v14, %s2525_s20  ;;  %1346 = vrot.lane.b32.xlu1 %v1341_v17, %s2525_s20 }
 0x498   :  { %1448 = vrot.lane.b32.xlu0 %v1444_v57, %s2525_s20  ;;  %1408 = vrot.lane.b32.xlu1 %v1403_v8, %s2525_s20 }
 0x49b   :  { %v3277_v7 = vpop.permute.xlu1 %1270 }
 0x49c   :  { %1429 = vrot.lane.b32.xlu1 %v1424_v20, %s2525_s20  ;;  %v1273_v41 = vmul.f32 0.0, %v3277_v7 }
 0x49f   :  { %v1730_v62 = vpop.permute.xlu0 %1729 }
 0x4a0   :  { %v3282_v63 = vpop.permute.xlu1 %1261  ;;  %1450 = vrot.lane.b32.xlu1 %v1445_v33, %s2525_s20  ;;  %v1733_v12 = vmul.f32 %v1730_v62, %v1727_v32 }
 0x4a3   :  { %v3286_v51 = vpop.permute.xlu0 %1302 }
 0x4a4   :  { %v1572_v42 = vpop.permute.xlu1 %1571  ;;  %1696 = vrot.lane.b32.xlu1 %v1691_v47, %s2525_s20 }
 0x4a7   :  { %v3289_v31 = vpop.permute.xlu0 %1323 }
 0x4a8   :  { %v1574_v0 = vpop.permute.xlu1 %1573 }
 0x4a9   :  { %v1577_v21 = vsel %vm1374_vm6, %v1572_v42, %v1574_v0  ;;  %v1578_v49 = vsel %vm1374_vm6, %v1574_v0, %v3210_v61 }
 0x4aa   :  { %v1581_v15 = vrot.slane %v1577_v21, 2  ;;  %v1582_v3 = vrot.slane %v1578_v49, 2  ;;  %v1602_v25 = vrot.slane %v1577_v21, 4  ;;  %v1603_v6 = vrot.slane %v1578_v49, 4 }
 0x4ab   :  { %v3294_v22 = vpop.permute.xlu0 %1344  ;;  %v1623_v35 = vrot.slane %v1577_v21, 6  ;;  %v1624_v36 = vrot.slane %v1578_v49, 6 }
 0x4ac   :  { %v1588_v27 = vmul.f32 %v1585_v53, %v1582_v3  ;;  %v1587_v30 = vmul.f32 %v1585_v53, %v1581_v15  ;;  %v1609_v52 = vmul.f32 %v3203_v43, %v1603_v6  ;;  %v1608_v29 = vmul.f32 %v3203_v43, %v1602_v25  ;;  %v3317_v56 = vpop.permute.xlu1 %1558 }
 0x4ad   :  { %v1630_v10 = vmul.f32 %v3246_v40, %v1624_v36  ;;  %v1629_v11 = vmul.f32 %v3246_v40, %v1623_v35  ;;  %v1706_v53 = vrot.slane %v1681_v26, 4  ;;  %v2595_v40 = vmov 81  }
 0x4ae   :  { %1593 = vrot.lane.b32.xlu0 %v1588_v27, %s2525_s20  ;;  %1591 = vrot.lane.b32.xlu1 %v1587_v30, %s2525_s20  ;;  %v1275_v6 = vmul.f32 %v3277_v7, %v3166_v48 }
 0x4af   :  { %v1675_v24 = vpop.permute.xlu0 %1674  ;;  %v1712_v43 = vmul.f32 %v3250_v46, %v1706_v53  ;;  %2476 = vset.pattern.permute.xlu0 %v2595_v40 }
 0x4b0   :  { %v1680_v61 = vsel %vm71_vm3, %v1675_v24, %v2471_v58  ;;  %v3319_v44 = vpop.permute.xlu1 %1659  ;;  %v1276_v58 = vadd.f32 %v1273_v41, %v3282_v63  ;;  %v1278_v24 = vadd.f32 %v1275_v6, %v3282_v63 }
 0x4b1   :  { %v1684_v37 = vrot.slane %v1680_v61, 2  ;;  %v1705_v18 = vrot.slane %v1680_v61, 4  ;;  %v1726_v16 = vrot.slane %v1680_v61, 6 }
 0x4b2   :  { %1614 = vrot.lane.b32.xlu0 %v1609_v52, %s2525_s20  ;;  %1612 = vrot.lane.b32.xlu1 %v1608_v29, %s2525_s20  ;;  %v1310_v33 = vadd.f32 %v3286_v51, %v1276_v58 }
 0x4b3   :  { %v1690_v23 = vmul.f32 %v3248_v54, %v1684_v37  ;;  %v1711_v13 = vmul.f32 %v3250_v46, %v1705_v18  ;;  %v1732_v28 = vmul.f32 %v1730_v62, %v1726_v16  ;;  %v2596_v54 = vmov 82   ;;  %v1369_v59 = vpop.permute.xlu0 %1368 }
 0x4b4   :  { %2477 = vset.pattern.permute.xlu1 %v2596_v54  ;;  %v1371_v5 = vpop.permute.xlu1 %1370  ;;  %v1331_v47 = vadd.f32 %v3289_v31, %v1310_v33 }
 0x4b5   :  { %v1375_v27 = vsel %vm1374_vm6, %v1369_v59, %v1371_v5 }
 0x4b6   :  { %1635 = vrot.lane.b32.xlu0 %v1630_v10, %s2525_s20  ;;  %1633 = vrot.lane.b32.xlu1 %v1629_v11, %s2525_s20  ;;  %v1352_v49 = vadd.f32 %v3294_v22, %v1331_v47 }
 0x4b7   :  { %v1373_v46 = vpop.permute.xlu0 %1372 }
 0x4b8   :  { %v1468_v50 = vpop.permute.xlu1 %1467  ;;  %v1380_v25 = vadd.f32 %v1369_v59, %v1352_v49  ;;  %v1376_v63 = vsel %vm1374_vm6, %v1371_v5, %v1373_v46 }
 0x4ba   :  { %1694 = vrot.lane.b32.xlu0 %v1690_v23, %s2525_s20  ;;  %1717 = vrot.lane.b32.xlu1 %v1712_v43, %s2525_s20 }
 0x4bb   :  { %v3321_v38 = vpop.permute.xlu0 %1469 }
 0x4bc   :  { %v3325_v39 = vpop.permute.xlu1 %1554  ;;  %v1471_v32 = vsel %vm71_vm3, %v1468_v50, %v3321_v38 }
 0x4be   :  { %1715 = vrot.lane.b32.xlu0 %v1711_v13, %s2525_s20  ;;  %1738 = vrot.lane.b32.xlu1 %v1733_v12, %s2525_s20 }
 0x4bf   :  { %v3323_v55 = vpop.permute.xlu0 %1556 }
 0x4c0   :  { %v1489_v34 = vpop.permute.xlu1 %1488 }
 0x4c2   :  { %1736 = vrot.lane.b32.xlu0 %v1732_v28, %s2525_s20 }
 0x4c3   :  { %v3327_v17 = vpop.permute.xlu0 %1657 }
 0x4c6   :  { %1661 = vrot.lane.b32.xlu0 %v3215_v19, %s2533_s24  ;;  %v1510_v19 = vpop.permute.xlu1 %1509 }
 0x4c7   :  { %v3329_v2 = vpop.permute.xlu0 %1490 }
 0x4c8   :  { %v1492_v16 = vsel %vm71_vm3, %v1489_v34, %v3329_v2 }
 0x4ca   :  { %v1531_v8 = vpop.permute.xlu1 %1530 }
 0x4cb   :  { %v3331_v14 = vpop.permute.xlu0 %1511 }
 0x4cc   :  { %v1513_v59 = vsel %vm71_vm3, %v1510_v19, %v3331_v14 }
 0x4cf   :  { %v3334_v57 = vpop.permute.xlu0 %1532 }
 0x4d0   :  { %v1534_v46 = vsel %vm71_vm3, %v1531_v8, %v3334_v57 }
 0x4fe   :  { %v1305_v60 = vpop.permute.xlu1 %1304 }
 0x4ff   :  { %v1306_v20 = vsel %vm71_vm3, %v3286_v51, %v1305_v60  ;;  %v1312_v29 = vadd.f32 %v1305_v60, %v1278_v24 }
 0x500   :  { %v1311_v62 = vadd.f32 %v1306_v20, %v1276_v58 }
 0x502   :  { %v1407_v9 = vpop.permute.xlu0 %1406  ;;  %v1326_v26 = vpop.permute.xlu1 %1325 }
 0x503   :  { %v1327_v45 = vsel %vm71_vm3, %v3289_v31, %v1326_v26  ;;  %v1414_v30 = vadd.f32 %v1407_v9, %v1380_v25  ;;  %v1333_v10 = vadd.f32 %v1326_v26, %v1312_v29 }
 0x504   :  { %v1332_v42 = vadd.f32 %v1327_v45, %v1311_v62 }
 0x506   :  { %v1428_v0 = vpop.permute.xlu0 %1427  ;;  %v1347_v21 = vpop.permute.xlu1 %1346 }
 0x507   :  { %v1348_v15 = vsel %vm71_vm3, %v3294_v22, %v1347_v21  ;;  %v1435_v36 = vadd.f32 %v1428_v0, %v1414_v30  ;;  %v1354_v53 = vadd.f32 %v1347_v21, %v1333_v10 }
 0x508   :  { %v1353_v3 = vadd.f32 %v1348_v15, %v1332_v42 }
 0x509   :  { %v1382_v12 = vadd.f32 %v1376_v63, %v1354_v53 }
 0x50a   :  { %v1409_v51 = vpop.permute.xlu1 %1408  ;;  %v1449_v31 = vpop.permute.xlu0 %1448  ;;  %v1381_v35 = vadd.f32 %v1375_v27, %v1353_v3 }
 0x50b   :  { %v1410_v52 = vsel %vm71_vm3, %v1407_v9, %v1409_v51  ;;  %v1456_v37 = vadd.f32 %v1449_v31, %v1435_v36  ;;  %v1416_v54 = vadd.f32 %v1409_v51, %v1382_v12 }
 0x50c   :  { %v1415_v11 = vadd.f32 %v1410_v52, %v1381_v35 }
 0x50d   :  { %v1475_v23 = vadd.f32 %v1468_v50, %v1456_v37  ;;  %v1561_v37 = vsel %vm152_vm1, %v3323_v55, %v3317_v56 }
 0x50e   :  { %v1430_v61 = vpop.permute.xlu1 %1429 }
 0x50f   :  { %v1431_v22 = vsel %vm71_vm3, %v1428_v0, %v1430_v61  ;;  %v1496_v40 = vadd.f32 %v1489_v34, %v1475_v23  ;;  %v1437_v60 = vadd.f32 %v1430_v61, %v1416_v54  ;;  %v1560_v34 = vsel %vm152_vm1, %v3325_v39, %v3323_v55  ;;  %v3390_v55 = vld [vmem:[%s3626_s1] sm:$0xff] }
 0x510   :  { %v1436_v48 = vadd.f32 %v1431_v22, %v1415_v11 }
 0x511   :  { %v1517_v41 = vadd.f32 %v1510_v19, %v1496_v40 }
 0x512   :  { %v1451_v7 = vpop.permute.xlu1 %1450 }
 0x513   :  { %v1452_v18 = vsel %vm71_vm3, %v1449_v31, %v1451_v7  ;;  %v1458_v9 = vadd.f32 %v1451_v7, %v1437_v60  ;;  %v1538_v5 = vadd.f32 %v1531_v8, %v1517_v41  ;;  %v1663_v31 = vsel %vm422_vm5, %v3327_v17, %v3319_v44 }
 0x514   :  { %v1457_v43 = vadd.f32 %v1452_v18, %v1436_v48  ;;  %v2600_v41 = vmov 91   ;;  %v2601_v60 = vmov 85  }
 0x515   :  { %v1477_v45 = vadd.f32 %v3321_v38, %v1458_v9  ;;  %v1565_v62 = vadd.f32 %v3325_v39, %v1538_v5  ;;  %v2604_v9 = vmov 96   ;;  %v2606_v5 = vmov 99  }
 0x516   :  { %v1476_v13 = vadd.f32 %v1471_v32, %v1457_v43  ;;  %v1697_v58 = vpop.permute.xlu1 %1696 }
 0x517   :  { %v1498_v8 = vadd.f32 %v3329_v2, %v1477_v45  ;;  %v2610_v45 = vmov 93  }
 0x518   :  { %v1497_v28 = vadd.f32 %v1492_v16, %v1476_v13 }
 0x519   :  { %v1519_v39 = vadd.f32 %v3331_v14, %v1498_v8 }
 0x51a   :  { %v1518_v20 = vadd.f32 %v1513_v59, %v1497_v28  ;;  %v2597_v28 = vmov 84   ;;  %v2599_v59 = vmov 83  }
 0x51b   :  { %v1540_v2 = vadd.f32 %v3334_v57, %v1519_v39 }
 0x51c   :  { %v1539_v26 = vadd.f32 %v1534_v46, %v1518_v20  ;;  %v2603_v20 = vmov 86   ;;  %v2605_v46 = vmov 87  }
 0x51d   :  { %v1567_v10 = vadd.f32 %v1561_v37, %v1540_v2 }
 0x51e   :  { %v1566_v47 = vadd.f32 %v1560_v34, %v1539_v26  ;;  %v2608_v26 = vmov 90   ;;  %v2611_v34 = vmov 95  }
 0x520   :  { %v1594_v50 = vpop.permute.xlu0 %1593  ;;  %v1592_v33 = vpop.permute.xlu1 %1591 }
 0x521   :  { %v1595_v19 = vsel %vm71_vm3, %v1592_v33, %v1594_v50  ;;  %v1599_v21 = vadd.f32 %v1592_v33, %v1565_v62  ;;  %v1601_v48 = vadd.f32 %v1594_v50, %v1567_v10  ;;  %v2607_v50 = vmov 89  }
 0x522   :  { %v1600_v15 = vadd.f32 %v1595_v19, %v1566_v47  ;;  %v2609_v33 = vmov 92   ;;  %v2612_v62 = vmov 97   ;;  %v2613_v19 = vmov 98  }
 0x523   :  { %v2614_v47 = vmov 80  }
 0x524   :  { %v1615_v42 = vpop.permute.xlu0 %1614  ;;  %v1613_v0 = vpop.permute.xlu1 %1612 }
 0x525   :  { %v1616_v49 = vsel %vm71_vm3, %v1613_v0, %v1615_v42  ;;  %v1620_v3 = vadd.f32 %v1613_v0, %v1599_v21  ;;  %v1622_v43 = vadd.f32 %v1615_v42, %v1601_v48 }
 0x526   :  { %v1621_v25 = vadd.f32 %v1616_v49, %v1600_v15  ;;  %v1762_v49 = vld [vmem:[%s3628_s2] sm:$0xff] }
 0x528   :  { %v1636_v38 = vpop.permute.xlu0 %1635  ;;  %v1634_v6 = vpop.permute.xlu1 %1633 }
 0x529   :  { %v1637_v51 = vsel %vm71_vm3, %v1634_v6, %v1636_v38  ;;  %v1641_v27 = vadd.f32 %v1634_v6, %v1620_v3  ;;  %v1643_v32 = vadd.f32 %v1636_v38, %v1622_v43 }
 0x52a   :  { %v1642_v30 = vadd.f32 %v1637_v51, %v1621_v25 }
 0x52b   :  { %v1668_v35 = vadd.f32 %v3327_v17, %v1641_v27 }
 0x52c   :  { %v1695_v24 = vpop.permute.xlu0 %1694  ;;  %v1669_v36 = vadd.f32 %v1663_v31, %v1642_v30  ;;  %v1718_v52 = vpop.permute.xlu1 %1717 }
 0x52d   :  { %v1698_v29 = vsel %vm71_vm3, %v1695_v24, %v1697_v58  ;;  %v1702_v14 = vadd.f32 %v1695_v24, %v1668_v35 }
 0x52e   :  { %v1703_v11 = vadd.f32 %v1698_v29, %v1669_v36 }
 0x530   :  { %v1716_v61 = vpop.permute.xlu0 %1715  ;;  %v1739_v17 = vpop.permute.xlu1 %1738 }
 0x531   :  { %v1719_v22 = vsel %vm71_vm3, %v1716_v61, %v1718_v52  ;;  %v1723_v53 = vadd.f32 %v1716_v61, %v1702_v14 }
 0x532   :  { %v1724_v7 = vadd.f32 %v1719_v22, %v1703_v11 }
 0x534   :  { %v1737_v23 = vpop.permute.xlu0 %1736 }
 0x535   :  { %v1740_v57 = vsel %vm71_vm3, %v1737_v23, %v1739_v17  ;;  %v1744_v18 = vadd.f32 %v1737_v23, %v1723_v53 }
 0x536   :  { %v1745_v63 = vadd.f32 %v1740_v57, %v1724_v7 }
 0x537   :  { %1750 = vrot.lane.b32.xlu1 %v1744_v18, %s2509_s12 }
 0x538   :  { %v1662_v12 = vpop.permute.xlu0 %1661  ;;  %1752 = vrot.lane.b32.xlu0 %v1745_v63, %s2509_s12 }
 0x539   :  { %v1664_v56 = vsel %vm422_vm5, %v3319_v44, %v1662_v12  ;;  %v2598_v44 = vmov 88  }
 0x53a   :  { %v1670_v13 = vadd.f32 %v1664_v56, %v1643_v32 }
 0x53c   :  { %v1704_v16 = vadd.f32 %v1697_v58, %v1670_v13  ;;  %1799 = vperm.xlu0 %2476, %v3390_v55   ;;  %v2602_v58 = vmov 94  }
 0x53e   :  { %v1725_v40 = vadd.f32 %v1718_v52, %v1704_v16 }
 0x540   :  { %2484 = vset.pattern.permute.xlu0 %v2597_v28  ;;  %v1746_v54 = vadd.f32 %v1739_v17, %v1725_v40 }
 0x541   :  { %1863 = vperm.xlu0 %2484, %v3390_v55  }
 0x542   :  { %1754 = vrot.lane.b32.xlu1 %v1746_v54, %s2509_s12 }
 0x545   :  { %1889 = vrot.lane.b32.xlu0 %v2508_v1, %s2522_s19 }
 0x546   :  { %1820 = vperm.xlu1 %2477, %v3390_v55   ;;  %2488 = vset.pattern.permute.xlu0 %v2598_v44 }
 0x549   :  { %1963 = vperm.xlu0 %2488, %v3390_v55  }
 0x54a   :  { %2479 = vrot.lane.b32.xlu1 %v2508_v1, %s2525_s20 }
 0x54b   :  { %2483 = vset.pattern.permute.xlu1 %v2599_v59 }
 0x54d   :  { %2491 = vset.pattern.permute.xlu0 %v2600_v41 }
 0x54e   :  { %1841 = vperm.xlu1 %2483, %v3390_v55   ;;  %2026 = vperm.xlu0 %2491, %v3390_v55  }
 0x552   :  { %2485 = vset.pattern.permute.xlu1 %v2601_v60  ;;  %2494 = vset.pattern.permute.xlu0 %v2602_v58 }
 0x553   :  { %1902 = vperm.xlu1 %2485, %v3390_v55   ;;  %2108 = vperm.xlu0 %2494, %v3390_v55  }
 0x557   :  { %2486 = vset.pattern.permute.xlu1 %v2603_v20  ;;  %2078 = vrot.lane.b32.xlu0 %v2508_v1, %s2515_s0 }
 0x558   :  { %1923 = vperm.xlu1 %2486, %v3390_v55   ;;  %2496 = vset.pattern.permute.xlu0 %v2604_v9 }
 0x55b   :  { %2151 = vperm.xlu0 %2496, %v3390_v55  }
 0x55c   :  { %2487 = vset.pattern.permute.xlu1 %v2605_v46 }
 0x55d   :  { %1944 = vperm.xlu1 %2487, %v3390_v55  }
 0x55f   :  { %2504 = vset.pattern.permute.xlu0 %v2606_v5 }
 0x561   :  { %2489 = vset.pattern.permute.xlu1 %v2607_v50 }
 0x562   :  { %1984 = vperm.xlu1 %2489, %v3390_v55  }
 0x566   :  { %2490 = vset.pattern.permute.xlu1 %v2608_v26 }
 0x567   :  { %2005 = vperm.xlu1 %2490, %v3390_v55  }
 0x56b   :  { %2492 = vset.pattern.permute.xlu1 %v2609_v33 }
 0x56c   :  { %2048 = vperm.xlu1 %2492, %v3390_v55  }
 0x570   :  { %2493 = vset.pattern.permute.xlu1 %v2610_v45 }
 0x571   :  { %2087 = vperm.xlu1 %2493, %v3390_v55  }
 0x575   :  { %2495 = vset.pattern.permute.xlu1 %v2611_v34 }
 0x576   :  { %2129 = vperm.xlu1 %2495, %v3390_v55  }
 0x57a   :  { %2497 = vset.pattern.permute.xlu1 %v2612_v62 }
 0x57b   :  { %2190 = vperm.xlu1 %2497, %v3390_v55  }
 0x57f   :  { %2498 = vset.pattern.permute.xlu1 %v2613_v19 }
 0x580   :  { %2211 = vperm.xlu1 %2498, %v3390_v55  }
 0x584   :  { %2500 = vrot.lane.b32.xlu1 %v2508_v1, %s2509_s12 }
 0x585   :  { %2505 = vset.pattern.permute.xlu1 %v2614_v47 }
 0x5a9   :  { %v1751_v42 = vpop.permute.xlu1 %1750 }
 0x5aa   :  { %v1753_v0 = vpop.permute.xlu0 %1752 }
 0x5ab   :  { %v3420_v21 = vsel %vm52_vm0, %v1751_v42, %v1753_v0 }
 0x5ac   :  { %1891 = vrot.lane.b32.xlu1 %v3420_v21, %s2522_s19  ;;  %1790 = vrot.lane.b32.xlu0 %v3420_v21, %s2525_s20  ;;  %v1981_v59 = vrot.slane %v3420_v21, 2  ;;  %v2002_v58 = vrot.slane %v3420_v21, 4  ;;  %v2023_v46 = vrot.slane %v3420_v21, 6 }
 0x5b0   :  { %1774 = vperm.xlu1 %2505, %v3390_v55  }
 0x5b4   :  { %2506 = vset.pattern.permute.xlu1 %v2510_v4  ;;  %v1755_v1 = vpop.permute.xlu1 %1754 }
 0x5b5   :  { %v1757_v8 = vsel %vm52_vm0, %v1753_v0, %v1755_v1  ;;  %1765 = vperm.xlu1 %2506, %v1762_v49  }
 0x5b6   :  { %1893 = vrot.lane.b32.xlu0 %v1757_v8, %s2522_s19  ;;  %v1982_v12 = vrot.slane %v1757_v8, 2  ;;  %v2024_v40 = vrot.slane %v1757_v8, 6 }
 0x5ba   :  { %2232 = vperm.xlu0 %2504, %v3390_v55   ;;  %v2003_v55 = vrot.slane %v1757_v8, 4 }
 0x5bb   :  { %v3434_v15 = vpop.permute.xlu0 %1799 }
 0x5c0   :  { %v1864_v3 = vpop.permute.xlu0 %1863 }
 0x5c1   :  { %v1866_v22 = vmul.f32 0.0, %v1864_v3  ;;  %v1868_v23 = vmul.f32 %v1864_v3, %v1757_v8  ;;  %v1867_v16 = vmul.f32 %v1864_v3, %v3420_v21 }
 0x5c4   :  { %v3436_v25 = vpop.permute.xlu0 %1889 }
 0x5c5   :  { %v3438_v38 = vpop.permute.xlu1 %1820 }
 0x5c8   :  { %v1964_v6 = vpop.permute.xlu0 %1963 }
 0x5c9   :  { %v3440_v51 = vpop.permute.xlu1 %2479  ;;  %v1967_v57 = vmul.f32 %v1964_v6, %v1757_v8  ;;  %v1966_v54 = vmul.f32 %v1964_v6, %v3420_v21 }
 0x5ca   :  { %v2482_v4 = vunpack.i.h.bf16 %v3440_v51  ;;  %v2481_v27 = vunpack.i.l.bf16 %v3440_v51 }
 0x5cc   :  { %v1792_v39 = vsel %vm71_vm3, %v2481_v27, %v2482_v4 }
 0x5cd   :  { %v3447_v30 = vpop.permute.xlu1 %1841  ;;  %v1796_v24 = vrot.slane %v1792_v39, 2  ;;  %v2027_v31 = vpop.permute.xlu0 %2026  ;;  %v1817_v35 = vrot.slane %v1792_v39, 4  ;;  %v1838_v52 = vrot.slane %v1792_v39, 6 }
 0x5ce   :  { %v2030_v28 = vmul.f32 %v2027_v31, %v2024_v40  ;;  %v2029_v5 = vmul.f32 %v2027_v31, %v2023_v46 }
 0x5cf   :  { %v1802_v2 = vmul.f32 %v3434_v15, %v1796_v24  ;;  %v1823_v29 = vmul.f32 %v3438_v38, %v1817_v35  ;;  %v1844_v37 = vmul.f32 %v3447_v30, %v1838_v52 }
 0x5d1   :  { %1806 = vrot.lane.b32.xlu0 %v1802_v2, %s2509_s12 }
 0x5d2   :  { %v3451_v36 = vpop.permute.xlu1 %1902  ;;  %v3454_v61 = vpop.permute.xlu0 %2108 }
 0x5d5   :  { %1827 = vrot.lane.b32.xlu0 %v1823_v29, %s2509_s12 }
 0x5d6   :  { %v3461_v10 = vpop.permute.xlu0 %2078 }
 0x5d7   :  { %v3458_v14 = vpop.permute.xlu1 %1923 }
 0x5d9   :  { %1848 = vrot.lane.b32.xlu0 %v1844_v37, %s2509_s12 }
 0x5da   :  { %v2152_v53 = vpop.permute.xlu0 %2151 }
 0x5db   :  { %v2155_v48 = vmul.f32 0.0, %v2152_v53  ;;  %v2154_v32 = vmul.f32 %v2152_v53, %v1757_v8 }
 0x5dc   :  { %v3463_v11 = vpop.permute.xlu1 %1944 }
 0x5dd   :  { %1872 = vrot.lane.b32.xlu0 %v1866_v22, %s2515_s0 }
 0x5e1   :  { %v1985_v7 = vpop.permute.xlu1 %1984  ;;  %2177 = vrot.lane.b32.xlu0 %v1757_v8, %s2509_s12 }
 0x5e2   :  { %v1988_v56 = vmul.f32 %v1985_v7, %v1982_v12  ;;  %v1987_v60 = vmul.f32 %v1985_v7, %v1981_v59 }
 0x5e5   :  { %2164 = vrot.lane.b32.xlu0 %v2155_v48, %s2533_s24 }
 0x5e6   :  { %v2006_v17 = vpop.permute.xlu1 %2005 }
 0x5e7   :  { %v2009_v13 = vmul.f32 %v2006_v17, %v2003_v55  ;;  %v2008_v20 = vmul.f32 %v2006_v17, %v2002_v58 }
 0x5e9   :  { %1876 = vrot.lane.b32.xlu0 %v1868_v23, %s2515_s0 }
 0x5eb   :  { %v2049_v18 = vpop.permute.xlu1 %2048 }
 0x5ec   :  { %v2053_v43 = vmul.f32 0.0, %v2049_v18  ;;  %v2052_v63 = vmul.f32 %v2049_v18, %v1757_v8  ;;  %v2051_v44 = vmul.f32 %v2049_v18, %v3420_v21 }
 0x5ed   :  { %1972 = vrot.lane.b32.xlu0 %v1967_v57, %s2509_s12 }
 0x5ee   :  { %2061 = vrot.lane.b32.xlu1 %v2053_v43, %s2584_s29 }
 0x5f0   :  { %v3487_v41 = vpop.permute.xlu1 %2087 }
 0x5f1   :  { %2059 = vrot.lane.b32.xlu0 %v2052_v63, %s2584_s29 }
 0x5f2   :  { %2074 = vrot.lane.b32.xlu1 %v3420_v21, %s2515_s0 }
 0x5f5   :  { %2160 = vrot.lane.b32.xlu0 %v2154_v32, %s2533_s24  ;;  %v3491_v9 = vpop.permute.xlu1 %2129 }
 0x5f6   :  { %2076 = vrot.lane.b32.xlu1 %v1757_v8, %s2515_s0 }
 0x5f9   :  { %1993 = vrot.lane.b32.xlu0 %v1988_v56, %s2509_s12 }
 0x5fa   :  { %2162 = vrot.lane.b32.xlu1 %v2155_v48, %s2533_s24  ;;  %v3496_v50 = vpop.permute.xlu1 %2190 }
 0x5fd   :  { %2014 = vrot.lane.b32.xlu0 %v2009_v13, %s2509_s12 }
 0x5fe   :  { %1874 = vrot.lane.b32.xlu1 %v1867_v16, %s2515_s0 }
 0x5ff   :  { %v3498_v26 = vpop.permute.xlu1 %2211 }
 0x601   :  { %2035 = vrot.lane.b32.xlu0 %v2030_v28, %s2509_s12 }
 0x602   :  { %1970 = vrot.lane.b32.xlu1 %v1966_v54, %s2509_s12 }
 0x603   :  { %v3500_v33 = vpop.permute.xlu1 %2500 }
 0x604   :  { %v2502_v27 = vunpack.i.l.bf16 %v3500_v33 }
 0x606   :  { %2057 = vrot.lane.b32.xlu1 %v2051_v44, %s2584_s29 }
 0x60a   :  { %1991 = vrot.lane.b32.xlu1 %v1987_v60, %s2509_s12 }
 0x60e   :  { %2012 = vrot.lane.b32.xlu1 %v2008_v20, %s2509_s12 }
 0x612   :  { %2033 = vrot.lane.b32.xlu1 %v2029_v5, %s2509_s12 }
 0x61e   :  { %v1791_v45 = vpop.permute.xlu0 %1790  ;;  %v1892_v42 = vpop.permute.xlu1 %1891 }
 0x61f   :  { %v1793_v34 = vsel %vm71_vm3, %v2482_v4, %v1791_v45  ;;  %v1895_v1 = vsel %vm137_vm2, %v3436_v25, %v1892_v42 }
 0x620   :  { %v1797_v62 = vrot.slane %v1793_v34, 2  ;;  %v1818_v47 = vrot.slane %v1793_v34, 4  ;;  %v1839_v49 = vrot.slane %v1793_v34, 6  ;;  %v1899_v51 = vrot.slane %v1895_v1, 2 }
 0x621   :  { %v1920_v24 = vrot.slane %v1895_v1, 4  ;;  %v1941_v37 = vrot.slane %v1895_v1, 6 }
 0x622   :  { %v1803_v19 = vmul.f32 %v3434_v15, %v1797_v62  ;;  %v1824_v0 = vmul.f32 %v3438_v38, %v1818_v47  ;;  %v1845_v6 = vmul.f32 %v3447_v30, %v1839_v49  ;;  %v2503_v15 = vunpack.i.h.bf16 %v3500_v33 }
 0x623   :  { %v1905_v25 = vmul.f32 %v3451_v36, %v1899_v51  ;;  %v1926_v29 = vmul.f32 %v3458_v14, %v1920_v24  ;;  %v1947_v23 = vmul.f32 %v3463_v11, %v1941_v37 }
 0x624   :  { %1808 = vrot.lane.b32.xlu1 %v1803_v19, %s2509_s12  ;;  %v3520_v35 = vsel %vm52_vm0, %v2502_v27, %v2503_v15 }
 0x628   :  { %v1894_v8 = vpop.permute.xlu0 %1893  ;;  %1829 = vrot.lane.b32.xlu1 %v1824_v0, %s2509_s12 }
 0x629   :  { %v1896_v3 = vsel %vm137_vm2, %v1892_v42, %v1894_v8 }
 0x62a   :  { %v1900_v4 = vrot.slane %v1896_v3, 2  ;;  %v1921_v38 = vrot.slane %v1896_v3, 4  ;;  %v1942_v2 = vrot.slane %v1896_v3, 6 }
 0x62c   :  { %v1906_v39 = vmul.f32 %v3451_v36, %v1900_v4  ;;  %1850 = vrot.lane.b32.xlu1 %v1845_v6, %s2509_s12  ;;  %v1927_v30 = vmul.f32 %v3458_v14, %v1921_v38  ;;  %v2188_v36 = vrot.slane %v3520_v35, 2  ;;  %v1948_v53 = vmul.f32 %v3463_v11, %v1942_v2 }
 0x62e   :  { %1911 = vrot.lane.b32.xlu0 %v1906_v39, %s2509_s12  ;;  %v2194_v14 = vmul.f32 %v3496_v50, %v2188_v36 }
 0x62f   :  { %v1775_v31 = vpop.permute.xlu1 %1774 }
 0x630   :  { %1909 = vrot.lane.b32.xlu1 %v1905_v25, %s2509_s12  ;;  %v1777_v52 = vmul.f32 0.0, %v1775_v31  ;;  %v1779_v22 = vmul.f32 %v1775_v31, %v3420_v21 }
 0x632   :  { %1932 = vrot.lane.b32.xlu0 %v1927_v30, %s2509_s12 }
 0x634   :  { %v1766_v48 = vpop.permute.xlu1 %1765  ;;  %1930 = vrot.lane.b32.xlu1 %v1926_v29, %s2509_s12 }
 0x635   :  { %v3530_v7 = vadd.f32 %v1777_v52, %v1766_v48  ;;  %v3532_v17 = vadd.f32 %v1779_v22, %v1766_v48 }
 0x636   :  { %1953 = vrot.lane.b32.xlu0 %v1948_v53, %s2509_s12 }
 0x638   :  { %1951 = vrot.lane.b32.xlu1 %v1947_v23, %s2509_s12 }
 0x639   :  { %v2233_v21 = vpop.permute.xlu0 %2232 }
 0x63a   :  { %2199 = vrot.lane.b32.xlu0 %v2194_v14, %s2509_s12 }
 0x643   :  { %v1807_v57 = vpop.permute.xlu0 %1806 }
 0x644   :  { %v1814_v43 = vadd.f32 %v1807_v57, %v3530_v7 }
 0x647   :  { %v1828_v18 = vpop.permute.xlu0 %1827 }
 0x648   :  { %v1835_v32 = vadd.f32 %v1828_v18, %v1814_v43 }
 0x64b   :  { %v3540_v63 = vpop.permute.xlu0 %1848 }
 0x64c   :  { %v1856_v12 = vadd.f32 %v3540_v63, %v1835_v32 }
 0x64f   :  { %v1873_v56 = vpop.permute.xlu0 %1872 }
 0x650   :  { %v3543_v11 = vadd.f32 %v1873_v56, %v1856_v12 }
 0x653   :  { %v2178_v46 = vpop.permute.xlu0 %2177 }
 0x654   :  { %v2183_v62 = vsel %vm52_vm0, %v2178_v46, %v2502_v27 }
 0x655   :  { %v2187_v19 = vrot.slane %v2183_v62, 2  ;;  %v2208_v1 = vrot.slane %v2183_v62, 4  ;;  %v2229_v51 = vrot.slane %v2183_v62, 6 }
 0x657   :  { %v2193_v49 = vmul.f32 %v3496_v50, %v2187_v19  ;;  %v2235_v4 = vmul.f32 %v2233_v21, %v2229_v51  ;;  %v3577_v39 = vpop.permute.xlu0 %2164 }
 0x65b   :  { %v1877_v24 = vpop.permute.xlu0 %1876 }
 0x65f   :  { %v1973_v2 = vpop.permute.xlu0 %1972 }
 0x660   :  { %v3545_v55 = vpop.permute.xlu1 %2061 }
 0x663   :  { %v2060_v48 = vpop.permute.xlu0 %2059 }
 0x664   :  { %v2075_v13 = vpop.permute.xlu1 %2074 }
 0x667   :  { %v3585_v23 = vpop.permute.xlu0 %2160 }
 0x668   :  { %v2077_v16 = vpop.permute.xlu1 %2076 }
 0x669   :  { %v2080_v40 = vsel %vm152_vm1, %v2075_v13, %v2077_v16  ;;  %v2081_v28 = vsel %vm152_vm1, %v2077_v16, %v3461_v10 }
 0x66a   :  { %v2084_v54 = vrot.slane %v2080_v40, 2  ;;  %v2085_v44 = vrot.slane %v2081_v28, 2  ;;  %v2105_v58 = vrot.slane %v2080_v40, 4  ;;  %v2106_v20 = vrot.slane %v2081_v28, 4 }
 0x66b   :  { %v2126_v10 = vrot.slane %v2080_v40, 6  ;;  %v2127_v34 = vrot.slane %v2081_v28, 6  ;;  %v1994_v14 = vpop.permute.xlu0 %1993 }
 0x66c   :  { %v2090_v59 = vmul.f32 %v3487_v41, %v2084_v54  ;;  %v2091_v60 = vmul.f32 %v3487_v41, %v2085_v44  ;;  %v3552_v5 = vpop.permute.xlu1 %2162  ;;  %v2111_v33 = vmul.f32 %v3454_v61, %v2105_v58  ;;  %v2112_v45 = vmul.f32 %v3454_v61, %v2106_v20 }
 0x66d   :  { %v2209_v41 = vrot.slane %v3520_v35, 4  ;;  %v2132_v47 = vmul.f32 %v3491_v9, %v2126_v10  ;;  %v2133_v42 = vmul.f32 %v3491_v9, %v2127_v34  ;;  %v2230_v61 = vrot.slane %v3520_v35, 6 }
 0x66e   :  { %2096 = vrot.lane.b32.xlu1 %v2091_v60, %s2509_s12  ;;  %2094 = vrot.lane.b32.xlu0 %v2090_v59, %s2509_s12  ;;  %v2214_v9 = vmul.f32 %v3498_v26, %v2208_v1 }
 0x66f   :  { %v2215_v8 = vmul.f32 %v3498_v26, %v2209_v41  ;;  %v2236_v6 = vmul.f32 %v2233_v21, %v2230_v61  ;;  %v2015_v21 = vpop.permute.xlu0 %2014 }
 0x670   :  { %v1875_v0 = vpop.permute.xlu1 %1874 }
 0x671   :  { %v1878_v22 = vsel %vm152_vm1, %v1873_v56, %v1875_v0  ;;  %v1879_v13 = vsel %vm152_vm1, %v1875_v0, %v1877_v24 }
 0x672   :  { %2117 = vrot.lane.b32.xlu1 %v2112_v45, %s2509_s12  ;;  %2115 = vrot.lane.b32.xlu0 %v2111_v33, %s2509_s12 }
 0x674   :  { %v1971_v3 = vpop.permute.xlu1 %1970 }
 0x675   :  { %v1974_v62 = vsel %vm52_vm0, %v1971_v3, %v1973_v2 }
 0x676   :  { %2138 = vrot.lane.b32.xlu1 %v2133_v42, %s2509_s12  ;;  %2136 = vrot.lane.b32.xlu0 %v2132_v47, %s2509_s12 }
 0x678   :  { %v3574_v15 = vpop.permute.xlu1 %2057 }
 0x67a   :  { %2220 = vrot.lane.b32.xlu0 %v2215_v8, %s2509_s12  ;;  %2197 = vrot.lane.b32.xlu1 %v2193_v49, %s2509_s12 }
 0x67c   :  { %v1992_v50 = vpop.permute.xlu1 %1991 }
 0x67d   :  { %v1995_v42 = vsel %vm52_vm0, %v1992_v50, %v1994_v14 }
 0x67e   :  { %2241 = vrot.lane.b32.xlu0 %v2236_v6, %s2509_s12  ;;  %2218 = vrot.lane.b32.xlu1 %v2214_v9, %s2509_s12 }
 0x680   :  { %v2013_v27 = vpop.permute.xlu1 %2012 }
 0x681   :  { %v2016_v49 = vsel %vm52_vm0, %v2013_v27, %v2015_v21 }
 0x682   :  { %2239 = vrot.lane.b32.xlu1 %v2235_v4, %s2509_s12 }
 0x684   :  { %v2034_v38 = vpop.permute.xlu1 %2033 }
 0x696   :  { %v1809_v25 = vpop.permute.xlu1 %1808 }
 0x697   :  { %v1810_v31 = vsel %vm52_vm0, %v1807_v57, %v1809_v25  ;;  %v2036_v57 = vpop.permute.xlu0 %2035 }
 0x698   :  { %v1815_v30 = vadd.f32 %v1810_v31, %v3530_v7  ;;  %v2037_v51 = vsel %vm52_vm0, %v2034_v38, %v2036_v57 }
 0x69a   :  { %v1830_v26 = vpop.permute.xlu1 %1829 }
 0x69b   :  { %v1831_v35 = vsel %vm52_vm0, %v1828_v18, %v1830_v26  ;;  %v1816_v18 = vadd.f32 %v1809_v25, %v3532_v17 }
 0x69c   :  { %v1836_v52 = vadd.f32 %v1831_v35, %v1815_v30 }
 0x69d   :  { %v1837_v7 = vadd.f32 %v1830_v26, %v1816_v18 }
 0x69e   :  { %v1851_v29 = vpop.permute.xlu1 %1850 }
 0x69f   :  { %v1852_v37 = vsel %vm52_vm0, %v3540_v63, %v1851_v29  ;;  %v1858_v12 = vadd.f32 %v1851_v29, %v1837_v7 }
 0x6a0   :  { %v1857_v36 = vadd.f32 %v1852_v37, %v1836_v52  ;;  %v1912_v32 = vpop.permute.xlu0 %1911 }
 0x6a1   :  { %v1885_v63 = vadd.f32 %v1879_v13, %v1858_v12 }
 0x6a2   :  { %v1884_v53 = vadd.f32 %v1878_v22, %v1857_v36  ;;  %v1910_v43 = vpop.permute.xlu1 %1909 }
 0x6a3   :  { %v1919_v28 = vadd.f32 %v1912_v32, %v1885_v63  ;;  %v1913_v56 = vsel %vm52_vm0, %v1910_v43, %v1912_v32  ;;  %v1917_v44 = vadd.f32 %v1910_v43, %v3543_v11  ;;  %v2166_v43 = vsel %vm422_vm5, %v3585_v23, %v3552_v5 }
 0x6a4   :  { %v1933_v40 = vpop.permute.xlu0 %1932  ;;  %v1918_v60 = vadd.f32 %v1913_v56, %v1884_v53  ;;  %v2167_v32 = vsel %vm422_vm5, %v3552_v5, %v3577_v39 }
 0x6a5   :  { %v1940_v17 = vadd.f32 %v1933_v40, %v1919_v28 }
 0x6a6   :  { %v1931_v16 = vpop.permute.xlu1 %1930 }
 0x6a7   :  { %v1934_v59 = vsel %vm52_vm0, %v1931_v16, %v1933_v40  ;;  %v1938_v20 = vadd.f32 %v1931_v16, %v1917_v44 }
 0x6a8   :  { %v1954_v58 = vpop.permute.xlu0 %1953  ;;  %v1939_v33 = vadd.f32 %v1934_v59, %v1918_v60 }
 0x6a9   :  { %v1961_v45 = vadd.f32 %v1954_v58, %v1940_v17 }
 0x6aa   :  { %v1952_v54 = vpop.permute.xlu1 %1951 }
 0x6ab   :  { %v1955_v46 = vsel %vm52_vm0, %v1952_v54, %v1954_v58  ;;  %v1959_v10 = vadd.f32 %v1952_v54, %v1938_v20  ;;  %v1980_v41 = vadd.f32 %v1973_v2, %v1961_v45 }
 0x6ac   :  { %v1960_v34 = vadd.f32 %v1955_v46, %v1939_v33  ;;  %v2200_v6 = vpop.permute.xlu0 %2199 }
 0x6ad   :  { %v1978_v19 = vadd.f32 %v1971_v3, %v1959_v10  ;;  %v2001_v11 = vadd.f32 %v1994_v14, %v1980_v41  ;;  %v2063_v3 = vsel %vm1374_vm6, %v3574_v15, %v2060_v48 }
 0x6ae   :  { %v1979_v47 = vadd.f32 %v1974_v62, %v1960_v34 }
 0x6af   :  { %v1999_v0 = vadd.f32 %v1992_v50, %v1978_v19  ;;  %v2022_v1 = vadd.f32 %v2015_v21, %v2001_v11  ;;  %v2064_v50 = vsel %vm1374_vm6, %v2060_v48, %v3545_v55 }
 0x6b0   :  { %v2000_v61 = vadd.f32 %v1995_v42, %v1979_v47 }
 0x6b1   :  { %v2020_v8 = vadd.f32 %v2013_v27, %v1999_v0  ;;  %v2043_v4 = vadd.f32 %v2036_v57, %v2022_v1 }
 0x6b2   :  { %v2021_v9 = vadd.f32 %v2016_v49, %v2000_v61 }
 0x6b3   :  { %v2041_v25 = vadd.f32 %v2034_v38, %v2020_v8  ;;  %v2070_v35 = vadd.f32 %v3545_v55, %v2043_v4 }
 0x6b4   :  { %v2042_v31 = vadd.f32 %v2037_v51, %v2021_v9 }
 0x6b5   :  { %v2068_v30 = vadd.f32 %v2063_v3, %v2041_v25 }
 0x6b6   :  { %v2069_v2 = vadd.f32 %v2064_v50, %v2042_v31 }
 0x6e0   :  { %v2097_v24 = vpop.permute.xlu1 %2096  ;;  %v2095_v26 = vpop.permute.xlu0 %2094 }
 0x6e1   :  { %v2098_v27 = vsel %vm52_vm0, %v2095_v26, %v2097_v24  ;;  %v2104_v37 = vadd.f32 %v2097_v24, %v2070_v35  ;;  %v2102_v36 = vadd.f32 %v2095_v26, %v2068_v30 }
 0x6e2   :  { %v2103_v22 = vadd.f32 %v2098_v27, %v2069_v2 }
 0x6e4   :  { %v2118_v52 = vpop.permute.xlu1 %2117  ;;  %v2116_v29 = vpop.permute.xlu0 %2115 }
 0x6e5   :  { %v2119_v38 = vsel %vm52_vm0, %v2116_v29, %v2118_v52  ;;  %v2125_v53 = vadd.f32 %v2118_v52, %v2104_v37  ;;  %v2123_v14 = vadd.f32 %v2116_v29, %v2102_v36 }
 0x6e6   :  { %v2124_v21 = vadd.f32 %v2119_v38, %v2103_v22 }
 0x6e8   :  { %v2139_v15 = vpop.permute.xlu1 %2138  ;;  %v2137_v57 = vpop.permute.xlu0 %2136 }
 0x6e9   :  { %v2146_v18 = vadd.f32 %v2139_v15, %v2125_v53  ;;  %v2140_v48 = vsel %vm52_vm0, %v2137_v57, %v2139_v15  ;;  %v2144_v55 = vadd.f32 %v2137_v57, %v2123_v14 }
 0x6ea   :  { %v2145_v7 = vadd.f32 %v2140_v48, %v2124_v21 }
 0x6eb   :  { %v2171_v12 = vadd.f32 %v2166_v43, %v2144_v55  ;;  %v2173_v63 = vadd.f32 %v3577_v39, %v2146_v18 }
 0x6ec   :  { %v2198_v13 = vpop.permute.xlu1 %2197  ;;  %v2172_v16 = vadd.f32 %v2167_v32, %v2145_v7  ;;  %v2221_v40 = vpop.permute.xlu0 %2220 }
 0x6ed   :  { %v2201_v28 = vsel %vm52_vm0, %v2198_v13, %v2200_v6  ;;  %v2205_v54 = vadd.f32 %v2198_v13, %v2171_v12  ;;  %v2207_v44 = vadd.f32 %v2200_v6, %v2173_v63 }
 0x6ee   :  { %v2206_v60 = vadd.f32 %v2201_v28, %v2172_v16 }
 0x6ef   :  { %v2228_v46 = vadd.f32 %v2221_v40, %v2207_v44 }
 0x6f0   :  { %v2219_v56 = vpop.permute.xlu1 %2218  ;;  %v2242_v17 = vpop.permute.xlu0 %2241 }
 0x6f1   :  { %v2222_v59 = vsel %vm52_vm0, %v2219_v56, %v2221_v40  ;;  %v2226_v23 = vadd.f32 %v2219_v56, %v2205_v54  ;;  %v2249_v39 = vadd.f32 %v2242_v17, %v2228_v46 }
 0x6f2   :  { %v2227_v58 = vadd.f32 %v2222_v59, %v2206_v60 }
 0x6f4   :  { %v2240_v20 = vpop.permute.xlu1 %2239 }
 0x6f5   :  { %v2243_v5 = vsel %vm52_vm0, %v2240_v20, %v2242_v17  ;;  %v2247_v33 = vadd.f32 %v2240_v20, %v2226_v23 }
 0x6f6   :  { %v2248_v45 = vadd.f32 %v2243_v5, %v2227_v58 }
 0x6f7   :  { %2253 = vrot.lane.b32.xlu1 %v2247_v33, %s2525_s20 }
 0x6f8   :  { %2255 = vrot.lane.b32.xlu0 %v2248_v45, %s2525_s20 }
 0x6fb   :  { %2257 = vrot.lane.b32.xlu1 %v2249_v39, %s2525_s20 }
 0x769   :  { %v2254_v10 = vpop.permute.xlu1 %2253 }
 0x76a   :  { %v2256_v34 = vpop.permute.xlu0 %2255 }
 0x76b   :  { %v2259_v62 = vsel %vm71_vm3, %v2254_v10, %v2256_v34 }
 0x76c   :  { %2263 = vst [vmem:[%s3629_s3] sm:$0xff] %v2259_v62 }
 0x76d   :  { %v2258_v41 = vpop.permute.xlu1 %2257 }
 0x76e   :  { %v2260_v19 = vsel %vm71_vm3, %v2256_v34, %v2258_v41 }
 0x76f   :  { %2264 = vst [vmem:[%s3629_s3 + $0x8] sm:$0xff] %v2260_v19 }

</bundles_post_ra>
